<compile_context>
chip_gen: v5e
topology: v5e:2x2
jax: 0.10.0
libtpu: 0.0.40
codegen_flags: <defaults>
</compile_context>

<pallas_src>
import functools
import math

import jax
import jax.numpy as jnp
from jax import lax
from jax.experimental import pallas as pl
from jax.experimental.pallas import tpu as pltpu


def _leaky(x):
    # F.leaky_relu(x, 0.2)
    return jnp.where(x >= 0, x, 0.2 * x)


def _fused_bottleneck_kernel(x_ref, wr_ref, wc_ref, we_ref,
                             w1_ref, b1_ref, w2_ref, b2_ref,
                             o_ref, hs_ref, acc_ref, *, K, dilate):
    # One batch element per grid step; all weights + activations resident in VMEM.
    _, H, W, Cin = x_ref.shape
    D = wr_ref.shape[1]
    Cout = we_ref.shape[1]
    HW = H * W
    pad = dilate
    Hp = H + 2 * pad

    x = x_ref[...].reshape(HW, Cin)                              # (HW, Cin) f32

    # ---- conv_reduce (1x1) + leaky_relu(0.2) -------------------------------
    h = jnp.dot(x.astype(jnp.bfloat16), wr_ref[...],
                preferred_element_type=jnp.float32)              # (HW, D) f32
    h = _leaky(h).reshape(H, W, D)

    # ---- build K column-shifted, vertically zero-padded bf16 copies of h ---
    # Column shifts via pltpu.roll (XLU) + border mask on the f32 value, then
    # ONE f32->bf16 cast per copy.  All scratch accesses below slice only the
    # leading (H) axis, so there are no unaligned sublane loads/stores.
    col = lax.broadcasted_iota(jnp.int32, (H, W, D), 1)
    zrow = jnp.zeros((pad, W, D), hs_ref.dtype)
    for kx in range(K):
        rc = kx * dilate - pad                                   # column offset of tap kx
        if rc == 0:
            sh = h
        else:
            rolled = pltpu.roll(h, shift=(-rc) % W, axis=1)
            valid = jnp.logical_and(col + rc >= 0, col + rc < W)
            sh = jnp.where(valid, rolled, 0.0)
        hs_ref[kx, 0:pad] = zrow                                 # top halo rows
        hs_ref[kx, pad:pad + H] = sh.astype(hs_ref.dtype)        # interior (1 cast)
        hs_ref[kx, pad + H:Hp] = zrow                            # bottom halo rows

    # ---- conv_conv: grouped KxK dilated conv = K*K accumulated matmuls -----
    for ky in range(K):
        for kx in range(K):
            t = ky * K + kx
            patch = hs_ref[kx, ky * dilate: ky * dilate + H].reshape(HW, D)
            p = jnp.dot(patch, wc_ref[t], preferred_element_type=jnp.float32)
            if t == 0:
                acc_ref[...] = p
            else:
                acc_ref[...] += p
    g = _leaky(acc_ref[...])                                     # (HW, D) f32

    # ---- conv_expand (1x1), no activation ----------------------------------
    y = jnp.dot(g.astype(jnp.bfloat16), we_ref[...],
                preferred_element_type=jnp.float32)              # (HW, Cout) f32

    # ---- Selayer + identity shortcut (stride==1, Cin == Cout) --------------
    s = jnp.sum(y, axis=0, keepdims=True) * (1.0 / HW)           # GAP, (1, Cout)
    z = jnp.dot(s, w1_ref[...], preferred_element_type=jnp.float32) + b1_ref[...]
    z = jnp.maximum(z, 0.0)                                      # ReLU
    e = jnp.dot(z, w2_ref[...], preferred_element_type=jnp.float32) + b2_ref[...]
    e = 1.0 / (1.0 + jnp.exp(-e))                                # Sigmoid, (1, Cout)
    out = x + y * e                                              # residual add
    o_ref[...] = out.reshape(1, H, W, Cout).astype(o_ref.dtype)


def resnext_bottleneck_nhwc(x_nhwc, params):
    """Fused bottleneck on NHWC activations (keep NHWC across stacked blocks
    to avoid per-block NCHW<->NHWC HBM round trips)."""
    B, H, W, Cin = x_nhwc.shape
    K, dilate = params["K"], params["dilate"]
    wr, wc, we = params["w_reduce"], params["w_conv_taps"], params["w_expand"]
    w1, b1, w2, b2 = (params["w_se1"], params["b_se1"],
                      params["w_se2"], params["b_se2"])
    D = wr.shape[1]
    Cout = we.shape[1]
    C16 = w1.shape[1]
    Hp = H + 2 * dilate
    assert Cin == Cout, "identity shortcut requires in_channels == out_channels"

    return pl.pallas_call(
        functools.partial(_fused_bottleneck_kernel, K=K, dilate=dilate),
        out_shape=jax.ShapeDtypeStruct((B, H, W, Cout), x_nhwc.dtype),
        grid=(B,),
        in_specs=[
            pl.BlockSpec((1, H, W, Cin), lambda b: (b, 0, 0, 0)),
            pl.BlockSpec((Cin, D), lambda b: (0, 0)),
            pl.BlockSpec((K * K, D, D), lambda b: (0, 0, 0)),
            pl.BlockSpec((D, Cout), lambda b: (0, 0)),
            pl.BlockSpec((Cout, C16), lambda b: (0, 0)),
            pl.BlockSpec((1, C16), lambda b: (0, 0)),
            pl.BlockSpec((C16, Cout), lambda b: (0, 0)),
            pl.BlockSpec((1, Cout), lambda b: (0, 0)),
        ],
        out_specs=pl.BlockSpec((1, H, W, Cout), lambda b: (b, 0, 0, 0)),
        scratch_shapes=[
            pltpu.VMEM((K, Hp, W, D), jnp.bfloat16),   # K column-shifted copies
            pltpu.VMEM((H * W, D), jnp.float32),       # grouped-conv accumulator
        ],
        compiler_params=pltpu.CompilerParams(
            dimension_semantics=("parallel",),
            vmem_limit_bytes=32 * 1024 * 1024),
    )(x_nhwc, wr, wc, we, w1, b1, w2, b2)


def resnext_bottleneck(x_nchw, params):
    # TODO(synk): stride!=1 path (kernel_size=4 stride-2 grouped conv and the
    # AvgPool2d(2,2) shortcut) is not implemented; default stride=1 only.
    x = jnp.transpose(x_nchw, (0, 2, 3, 1))          # NCHW -> NHWC (boundary only)
    out = resnext_bottleneck_nhwc(x, params)
    return jnp.transpose(out, (0, 3, 1, 2))          # NHWC -> NCHW


def init_params(key, in_channels=256, out_channels=256, stride=1,
                cardinality=32, dilate=1):
    """Deterministic synthetic init matching the PyTorch module's shapes."""
    assert stride == 1, "only the default stride=1 configuration is implemented"
    D = out_channels // 2
    gc = D // cardinality                 # channels per group
    K = 2 + stride                        # kernel size (3 for stride=1)
    k1, k2, k3, k4, k5 = jax.random.split(key, 5)

    w_reduce = jax.random.normal(k1, (in_channels, D), jnp.float32) / math.sqrt(in_channels)
    # torch grouped-conv weight (D, gc, K, K) -> block-diagonal dense, tap-major
    w_group = jax.random.normal(k2, (D, gc, K, K), jnp.float32) / math.sqrt(gc * K * K)
    w_dense = jnp.zeros((K, K, D, D), jnp.float32)
    for g in range(cardinality):
        blk = w_group[g * gc:(g + 1) * gc]                       # (gc_out, gc_in, K, K)
        w_dense = w_dense.at[:, :, g * gc:(g + 1) * gc, g * gc:(g + 1) * gc].set(
            jnp.transpose(blk, (2, 3, 1, 0)))                    # -> (K, K, in, out)
    w_conv_taps = w_dense.reshape(K * K, D, D)                   # tap t = ky*K + kx
    w_expand = jax.random.normal(k3, (D, out_channels), jnp.float32) / math.sqrt(D)

    C16 = out_channels // 16
    w_se1 = jax.random.normal(k4, (out_channels, C16), jnp.float32) / math.sqrt(out_channels)
    b_se1 = jnp.zeros((1, C16), jnp.float32)
    w_se2 = jax.random.normal(k5, (C16, out_channels), jnp.float32) / math.sqrt(C16)
    b_se2 = jnp.zeros((1, out_channels), jnp.float32)

    return dict(
        w_reduce=w_reduce.astype(jnp.bfloat16),
        w_conv_taps=w_conv_taps.astype(jnp.bfloat16),
        w_expand=w_expand.astype(jnp.bfloat16),
        w_se1=w_se1, b_se1=b_se1, w_se2=w_se2, b_se2=b_se2,
        K=K, dilate=dilate)


def reference_forward(x_nchw, params):
    """Pure-JAX reference; matmul inputs quantized to bf16 exactly like the kernel."""
    K, dilate = params["K"], params["dilate"]
    pad = dilate
    wr = params["w_reduce"].astype(jnp.float32)
    wc = params["w_conv_taps"].astype(jnp.float32)
    we = params["w_expand"].astype(jnp.float32)
    D = wr.shape[1]

    def q(a):                                     # mirror kernel's bf16 matmul inputs
        return a.astype(jnp.bfloat16).astype(jnp.float32)

    x = jnp.transpose(x_nchw, (0, 2, 3, 1)).astype(jnp.float32)   # NHWC
    h = jnp.einsum('bhwc,cd->bhwd', q(x), wr)
    h = jnp.where(h >= 0, h, 0.2 * h)
    w_hwio = wc.reshape(K, K, D, D)
    g = lax.conv_general_dilated(
        q(h), w_hwio, window_strides=(1, 1),
        padding=[(pad, pad), (pad, pad)], rhs_dilation=(dilate, dilate),
        dimension_numbers=('NHWC', 'HWIO', 'NHWC'))
    g = jnp.where(g >= 0, g, 0.2 * g)
    y = jnp.einsum('bhwd,dc->bhwc', q(g), we)
    s = jnp.mean(y, axis=(1, 2))                                   # (B, Cout)
    z = jnp.maximum(s @ params["w_se1"] + params["b_se1"], 0.0)
    e = jax.nn.sigmoid(z @ params["w_se2"] + params["b_se2"])      # (B, Cout)
    out = x + y * e[:, None, None, :]
    return jnp.transpose(out, (0, 3, 1, 2))


if __name__ == "__main__":
    key = jax.random.PRNGKey(0)
    kp, kx = jax.random.split(key)
    params = init_params(kp, in_channels=256, out_channels=256,
                         stride=1, cardinality=32, dilate=1)
    x = jax.random.normal(kx, (2, 256, 16, 16), jnp.float32)       # NCHW, like PyTorch

    fwd = jax.jit(lambda xin: resnext_bottleneck(xin, params))
    out = fwd(x)
    jax.block_until_ready(out)
    assert out.shape == x.shape and out.dtype == jnp.float32
    assert bool(jnp.all(jnp.isfinite(out)))

    ref = reference_forward(x, params)
    err = float(jnp.max(jnp.abs(out - ref)))
    assert err < 2e-2, f"max abs error vs reference: {err}"
    print("KERNEL_OK")
</pallas_src>

<mosaic_0001>
module attributes {stable_mosaic.version = 11 : i64} {
  func.func @_fused_bottleneck_kernel(%arg0: i32, %arg1: memref<1x16x16x256xf32, #tpu.memory_space<vmem>>, %arg2: memref<256x128xbf16, #tpu.memory_space<vmem>>, %arg3: memref<9x128x128xbf16, #tpu.memory_space<vmem>>, %arg4: memref<128x256xbf16, #tpu.memory_space<vmem>>, %arg5: memref<256x16xf32, #tpu.memory_space<vmem>>, %arg6: memref<1x16xf32, #tpu.memory_space<vmem>>, %arg7: memref<16x256xf32, #tpu.memory_space<vmem>>, %arg8: memref<1x256xf32, #tpu.memory_space<vmem>>, %arg9: memref<1x16x16x256xf32, #tpu.memory_space<vmem>>, %arg10: memref<3x18x16x128xbf16, #tpu.memory_space<vmem>>, %arg11: memref<256x128xf32, #tpu.memory_space<vmem>>) attributes {dimension_semantics = [#tpu.dimension_semantics<parallel>], iteration_bounds = array<i64: 2>, scalar_prefetch = 0 : i64, scratch_operands = 2 : i64, tpu.core_type = #tpu.core_type<tc>, window_params = [{transform_indices = @transform_0, window_bounds = array<i64: 1, 16, 16, 256>}, {pipeline_mode = #tpu.pipeline_mode<synchronous>, transform_indices = @transform_1, window_bounds = array<i64: 256, 128>}, {pipeline_mode = #tpu.pipeline_mode<synchronous>, transform_indices = @transform_2, window_bounds = array<i64: 9, 128, 128>}, {pipeline_mode = #tpu.pipeline_mode<synchronous>, transform_indices = @transform_3, window_bounds = array<i64: 128, 256>}, {pipeline_mode = #tpu.pipeline_mode<synchronous>, transform_indices = @transform_4, window_bounds = array<i64: 256, 16>}, {pipeline_mode = #tpu.pipeline_mode<synchronous>, transform_indices = @transform_5, window_bounds = array<i64: 1, 16>}, {pipeline_mode = #tpu.pipeline_mode<synchronous>, transform_indices = @transform_6, window_bounds = array<i64: 16, 256>}, {pipeline_mode = #tpu.pipeline_mode<synchronous>, transform_indices = @transform_7, window_bounds = array<i64: 1, 256>}, {transform_indices = @transform_8, window_bounds = array<i64: 1, 16, 16, 256>}]} {
    %c0 = arith.constant 0 : index
    %c0_0 = arith.constant 0 : index
    %c0_1 = arith.constant 0 : index
    %c0_2 = arith.constant 0 : index
    %0 = vector.load %arg1[%c0, %c0_0, %c0_1, %c0_2] : memref<1x16x16x256xf32, #tpu.memory_space<vmem>>, vector<1x16x16x256xf32>
    %1 = vector.shape_cast %0 : vector<1x16x16x256xf32> to vector<256x256xf32>
    %2 = arith.truncf %1 : vector<256x256xf32> to vector<256x256xbf16>
    %c0_3 = arith.constant 0 : index
    %c0_4 = arith.constant 0 : index
    %3 = vector.load %arg2[%c0_3, %c0_4] : memref<256x128xbf16, #tpu.memory_space<vmem>>, vector<256x128xbf16>
    %cst = arith.constant dense<0.000000e+00> : vector<256x128xf32>
    %4 = tpu.matmul %2, %3, %cst {dimension_numbers = #tpu.dot_dimension_numbers<[1], [0], [0], [1], [0, 0, 1, 1], [], []>} : vector<256x256xbf16>, vector<256x128xbf16>, vector<256x128xf32> -> vector<256x128xf32>
    %cst_5 = arith.constant 0.000000e+00 : f32
    %5 = vector.broadcast %cst_5 : f32 to vector<256x128xf32>
    %6 = arith.cmpf oge, %4, %5 : vector<256x128xf32>
    %cst_6 = arith.constant 2.000000e-01 : f32
    %7 = vector.broadcast %cst_6 : f32 to vector<256x128xf32>
    %8 = arith.mulf %7, %4 : vector<256x128xf32>
    %9 = arith.select %6, %4, %8 : vector<256x128xi1>, vector<256x128xf32>
    %10 = vector.shape_cast %9 : vector<256x128xf32> to vector<16x16x128xf32>
    %11 = tpu.iota {dimensions = array<i32: 1>} : vector<16x16x128xi32>
    %cst_7 = arith.constant 0.000000e+00 : bf16
    %12 = vector.broadcast %cst_7 : bf16 to vector<1x16x128xbf16>
    %c1_i32 = arith.constant 1 : i32
    %13 = tpu.dynamic_rotate %10 by %c1_i32 dim 1 : vector<16x16x128xf32>, i32 -> vector<16x16x128xf32>
    %c-1_i32 = arith.constant -1 : i32
    %14 = vector.broadcast %c-1_i32 : i32 to vector<16x16x128xi32>
    %15 = arith.addi %11, %14 : vector<16x16x128xi32>
    %c0_i32 = arith.constant 0 : i32
    %16 = vector.broadcast %c0_i32 : i32 to vector<16x16x128xi32>
    %17 = arith.cmpi sge, %15, %16 : vector<16x16x128xi32>
    %c-1_i32_8 = arith.constant -1 : i32
    %18 = vector.broadcast %c-1_i32_8 : i32 to vector<16x16x128xi32>
    %19 = arith.addi %11, %18 : vector<16x16x128xi32>
    %c16_i32 = arith.constant 16 : i32
    %20 = vector.broadcast %c16_i32 : i32 to vector<16x16x128xi32>
    %21 = arith.cmpi slt, %19, %20 : vector<16x16x128xi32>
    %22 = arith.andi %17, %21 : vector<16x16x128xi1>
    %cst_9 = arith.constant 0.000000e+00 : f32
    %23 = vector.broadcast %cst_9 : f32 to vector<16x16x128xf32>
    %24 = arith.select %22, %13, %23 : vector<16x16x128xi1>, vector<16x16x128xf32>
    %c0_10 = arith.constant 0 : index
    %c0_11 = arith.constant 0 : index
    %c0_12 = arith.constant 0 : index
    %c0_13 = arith.constant 0 : index
    %25 = vector.load %arg10[%c0_10, %c0_11, %c0_12, %c0_13] : memref<3x18x16x128xbf16, #tpu.memory_space<vmem>>, vector<1x1x16x128xbf16>
    %26 = vector.shape_cast %25 : vector<1x1x16x128xbf16> to vector<1x16x128xbf16>
    %27 = vector.shape_cast %12 : vector<1x16x128xbf16> to vector<1x1x16x128xbf16>
    tpu.vector_store %arg10[%c0_10, %c0_11, %c0_12, %c0_13], %27 {strides = array<i32>} : memref<3x18x16x128xbf16, #tpu.memory_space<vmem>>, vector<1x1x16x128xbf16>,
    %28 = arith.truncf %24 : vector<16x16x128xf32> to vector<16x16x128xbf16>
    %c0_14 = arith.constant 0 : index
    %c1 = arith.constant 1 : index
    %c0_15 = arith.constant 0 : index
    %c0_16 = arith.constant 0 : index
    %29 = vector.load %arg10[%c0_14, %c1, %c0_15, %c0_16] : memref<3x18x16x128xbf16, #tpu.memory_space<vmem>>, vector<1x16x16x128xbf16>
    %30 = vector.shape_cast %29 : vector<1x16x16x128xbf16> to vector<16x16x128xbf16>
    %31 = vector.shape_cast %28 : vector<16x16x128xbf16> to vector<1x16x16x128xbf16>
    tpu.vector_store %arg10[%c0_14, %c1, %c0_15, %c0_16], %31 {strides = array<i32>} : memref<3x18x16x128xbf16, #tpu.memory_space<vmem>>, vector<1x16x16x128xbf16>,
    %c0_17 = arith.constant 0 : index
    %c17 = arith.constant 17 : index
    %c0_18 = arith.constant 0 : index
    %c0_19 = arith.constant 0 : index
    %32 = vector.load %arg10[%c0_17, %c17, %c0_18, %c0_19] : memref<3x18x16x128xbf16, #tpu.memory_space<vmem>>, vector<1x1x16x128xbf16>
    %33 = vector.shape_cast %32 : vector<1x1x16x128xbf16> to vector<1x16x128xbf16>
    %34 = vector.shape_cast %12 : vector<1x16x128xbf16> to vector<1x1x16x128xbf16>
    tpu.vector_store %arg10[%c0_17, %c17, %c0_18, %c0_19], %34 {strides = array<i32>} : memref<3x18x16x128xbf16, #tpu.memory_space<vmem>>, vector<1x1x16x128xbf16>,
    %c1_20 = arith.constant 1 : index
    %c0_21 = arith.constant 0 : index
    %c0_22 = arith.constant 0 : index
    %c0_23 = arith.constant 0 : index
    %35 = vector.load %arg10[%c1_20, %c0_21, %c0_22, %c0_23] : memref<3x18x16x128xbf16, #tpu.memory_space<vmem>>, vector<1x1x16x128xbf16>
    %36 = vector.shape_cast %35 : vector<1x1x16x128xbf16> to vector<1x16x128xbf16>
    %37 = vector.shape_cast %12 : vector<1x16x128xbf16> to vector<1x1x16x128xbf16>
    tpu.vector_store %arg10[%c1_20, %c0_21, %c0_22, %c0_23], %37 {strides = array<i32>} : memref<3x18x16x128xbf16, #tpu.memory_space<vmem>>, vector<1x1x16x128xbf16>,
    %38 = arith.truncf %10 : vector<16x16x128xf32> to vector<16x16x128xbf16>
    %c1_24 = arith.constant 1 : index
    %c1_25 = arith.constant 1 : index
    %c0_26 = arith.constant 0 : index
    %c0_27 = arith.constant 0 : index
    %39 = vector.load %arg10[%c1_24, %c1_25, %c0_26, %c0_27] : memref<3x18x16x128xbf16, #tpu.memory_space<vmem>>, vector<1x16x16x128xbf16>
    %40 = vector.shape_cast %39 : vector<1x16x16x128xbf16> to vector<16x16x128xbf16>
    %41 = vector.shape_cast %38 : vector<16x16x128xbf16> to vector<1x16x16x128xbf16>
    tpu.vector_store %arg10[%c1_24, %c1_25, %c0_26, %c0_27], %41 {strides = array<i32>} : memref<3x18x16x128xbf16, #tpu.memory_space<vmem>>, vector<1x16x16x128xbf16>,
    %c1_28 = arith.constant 1 : index
    %c17_29 = arith.constant 17 : index
    %c0_30 = arith.constant 0 : index
    %c0_31 = arith.constant 0 : index
    %42 = vector.load %arg10[%c1_28, %c17_29, %c0_30, %c0_31] : memref<3x18x16x128xbf16, #tpu.memory_space<vmem>>, vector<1x1x16x128xbf16>
    %43 = vector.shape_cast %42 : vector<1x1x16x128xbf16> to vector<1x16x128xbf16>
    %44 = vector.shape_cast %12 : vector<1x16x128xbf16> to vector<1x1x16x128xbf16>
    tpu.vector_store %arg10[%c1_28, %c17_29, %c0_30, %c0_31], %44 {strides = array<i32>} : memref<3x18x16x128xbf16, #tpu.memory_space<vmem>>, vector<1x1x16x128xbf16>,
    %c15_i32 = arith.constant 15 : i32
    %45 = tpu.dynamic_rotate %10 by %c15_i32 dim 1 : vector<16x16x128xf32>, i32 -> vector<16x16x128xf32>
    %c1_i32_32 = arith.constant 1 : i32
    %46 = vector.broadcast %c1_i32_32 : i32 to vector<16x16x128xi32>
    %47 = arith.addi %11, %46 : vector<16x16x128xi32>
    %c0_i32_33 = arith.constant 0 : i32
    %48 = vector.broadcast %c0_i32_33 : i32 to vector<16x16x128xi32>
    %49 = arith.cmpi sge, %47, %48 : vector<16x16x128xi32>
    %c1_i32_34 = arith.constant 1 : i32
    %50 = vector.broadcast %c1_i32_34 : i32 to vector<16x16x128xi32>
    %51 = arith.addi %11, %50 : vector<16x16x128xi32>
    %c16_i32_35 = arith.constant 16 : i32
    %52 = vector.broadcast %c16_i32_35 : i32 to vector<16x16x128xi32>
    %53 = arith.cmpi slt, %51, %52 : vector<16x16x128xi32>
    %54 = arith.andi %49, %53 : vector<16x16x128xi1>
    %cst_36 = arith.constant 0.000000e+00 : f32
    %55 = vector.broadcast %cst_36 : f32 to vector<16x16x128xf32>
    %56 = arith.select %54, %45, %55 : vector<16x16x128xi1>, vector<16x16x128xf32>
    %c2 = arith.constant 2 : index
    %c0_37 = arith.constant 0 : index
    %c0_38 = arith.constant 0 : index
    %c0_39 = arith.constant 0 : index
    %57 = vector.load %arg10[%c2, %c0_37, %c0_38, %c0_39] : memref<3x18x16x128xbf16, #tpu.memory_space<vmem>>, vector<1x1x16x128xbf16>
    %58 = vector.shape_cast %57 : vector<1x1x16x128xbf16> to vector<1x16x128xbf16>
    %59 = vector.shape_cast %12 : vector<1x16x128xbf16> to vector<1x1x16x128xbf16>
    tpu.vector_store %arg10[%c2, %c0_37, %c0_38, %c0_39], %59 {strides = array<i32>} : memref<3x18x16x128xbf16, #tpu.memory_space<vmem>>, vector<1x1x16x128xbf16>,
    %60 = arith.truncf %56 : vector<16x16x128xf32> to vector<16x16x128xbf16>
    %c2_40 = arith.constant 2 : index
    %c1_41 = arith.constant 1 : index
    %c0_42 = arith.constant 0 : index
    %c0_43 = arith.constant 0 : index
    %61 = vector.load %arg10[%c2_40, %c1_41, %c0_42, %c0_43] : memref<3x18x16x128xbf16, #tpu.memory_space<vmem>>, vector<1x16x16x128xbf16>
    %62 = vector.shape_cast %61 : vector<1x16x16x128xbf16> to vector<16x16x128xbf16>
    %63 = vector.shape_cast %60 : vector<16x16x128xbf16> to vector<1x16x16x128xbf16>
    tpu.vector_store %arg10[%c2_40, %c1_41, %c0_42, %c0_43], %63 {strides = array<i32>} : memref<3x18x16x128xbf16, #tpu.memory_space<vmem>>, vector<1x16x16x128xbf16>,
    %c2_44 = arith.constant 2 : index
    %c17_45 = arith.constant 17 : index
    %c0_46 = arith.constant 0 : index
    %c0_47 = arith.constant 0 : index
    %64 = vector.load %arg10[%c2_44, %c17_45, %c0_46, %c0_47] : memref<3x18x16x128xbf16, #tpu.memory_space<vmem>>, vector<1x1x16x128xbf16>
    %65 = vector.shape_cast %64 : vector<1x1x16x128xbf16> to vector<1x16x128xbf16>
    %66 = vector.shape_cast %12 : vector<1x16x128xbf16> to vector<1x1x16x128xbf16>
    tpu.vector_store %arg10[%c2_44, %c17_45, %c0_46, %c0_47], %66 {strides = array<i32>} : memref<3x18x16x128xbf16, #tpu.memory_space<vmem>>, vector<1x1x16x128xbf16>,
    %c0_48 = arith.constant 0 : index
    %c0_49 = arith.constant 0 : index
    %c0_50 = arith.constant 0 : index
    %c0_51 = arith.constant 0 : index
    %67 = vector.load %arg10[%c0_48, %c0_49, %c0_50, %c0_51] : memref<3x18x16x128xbf16, #tpu.memory_space<vmem>>, vector<1x16x16x128xbf16>
    %68 = vector.shape_cast %67 : vector<1x16x16x128xbf16> to vector<16x16x128xbf16>
    %69 = vector.shape_cast %68 : vector<16x16x128xbf16> to vector<256x128xbf16>
    %c0_52 = arith.constant 0 : index
    %c0_53 = arith.constant 0 : index
    %c0_54 = arith.constant 0 : index
    %70 = vector.load %arg3[%c0_52, %c0_53, %c0_54] : memref<9x128x128xbf16, #tpu.memory_space<vmem>>, vector<1x128x128xbf16>
    %71 = vector.shape_cast %70 : vector<1x128x128xbf16> to vector<128x128xbf16>
    %cst_55 = arith.constant dense<0.000000e+00> : vector<256x128xf32>
    %72 = tpu.matmul %69, %71, %cst_55 {dimension_numbers = #tpu.dot_dimension_numbers<[1], [0], [0], [1], [0, 0, 1, 1], [], []>} : vector<256x128xbf16>, vector<128x128xbf16>, vector<256x128xf32> -> vector<256x128xf32>
    %c0_56 = arith.constant 0 : index
    %c0_57 = arith.constant 0 : index
    %73 = vector.load %arg11[%c0_56, %c0_57] : memref<256x128xf32, #tpu.memory_space<vmem>>, vector<256x128xf32>
    tpu.vector_store %arg11[%c0_56, %c0_57], %72 {strides = array<i32>} : memref<256x128xf32, #tpu.memory_space<vmem>>, vector<256x128xf32>,
    %c1_58 = arith.constant 1 : index
    %c0_59 = arith.constant 0 : index
    %c0_60 = arith.constant 0 : index
    %c0_61 = arith.constant 0 : index
    %74 = vector.load %arg10[%c1_58, %c0_59, %c0_60, %c0_61] : memref<3x18x16x128xbf16, #tpu.memory_space<vmem>>, vector<1x16x16x128xbf16>
    %75 = vector.shape_cast %74 : vector<1x16x16x128xbf16> to vector<16x16x128xbf16>
    %76 = vector.shape_cast %75 : vector<16x16x128xbf16> to vector<256x128xbf16>
    %c1_62 = arith.constant 1 : index
    %c0_63 = arith.constant 0 : index
    %c0_64 = arith.constant 0 : index
    %77 = vector.load %arg3[%c1_62, %c0_63, %c0_64] : memref<9x128x128xbf16, #tpu.memory_space<vmem>>, vector<1x128x128xbf16>
    %78 = vector.shape_cast %77 : vector<1x128x128xbf16> to vector<128x128xbf16>
    %cst_65 = arith.constant dense<0.000000e+00> : vector<256x128xf32>
    %79 = tpu.matmul %76, %78, %cst_65 {dimension_numbers = #tpu.dot_dimension_numbers<[1], [0], [0], [1], [0, 0, 1, 1], [], []>} : vector<256x128xbf16>, vector<128x128xbf16>, vector<256x128xf32> -> vector<256x128xf32>
    %c0_66 = arith.constant 0 : index
    %c0_67 = arith.constant 0 : index
    %80 = vector.load %arg11[%c0_66, %c0_67] : memref<256x128xf32, #tpu.memory_space<vmem>>, vector<256x128xf32>
    %81 = arith.addf %80, %79 : vector<256x128xf32>
    %c0_68 = arith.constant 0 : index
    %c0_69 = arith.constant 0 : index
    %82 = vector.load %arg11[%c0_68, %c0_69] : memref<256x128xf32, #tpu.memory_space<vmem>>, vector<256x128xf32>
    tpu.vector_store %arg11[%c0_68, %c0_69], %81 {strides = array<i32>} : memref<256x128xf32, #tpu.memory_space<vmem>>, vector<256x128xf32>,
    %c2_70 = arith.constant 2 : index
    %c0_71 = arith.constant 0 : index
    %c0_72 = arith.constant 0 : index
    %c0_73 = arith.constant 0 : index
    %83 = vector.load %arg10[%c2_70, %c0_71, %c0_72, %c0_73] : memref<3x18x16x128xbf16, #tpu.memory_space<vmem>>, vector<1x16x16x128xbf16>
    %84 = vector.shape_cast %83 : vector<1x16x16x128xbf16> to vector<16x16x128xbf16>
    %85 = vector.shape_cast %84 : vector<16x16x128xbf16> to vector<256x128xbf16>
    %c2_74 = arith.constant 2 : index
    %c0_75 = arith.constant 0 : index
    %c0_76 = arith.constant 0 : index
    %86 = vector.load %arg3[%c2_74, %c0_75, %c0_76] : memref<9x128x128xbf16, #tpu.memory_space<vmem>>, vector<1x128x128xbf16>
    %87 = vector.shape_cast %86 : vector<1x128x128xbf16> to vector<128x128xbf16>
    %cst_77 = arith.constant dense<0.000000e+00> : vector<256x128xf32>
    %88 = tpu.matmul %85, %87, %cst_77 {dimension_numbers = #tpu.dot_dimension_numbers<[1], [0], [0], [1], [0, 0, 1, 1], [], []>} : vector<256x128xbf16>, vector<128x128xbf16>, vector<256x128xf32> -> vector<256x128xf32>
    %c0_78 = arith.constant 0 : index
    %c0_79 = arith.constant 0 : index
    %89 = vector.load %arg11[%c0_78, %c0_79] : memref<256x128xf32, #tpu.memory_space<vmem>>, vector<256x128xf32>
    %90 = arith.addf %89, %88 : vector<256x128xf32>
    %c0_80 = arith.constant 0 : index
    %c0_81 = arith.constant 0 : index
    %91 = vector.load %arg11[%c0_80, %c0_81] : memref<256x128xf32, #tpu.memory_space<vmem>>, vector<256x128xf32>
    tpu.vector_store %arg11[%c0_80, %c0_81], %90 {strides = array<i32>} : memref<256x128xf32, #tpu.memory_space<vmem>>, vector<256x128xf32>,
    %c0_82 = arith.constant 0 : index
    %c1_83 = arith.constant 1 : index
    %c0_84 = arith.constant 0 : index
    %c0_85 = arith.constant 0 : index
    %92 = vector.load %arg10[%c0_82, %c1_83, %c0_84, %c0_85] : memref<3x18x16x128xbf16, #tpu.memory_space<vmem>>, vector<1x16x16x128xbf16>
    %93 = vector.shape_cast %92 : vector<1x16x16x128xbf16> to vector<16x16x128xbf16>
    %94 = vector.shape_cast %93 : vector<16x16x128xbf16> to vector<256x128xbf16>
    %c3 = arith.constant 3 : index
    %c0_86 = arith.constant 0 : index
    %c0_87 = arith.constant 0 : index
    %95 = vector.load %arg3[%c3, %c0_86, %c0_87] : memref<9x128x128xbf16, #tpu.memory_space<vmem>>, vector<1x128x128xbf16>
    %96 = vector.shape_cast %95 : vector<1x128x128xbf16> to vector<128x128xbf16>
    %cst_88 = arith.constant dense<0.000000e+00> : vector<256x128xf32>
    %97 = tpu.matmul %94, %96, %cst_88 {dimension_numbers = #tpu.dot_dimension_numbers<[1], [0], [0], [1], [0, 0, 1, 1], [], []>} : vector<256x128xbf16>, vector<128x128xbf16>, vector<256x128xf32> -> vector<256x128xf32>
    %c0_89 = arith.constant 0 : index
    %c0_90 = arith.constant 0 : index
    %98 = vector.load %arg11[%c0_89, %c0_90] : memref<256x128xf32, #tpu.memory_space<vmem>>, vector<256x128xf32>
    %99 = arith.addf %98, %97 : vector<256x128xf32>
    %c0_91 = arith.constant 0 : index
    %c0_92 = arith.constant 0 : index
    %100 = vector.load %arg11[%c0_91, %c0_92] : memref<256x128xf32, #tpu.memory_space<vmem>>, vector<256x128xf32>
    tpu.vector_store %arg11[%c0_91, %c0_92], %99 {strides = array<i32>} : memref<256x128xf32, #tpu.memory_space<vmem>>, vector<256x128xf32>,
    %c1_93 = arith.constant 1 : index
    %c1_94 = arith.constant 1 : index
    %c0_95 = arith.constant 0 : index
    %c0_96 = arith.constant 0 : index
    %101 = vector.load %arg10[%c1_93, %c1_94, %c0_95, %c0_96] : memref<3x18x16x128xbf16, #tpu.memory_space<vmem>>, vector<1x16x16x128xbf16>
    %102 = vector.shape_cast %101 : vector<1x16x16x128xbf16> to vector<16x16x128xbf16>
    %103 = vector.shape_cast %102 : vector<16x16x128xbf16> to vector<256x128xbf16>
    %c4 = arith.constant 4 : index
    %c0_97 = arith.constant 0 : index
    %c0_98 = arith.constant 0 : index
    %104 = vector.load %arg3[%c4, %c0_97, %c0_98] : memref<9x128x128xbf16, #tpu.memory_space<vmem>>, vector<1x128x128xbf16>
    %105 = vector.shape_cast %104 : vector<1x128x128xbf16> to vector<128x128xbf16>
    %cst_99 = arith.constant dense<0.000000e+00> : vector<256x128xf32>
    %106 = tpu.matmul %103, %105, %cst_99 {dimension_numbers = #tpu.dot_dimension_numbers<[1], [0], [0], [1], [0, 0, 1, 1], [], []>} : vector<256x128xbf16>, vector<128x128xbf16>, vector<256x128xf32> -> vector<256x128xf32>
    %c0_100 = arith.constant 0 : index
    %c0_101 = arith.constant 0 : index
    %107 = vector.load %arg11[%c0_100, %c0_101] : memref<256x128xf32, #tpu.memory_space<vmem>>, vector<256x128xf32>
    %108 = arith.addf %107, %106 : vector<256x128xf32>
    %c0_102 = arith.constant 0 : index
    %c0_103 = arith.constant 0 : index
    %109 = vector.load %arg11[%c0_102, %c0_103] : memref<256x128xf32, #tpu.memory_space<vmem>>, vector<256x128xf32>
    tpu.vector_store %arg11[%c0_102, %c0_103], %108 {strides = array<i32>} : memref<256x128xf32, #tpu.memory_space<vmem>>, vector<256x128xf32>,
    %c2_104 = arith.constant 2 : index
    %c1_105 = arith.constant 1 : index
    %c0_106 = arith.constant 0 : index
    %c0_107 = arith.constant 0 : index
    %110 = vector.load %arg10[%c2_104, %c1_105, %c0_106, %c0_107] : memref<3x18x16x128xbf16, #tpu.memory_space<vmem>>, vector<1x16x16x128xbf16>
    %111 = vector.shape_cast %110 : vector<1x16x16x128xbf16> to vector<16x16x128xbf16>
    %112 = vector.shape_cast %111 : vector<16x16x128xbf16> to vector<256x128xbf16>
    %c5 = arith.constant 5 : index
    %c0_108 = arith.constant 0 : index
    %c0_109 = arith.constant 0 : index
    %113 = vector.load %arg3[%c5, %c0_108, %c0_109] : memref<9x128x128xbf16, #tpu.memory_space<vmem>>, vector<1x128x128xbf16>
    %114 = vector.shape_cast %113 : vector<1x128x128xbf16> to vector<128x128xbf16>
    %cst_110 = arith.constant dense<0.000000e+00> : vector<256x128xf32>
    %115 = tpu.matmul %112, %114, %cst_110 {dimension_numbers = #tpu.dot_dimension_numbers<[1], [0], [0], [1], [0, 0, 1, 1], [], []>} : vector<256x128xbf16>, vector<128x128xbf16>, vector<256x128xf32> -> vector<256x128xf32>
    %c0_111 = arith.constant 0 : index
    %c0_112 = arith.constant 0 : index
    %116 = vector.load %arg11[%c0_111, %c0_112] : memref<256x128xf32, #tpu.memory_space<vmem>>, vector<256x128xf32>
    %117 = arith.addf %116, %115 : vector<256x128xf32>
    %c0_113 = arith.constant 0 : index
    %c0_114 = arith.constant 0 : index
    %118 = vector.load %arg11[%c0_113, %c0_114] : memref<256x128xf32, #tpu.memory_space<vmem>>, vector<256x128xf32>
    tpu.vector_store %arg11[%c0_113, %c0_114], %117 {strides = array<i32>} : memref<256x128xf32, #tpu.memory_space<vmem>>, vector<256x128xf32>,
    %c0_115 = arith.constant 0 : index
    %c2_116 = arith.constant 2 : index
    %c0_117 = arith.constant 0 : index
    %c0_118 = arith.constant 0 : index
    %119 = vector.load %arg10[%c0_115, %c2_116, %c0_117, %c0_118] : memref<3x18x16x128xbf16, #tpu.memory_space<vmem>>, vector<1x16x16x128xbf16>
    %120 = vector.shape_cast %119 : vector<1x16x16x128xbf16> to vector<16x16x128xbf16>
    %121 = vector.shape_cast %120 : vector<16x16x128xbf16> to vector<256x128xbf16>
    %c6 = arith.constant 6 : index
    %c0_119 = arith.constant 0 : index
    %c0_120 = arith.constant 0 : index
    %122 = vector.load %arg3[%c6, %c0_119, %c0_120] : memref<9x128x128xbf16, #tpu.memory_space<vmem>>, vector<1x128x128xbf16>
    %123 = vector.shape_cast %122 : vector<1x128x128xbf16> to vector<128x128xbf16>
    %cst_121 = arith.constant dense<0.000000e+00> : vector<256x128xf32>
    %124 = tpu.matmul %121, %123, %cst_121 {dimension_numbers = #tpu.dot_dimension_numbers<[1], [0], [0], [1], [0, 0, 1, 1], [], []>} : vector<256x128xbf16>, vector<128x128xbf16>, vector<256x128xf32> -> vector<256x128xf32>
    %c0_122 = arith.constant 0 : index
    %c0_123 = arith.constant 0 : index
    %125 = vector.load %arg11[%c0_122, %c0_123] : memref<256x128xf32, #tpu.memory_space<vmem>>, vector<256x128xf32>
    %126 = arith.addf %125, %124 : vector<256x128xf32>
    %c0_124 = arith.constant 0 : index
    %c0_125 = arith.constant 0 : index
    %127 = vector.load %arg11[%c0_124, %c0_125] : memref<256x128xf32, #tpu.memory_space<vmem>>, vector<256x128xf32>
    tpu.vector_store %arg11[%c0_124, %c0_125], %126 {strides = array<i32>} : memref<256x128xf32, #tpu.memory_space<vmem>>, vector<256x128xf32>,
    %c1_126 = arith.constant 1 : index
    %c2_127 = arith.constant 2 : index
    %c0_128 = arith.constant 0 : index
    %c0_129 = arith.constant 0 : index
    %128 = vector.load %arg10[%c1_126, %c2_127, %c0_128, %c0_129] : memref<3x18x16x128xbf16, #tpu.memory_space<vmem>>, vector<1x16x16x128xbf16>
    %129 = vector.shape_cast %128 : vector<1x16x16x128xbf16> to vector<16x16x128xbf16>
    %130 = vector.shape_cast %129 : vector<16x16x128xbf16> to vector<256x128xbf16>
    %c7 = arith.constant 7 : index
    %c0_130 = arith.constant 0 : index
    %c0_131 = arith.constant 0 : index
    %131 = vector.load %arg3[%c7, %c0_130, %c0_131] : memref<9x128x128xbf16, #tpu.memory_space<vmem>>, vector<1x128x128xbf16>
    %132 = vector.shape_cast %131 : vector<1x128x128xbf16> to vector<128x128xbf16>
    %cst_132 = arith.constant dense<0.000000e+00> : vector<256x128xf32>
    %133 = tpu.matmul %130, %132, %cst_132 {dimension_numbers = #tpu.dot_dimension_numbers<[1], [0], [0], [1], [0, 0, 1, 1], [], []>} : vector<256x128xbf16>, vector<128x128xbf16>, vector<256x128xf32> -> vector<256x128xf32>
    %c0_133 = arith.constant 0 : index
    %c0_134 = arith.constant 0 : index
    %134 = vector.load %arg11[%c0_133, %c0_134] : memref<256x128xf32, #tpu.memory_space<vmem>>, vector<256x128xf32>
    %135 = arith.addf %134, %133 : vector<256x128xf32>
    %c0_135 = arith.constant 0 : index
    %c0_136 = arith.constant 0 : index
    %136 = vector.load %arg11[%c0_135, %c0_136] : memref<256x128xf32, #tpu.memory_space<vmem>>, vector<256x128xf32>
    tpu.vector_store %arg11[%c0_135, %c0_136], %135 {strides = array<i32>} : memref<256x128xf32, #tpu.memory_space<vmem>>, vector<256x128xf32>,
    %c2_137 = arith.constant 2 : index
    %c2_138 = arith.constant 2 : index
    %c0_139 = arith.constant 0 : index
    %c0_140 = arith.constant 0 : index
    %137 = vector.load %arg10[%c2_137, %c2_138, %c0_139, %c0_140] : memref<3x18x16x128xbf16, #tpu.memory_space<vmem>>, vector<1x16x16x128xbf16>
    %138 = vector.shape_cast %137 : vector<1x16x16x128xbf16> to vector<16x16x128xbf16>
    %139 = vector.shape_cast %138 : vector<16x16x128xbf16> to vector<256x128xbf16>
    %c8 = arith.constant 8 : index
    %c0_141 = arith.constant 0 : index
    %c0_142 = arith.constant 0 : index
    %140 = vector.load %arg3[%c8, %c0_141, %c0_142] : memref<9x128x128xbf16, #tpu.memory_space<vmem>>, vector<1x128x128xbf16>
    %141 = vector.shape_cast %140 : vector<1x128x128xbf16> to vector<128x128xbf16>
    %cst_143 = arith.constant dense<0.000000e+00> : vector<256x128xf32>
    %142 = tpu.matmul %139, %141, %cst_143 {dimension_numbers = #tpu.dot_dimension_numbers<[1], [0], [0], [1], [0, 0, 1, 1], [], []>} : vector<256x128xbf16>, vector<128x128xbf16>, vector<256x128xf32> -> vector<256x128xf32>
    %c0_144 = arith.constant 0 : index
    %c0_145 = arith.constant 0 : index
    %143 = vector.load %arg11[%c0_144, %c0_145] : memref<256x128xf32, #tpu.memory_space<vmem>>, vector<256x128xf32>
    %144 = arith.addf %143, %142 : vector<256x128xf32>
    %c0_146 = arith.constant 0 : index
    %c0_147 = arith.constant 0 : index
    %145 = vector.load %arg11[%c0_146, %c0_147] : memref<256x128xf32, #tpu.memory_space<vmem>>, vector<256x128xf32>
    tpu.vector_store %arg11[%c0_146, %c0_147], %144 {strides = array<i32>} : memref<256x128xf32, #tpu.memory_space<vmem>>, vector<256x128xf32>,
    %c0_148 = arith.constant 0 : index
    %c0_149 = arith.constant 0 : index
    %146 = vector.load %arg11[%c0_148, %c0_149] : memref<256x128xf32, #tpu.memory_space<vmem>>, vector<256x128xf32>
    %cst_150 = arith.constant 0.000000e+00 : f32
    %147 = vector.broadcast %cst_150 : f32 to vector<256x128xf32>
    %148 = arith.cmpf oge, %146, %147 : vector<256x128xf32>
    %cst_151 = arith.constant 2.000000e-01 : f32
    %149 = vector.broadcast %cst_151 : f32 to vector<256x128xf32>
    %150 = arith.mulf %149, %146 : vector<256x128xf32>
    %151 = arith.select %148, %146, %150 : vector<256x128xi1>, vector<256x128xf32>
    %152 = arith.truncf %151 : vector<256x128xf32> to vector<256x128xbf16>
    %c0_152 = arith.constant 0 : index
    %c0_153 = arith.constant 0 : index
    %153 = vector.load %arg4[%c0_152, %c0_153] : memref<128x256xbf16, #tpu.memory_space<vmem>>, vector<128x256xbf16>
    %cst_154 = arith.constant dense<0.000000e+00> : vector<256x256xf32>
    %154 = tpu.matmul %152, %153, %cst_154 {dimension_numbers = #tpu.dot_dimension_numbers<[1], [0], [0], [1], [0, 0, 1, 1], [], []>} : vector<256x128xbf16>, vector<128x256xbf16>, vector<256x256xf32> -> vector<256x256xf32>
    %cst_155 = arith.constant dense<0.000000e+00> : vector<256xf32>
    %155 = vector.multi_reduction <add>, %154, %cst_155 [0] : vector<256x256xf32> to vector<256xf32>
    %156 = vector.shape_cast %155 : vector<256xf32> to vector<1x256xf32>
    %cst_156 = arith.constant 3.906250e-03 : f32
    %157 = vector.broadcast %cst_156 : f32 to vector<1x256xf32>
    %158 = arith.mulf %156, %157 : vector<1x256xf32>
    %c0_157 = arith.constant 0 : index
    %c0_158 = arith.constant 0 : index
    %159 = vector.load %arg5[%c0_157, %c0_158] : memref<256x16xf32, #tpu.memory_space<vmem>>, vector<256x16xf32>
    %cst_159 = arith.constant dense<0.000000e+00> : vector<1x16xf32>
    %160 = tpu.matmul %158, %159, %cst_159 {dimension_numbers = #tpu.dot_dimension_numbers<[1], [0], [0], [1], [0, 0, 1, 1], [], []>} : vector<1x256xf32>, vector<256x16xf32>, vector<1x16xf32> -> vector<1x16xf32>
    %c0_160 = arith.constant 0 : index
    %c0_161 = arith.constant 0 : index
    %161 = vector.load %arg6[%c0_160, %c0_161] : memref<1x16xf32, #tpu.memory_space<vmem>>, vector<1x16xf32>
    %162 = arith.addf %160, %161 : vector<1x16xf32>
    %cst_162 = arith.constant 0.000000e+00 : f32
    %163 = vector.broadcast %cst_162 : f32 to vector<1x16xf32>
    %164 = arith.maximumf %162, %163 : vector<1x16xf32>
    %c0_163 = arith.constant 0 : index
    %c0_164 = arith.constant 0 : index
    %165 = vector.load %arg7[%c0_163, %c0_164] : memref<16x256xf32, #tpu.memory_space<vmem>>, vector<16x256xf32>
    %cst_165 = arith.constant dense<0.000000e+00> : vector<1x256xf32>
    %166 = tpu.matmul %164, %165, %cst_165 {dimension_numbers = #tpu.dot_dimension_numbers<[1], [0], [0], [1], [0, 0, 1, 1], [], []>} : vector<1x16xf32>, vector<16x256xf32>, vector<1x256xf32> -> vector<1x256xf32>
    %c0_166 = arith.constant 0 : index
    %c0_167 = arith.constant 0 : index
    %167 = vector.load %arg8[%c0_166, %c0_167] : memref<1x256xf32, #tpu.memory_space<vmem>>, vector<1x256xf32>
    %168 = arith.addf %166, %167 : vector<1x256xf32>
    %cst_168 = arith.constant 0.000000e+00 : f32
    %169 = vector.broadcast %cst_168 : f32 to vector<1x256xf32>
    %170 = arith.subf %169, %168 : vector<1x256xf32>
    %171 = math.exp %170 : vector<1x256xf32>
    %cst_169 = arith.constant 1.000000e+00 : f32
    %172 = vector.broadcast %cst_169 : f32 to vector<1x256xf32>
    %173 = arith.addf %172, %171 : vector<1x256xf32>
    %cst_170 = arith.constant 1.000000e+00 : f32
    %174 = vector.broadcast %cst_170 : f32 to vector<1x256xf32>
    %175 = arith.divf %174, %173 : vector<1x256xf32>
    %176 = vector.broadcast %175 : vector<1x256xf32> to vector<256x256xf32>
    %177 = arith.mulf %154, %176 : vector<256x256xf32>
    %178 = arith.addf %1, %177 : vector<256x256xf32>
    %179 = vector.shape_cast %178 : vector<256x256xf32> to vector<1x16x16x256xf32>
    %c0_171 = arith.constant 0 : index
    %c0_172 = arith.constant 0 : index
    %c0_173 = arith.constant 0 : index
    %c0_174 = arith.constant 0 : index
    %180 = vector.load %arg9[%c0_171, %c0_172, %c0_173, %c0_174] : memref<1x16x16x256xf32, #tpu.memory_space<vmem>>, vector<1x16x16x256xf32>
    tpu.vector_store %arg9[%c0_171, %c0_172, %c0_173, %c0_174], %179 {strides = array<i32>} : memref<1x16x16x256xf32, #tpu.memory_space<vmem>>, vector<1x16x16x256xf32>,
    return
  }
  func.func @transform_0(%arg0: i32) -> (i32, i32, i32, i32) {
    %c0_i32 = arith.constant 0 : i32
    %c0_i32_0 = arith.constant 0 : i32
    %c0_i32_1 = arith.constant 0 : i32
    %c0_i32_2 = arith.constant 0 : i32
    return %arg0, %c0_i32, %c0_i32_0, %c0_i32_1 : i32, i32, i32, i32
  }
  func.func @transform_1(%arg0: i32) -> (i32, i32) {
    %c0_i32 = arith.constant 0 : i32
    %c0_i32_0 = arith.constant 0 : i32
    %c0_i32_1 = arith.constant 0 : i32
    return %c0_i32, %c0_i32_0 : i32, i32
  }
  func.func @transform_2(%arg0: i32) -> (i32, i32, i32) {
    %c0_i32 = arith.constant 0 : i32
    %c0_i32_0 = arith.constant 0 : i32
    %c0_i32_1 = arith.constant 0 : i32
    %c0_i32_2 = arith.constant 0 : i32
    return %c0_i32, %c0_i32_0, %c0_i32_1 : i32, i32, i32
  }
  func.func @transform_3(%arg0: i32) -> (i32, i32) {
    %c0_i32 = arith.constant 0 : i32
    %c0_i32_0 = arith.constant 0 : i32
    %c0_i32_1 = arith.constant 0 : i32
    return %c0_i32, %c0_i32_0 : i32, i32
  }
  func.func @transform_4(%arg0: i32) -> (i32, i32) {
    %c0_i32 = arith.constant 0 : i32
    %c0_i32_0 = arith.constant 0 : i32
    %c0_i32_1 = arith.constant 0 : i32
    return %c0_i32, %c0_i32_0 : i32, i32
  }
  func.func @transform_5(%arg0: i32) -> (i32, i32) {
    %c0_i32 = arith.constant 0 : i32
    %c0_i32_0 = arith.constant 0 : i32
    %c0_i32_1 = arith.constant 0 : i32
    return %c0_i32, %c0_i32_0 : i32, i32
  }
  func.func @transform_6(%arg0: i32) -> (i32, i32) {
    %c0_i32 = arith.constant 0 : i32
    %c0_i32_0 = arith.constant 0 : i32
    %c0_i32_1 = arith.constant 0 : i32
    return %c0_i32, %c0_i32_0 : i32, i32
  }
  func.func @transform_7(%arg0: i32) -> (i32, i32) {
    %c0_i32 = arith.constant 0 : i32
    %c0_i32_0 = arith.constant 0 : i32
    %c0_i32_1 = arith.constant 0 : i32
    return %c0_i32, %c0_i32_0 : i32, i32
  }
  func.func @transform_8(%arg0: i32) -> (i32, i32, i32, i32) {
    %c0_i32 = arith.constant 0 : i32
    %c0_i32_0 = arith.constant 0 : i32
    %c0_i32_1 = arith.constant 0 : i32
    %c0_i32_2 = arith.constant 0 : i32
    return %arg0, %c0_i32, %c0_i32_0, %c0_i32_1 : i32, i32, i32, i32
  }
}

</mosaic_0001>

<bundles_post_ra>
// kernel: _lambda_.1
= control target key start
LH: loop header
LB: loop body
LE: loop exit
PB: predicated region body
PF: predicated region fallthrough
CT: control target
= control target key end

     0   :  { %s9112_s0 = inlined_call_operand.hbm [shape: f32[2,16,16,256], index: 0, kind: input, shape index: {}]   ;;  %s9113_s1 = inlined_call_operand.hbm [shape: bf16[256,128], index: 1, kind: input, shape index: {}]   ;;  %s9114_s2 = inlined_call_operand.hbm [shape: bf16[9,128,128], index: 2, kind: input, shape index: {}]   ;;  %s9115_s3 = inlined_call_operand.hbm [shape: bf16[128,256], index: 3, kind: input, shape index: {}]   ;;  %s9116_s4 = inlined_call_operand.hbm [shape: f32[256,16], index: 4, kind: input, shape index: {}]   ;;  %s9117_s5 = inlined_call_operand.vmem [shape: f32[1,16], index: 5, kind: input, shape index: {}]   ;;  %s9118_s6 = inlined_call_operand.hbm [shape: f32[16,256], index: 6, kind: input, shape index: {}]   ;;  %s9119_s7 = inlined_call_operand.vmem [shape: f32[1,256], index: 7, kind: input, shape index: {}]   ;;  %s9120_s8 = inlined_call_operand.hbm [shape: f32[2,16,16,256], index: 8, kind: output, shape index: {}]  }
   0x1   :  { %9142 = sst [smem:[#allocation40_spill]] %s9113_s1 }
   0x2   :  { %9143 = sst [smem:[#allocation41_spill]] %s9114_s2 }
   0x3   :  { %13 = vsyncpa [#allocation5], 0 }
   0x4   :  { %15 = vsyncpa [#allocation5 + $0x1], 0 }
   0x5   :  { %16 = vsyncpa [#allocation8], 0 }
   0x6   :  { %17 = vsyncpa [#allocation11], 0 }
   0x7   :  { %18 = vsyncpa [#allocation14], 0 }
   0x8   :  { %19 = vsyncpa [#allocation6], 0 }
   0x9   :  { %21 = vsyncpa [#allocation6 + $0x1], 0  ;;  %s7738_s27 = smov 0   ;;  %s7740_s28 = smov 0  }
   0xa   :  { %s7742_s29 = smov 0   ;;  %s7744_s30 = smov 0  }
   0xb LB: > { %s9144_s1 = sld [smem:[#allocation40_spill]]  ;;  %s7762_s12 = sadd.s32 4294967295, %s7677_s30   ;;  %s7677_s30 = sphi %s7744_s30, %s9208_s30   ;;  %s7673_s29 = sphi %s7742_s29, %s9207_s29   ;;  %s7669_s28 = sphi %s7740_s28, %s9206_s28   ;;  %s7665_s27 = sphi %s7738_s27, %s9205_s27  }
   0xc   : > { %p5665_p0 = scmp.ge.s32.totalorder %s7677_s30, 1  ;;  %p48_p1 = scmp.eq.s32.totalorder %s7762_s12, 0 }
   0xd   : > { %p231_p2 = scmp.lt.s32.totalorder %s7677_s30, 3  ;;  %s7679_s14 = smov [#allocation7]  }
   0xe   : > { %s244_s15 = sshll.u32 %s7679_s14, 4  ;;  %s270_s18 = sshll.u32 %s9115_s3, 4  ;;  %s245_s15 = int_to_ptr.vmem [resolvable:$true] %s244_s15  ;;  %s271_s18 = int_to_ptr.hbm [resolvable:$true] %s270_s18 }
   0xf   : > { %p7767_p3 = pnand %p5665_p0, %p231_p2  ;;  %s7680_s20 = smov [#allocation10]  }
  0x10   : > { %s272_s21 = sshll.u32 %s7680_s20, 4  ;;  %s7681_s22 = smov 64   ;;  %s273_s21 = int_to_ptr.vmem [resolvable:$true] %s272_s21 }
  0x11   : > { %s242_s11 = sshll.u32 %s9144_s1, 4  ;;  %p7265_p4 = pneg %p7767_p3  ;;  %s243_s11 = int_to_ptr.hbm [resolvable:$true] %s242_s11 }
  0x12   : > { %s7682_s23 = smov 4   ;;  %s7683_s24 = smov 128  }
  0x13   : > { %p7779_p6 = pnand %p7265_p4, %p48_p1  ;;  %s7684_s25 = smov 8  }
  0x14   : > { %s9147_s2 = sld [smem:[#allocation41_spill]]  ;;  %s7685_s14 = smov [#allocation9]  }
  0x15   : > { %7268 = dma.hbm_to_vmem [thread:$0]  (!%p7779_p6), %s243_s11, 2048, %s245_s15, [#allocation8], %s7681_s22, %s7681_s22, %s7682_s23  }
  0x16   : > { %7274 = dma.hbm_to_vmem [thread:$0]  (!%p7779_p6), %s271_s18, 2048, %s273_s21, [#allocation11], %s7683_s24, %s7683_s24, %s7684_s25  }
  0x17   : > { %s258_s16 = sshll.u32 %s7685_s14, 4  ;;  %s284_s11 = sshll.u32 %s9116_s4, 4  ;;  %s259_s16 = int_to_ptr.vmem [resolvable:$true] %s258_s16  ;;  %s285_s11 = int_to_ptr.hbm [resolvable:$true] %s284_s11 }
  0x18   : > { %s7686_s15 = smov [#allocation12]   ;;  %s301_s9 = sshll.u32 %s9118_s6, 4  ;;  %s302_s9 = int_to_ptr.hbm [resolvable:$true] %s301_s9 }
  0x19   : > { %s286_s18 = sshll.u32 %s7686_s15, 4  ;;  %s9122_s14 = smov 16   ;;  %s287_s18 = int_to_ptr.vmem [resolvable:$true] %s286_s18 }
  0x1a   : > { %s256_s10 = sshll.u32 %s9147_s2, 4  ;;  %s7807_s17 = sadd.s32 1, %s7677_s30   ;;  %s257_s10 = int_to_ptr.hbm [resolvable:$true] %s256_s10 }
  0x1b   : > { %7271 = dma.hbm_to_vmem [thread:$0]  (!%p7779_p6), %s257_s10, 9216, %s259_s16, [#allocation8], %s7681_s22, %s7681_s22, %s7682_s23  }
  0x1c   : > { %7277 = dma.hbm_to_vmem [thread:$0]  (!%p7779_p6), %s285_s11, 4096, %s287_s18, [#allocation11], %s7683_s24, %s7683_s24, %s7684_s25  }
  0x1d   : > { %s7687_s22 = smov [#allocation13]   ;;  %s9121_s10 = smov 256  }
  0x1e   : > { %s303_s23 = sshll.u32 %s7687_s22, 4  ;;  %s5664_s16 = sadd.s32 4294967294, %s7677_s30   ;;  %s304_s23 = int_to_ptr.vmem [resolvable:$true] %s303_s23 }
  0x1f   : > { %7280 = dma.hbm_to_vmem [thread:$0]  (!%p7779_p6), %s302_s9, 512, %s304_s23, [#allocation14], %s9121_s10, %s9121_s10, %s9122_s14  }
  0x20   : > { %s34_s20 = sadd.s32 1, %s7673_s29  ;;  %s31_s24 = ssub.s32 %s7677_s30, %s7807_s17 }
  0x21   : > { %p41_p7 = scmp.ne.s32.totalorder %s7673_s29, %s7669_s28  ;;  %p32_p8 = scmp.eq.s32.totalorder %s31_s24, 0 }
  0x22   : > { %p42_p9 = scmp.eq.s32.totalorder %s7677_s30, 0  ;;  %p47_p10 = scmp.ne.s32.totalorder %s7669_s28, %s7665_s27 }
  0x23   : > { %p218_p11 = scmp.eq.s32.totalorder %s7762_s12, 1  ;;  %p224_p0 = scmp.eq.s32.totalorder %s5664_s16, 1 }
  0x24   : > { %s7819_s25 = scalar_select %p32_p8, %s7673_s29, %s34_s20  }
  0x25   : > { %p7823_p12 = por %p48_p1, %p47_p10  ;;  %p7827_p13 = por %p218_p11, %p41_p7 }
  0x26   : > { %p43_p2 = por %p42_p9, %p41_p7  ;;  %s320_s15 = sand.u32 1, %s7673_s29  }
  0x27   : > { %p7832_p4 = por %p224_p0, %p47_p10  ;;  %p7294_p6 = scmp.lt.s32.totalorder %s7677_s30, 2 }
  0x28   : > { %s5672_s21 = sshll.u32 %s320_s15, 9  ;;  %s6682_s26 = sshll.u32 %s7677_s30, 9 }
  0x29   : > { %s329_s23 = scalar_lea.hbm %s9112_s0, %s6682_s26  ;;  %s324_s24 = scalar_lea.vmem [#allocation4], %s5672_s21 }
  0x2a   : > { %s330_s20 = sshll.u32 %s329_s23, 4  ;;  %s332_s10 = sshll.u32 %s324_s24, 4  ;;  %s331_s20 = int_to_ptr.hbm [resolvable:$true] %s330_s20  ;;  %s333_s10 = int_to_ptr.vmem [resolvable:$true] %s332_s10 }
  0x2b   : > { %p7841_p8 = pnand %p7294_p6, %p43_p2  ;;  %s321_s14 = scalar_lea.sflag [#allocation5], %s320_s15 }
  0x2c   : > { %s7569_s1 = sshra.s32 %s331_s20, 4  ;;  %s7576_s21 = scalar_lea.hbm %s9112_s0, 1024  ;;  %s7570_s1 = int_to_ptr.hbm [resolvable:$true] %s7569_s1 }
  0x2d   : > { %s7571_s2 = scalar_lea.hbm %s7570_s1, 512  ;;  %p7573_p9 = pneg %p7841_p8 }
  0x2e   : > { %p7572_p7 = scmp.ne.s32.totalorder %s7570_s1, %s7571_s2  ;;  %p7577_p0 = scmp.lt.s32.totalorder %s7570_s1, %s9112_s0 }
  0x2f   : > { %p7578_p2 = scmp.lt.s32.totalorder %s7576_s21, %s7571_s2 }
  0x30   : > { %p7574_p10 = pnand %p7573_p9, %p7572_p7 }
  0x31   : > { %p7579_p6 = por %p7578_p2, %p7577_p0 }
  0x32   : > { %p7575_p11 = pneg %p7574_p10 }
  0x34   : > { %p7580_p5 = pnand %p7579_p6, %p7575_p11 }
  0x36   : > { %7583 = shalt.err (!%p7580_p5)
}
  0x37   : > { %s9152_s15 = smov 16   ;;  %s9153_s24 = smov 256  }
  0x38   : > { %7284 = dma.hbm_to_vmem [thread:$0]  (!%p7841_p8), %s331_s20, 8192, %s333_s10, %s321_s14, %s9153_s24, %s9153_s24, %s9152_s15  }
  0x39   : > { %344 = sbr.rel (%p7767_p3) target bundleno = 1707 (0x6ab), region = 52 }
  0x3e   : > { %s7861_s26 = sand.u32 1, %s7669_s28  }
  0x3f   : > { %s5676_s1 = sshll.u32 %s7861_s26, 9  ;;  %s347_s2 = scalar_lea.sflag [#allocation5], %s7861_s26 }
  0x40   : > { %s7867_s9 = scalar_lea.vmem [#allocation4], %s5676_s1 }
  0x41   : > { %7644 = dma.done.wait (%p7823_p12), %s347_s2, 8192  }
  0x42   : > { %7646 = vsyncadd (%p7823_p12), %s347_s2, 4294959104 }
  0x43   : > { %7648 = dma.done.wait (%p48_p1), [#allocation8], 11264  }
  0x44   : > { %7650 = vsyncadd (%p48_p1), [#allocation8], 4294956032 }
  0x45   : > { %7652 = dma.done.wait (%p48_p1), [#allocation11], 6144  }
  0x46   : > { %7654 = vsyncadd (%p48_p1), [#allocation11], 4294961152 }
  0x47   : > { %7656 = dma.done.wait (%p48_p1), [#allocation14], 512  }
  0x48   : > { %7658 = vsyncadd (%p48_p1), [#allocation14], 4294966784  ;;  %v6690_v0 = vld [vmem:[#allocation7 + $0x38] sm:$0xff]  ;;  %v6689_v1 = vld [vmem:[#allocation7 + $0x30] sm:$0xff]  ;;  %s8839_s20 = scalar_lea.vmem [#allocation15], %s5676_s1  ;;  %s6931_s16 = sshll.u32 %s7762_s12, 9 }
  0x49   : > { %7217 = vmatpush.bf16.msra.mxu1 %v6690_v0  ;;  %634 = vmatpush.bf16.msra.mxu0 %v6690_v0  ;;  %v6688_v2 = vld [vmem:[#allocation7 + $0x28] sm:$0xff]  ;;  %v6687_v3 = vld [vmem:[#allocation7 + $0x20] sm:$0xff]  ;;  %v6686_v4 = vld [vmem:[#allocation7 + $0x18] sm:$0xff]  ;;  %s5539_s22 = scalar_lea.hbm %s9120_s8, %s6931_s16  ;;  %s5540_s23 = sshll.u32 %s8839_s20, 4  ;;  %s5541_s23 = int_to_ptr.vmem [resolvable:$true] %s5540_s23 }
  0x4a   : > { %7218 = vmatpush.bf16.msra.mxu2 %v6690_v0  ;;  %7219 = vmatpush.bf16.msra.mxu3 %v6690_v0  ;;  %v6685_v5 = vld [vmem:[#allocation7 + $0x10] sm:$0xff]  ;;  %v6684_v6 = vld [vmem:[#allocation7 + $0x8] sm:$0xff]  ;;  %v6683_v7 = vld [vmem:[#allocation7] sm:$0xff]  ;;  %s5542_s15 = sshll.u32 %s5539_s22, 4  ;;  %s5528_s24 = scalar_lea.sflag [#allocation6], %s7861_s26  ;;  %s5543_s15 = int_to_ptr.hbm [resolvable:$true] %s5542_s15 }
  0x4b   : > { %v430_v8 = vld [vmem:[%s7867_s9 + $0xa0] sm:$0xff]  ;;  %v432_v9 = vld [vmem:[%s7867_s9 + $0xb0] sm:$0xff]  ;;  %v6698_v10 = vld [vmem:[#allocation7 + $0x78] sm:$0xff]  ;;  %s7613_s1 = sshra.s32 %s5543_s15, 4  ;;  %s7614_s1 = int_to_ptr.hbm [resolvable:$true] %s7613_s1 }
  0x4c   : > { %v484_v11 = vpack.c.bf16 %v432_v9, %v430_v8  ;;  %v6697_v12 = vld [vmem:[#allocation7 + $0x70] sm:$0xff]  ;;  %v410_v13 = vld [vmem:[%s7867_s9] sm:$0xff]  ;;  %v6696_v16 = vld [vmem:[#allocation7 + $0x68] sm:$0xff]  ;;  %s7615_s2 = scalar_lea.hbm %s7614_s1, 512  ;;  %p7620_p12 = scmp.lt.s32.totalorder %s7614_s1, %s9120_s8 }
  0x4d   : > { %7220 = vmatpush.bf16.msra.mxu1 %v6689_v1  ;;  %635 = vmatpush.bf16.msra.mxu0 %v6689_v1  ;;  %v412_v14 = vld [vmem:[%s7867_s9 + $0x10] sm:$0xff]  ;;  %v6695_v17 = vld [vmem:[#allocation7 + $0x60] sm:$0xff]  ;;  %v6694_v20 = vld [vmem:[#allocation7 + $0x58] sm:$0xff]  ;;  %p7616_p1 = scmp.ne.s32.totalorder %s7614_s1, %s7615_s2 }
  0x4e   : > { %7221 = vmatpush.bf16.msra.mxu2 %v6689_v1  ;;  %7222 = vmatpush.bf16.msra.mxu3 %v6689_v1  ;;  %v474_v15 = vpack.c.bf16 %v412_v14, %v410_v13  ;;  %v434_v18 = vld [vmem:[%s7867_s9 + $0xc0] sm:$0xff]  ;;  %v436_v19 = vld [vmem:[%s7867_s9 + $0xd0] sm:$0xff]  ;;  %v6692_v26 = vld [vmem:[#allocation7 + $0x48] sm:$0xff] }
  0x4f   : > { %v486_v21 = vpack.c.bf16 %v436_v19, %v434_v18  ;;  %v6693_v22 = vld [vmem:[#allocation7 + $0x50] sm:$0xff]  ;;  %v414_v23 = vld [vmem:[%s7867_s9 + $0x20] sm:$0xff]  ;;  %v411_v34 = vld [vmem:[%s7867_s9 + $0x8] sm:$0xff]  ;;  %p7617_p3 = pnand %p7616_p1, %p7827_p13 }
  0x50   : > { %v416_v24 = vld [vmem:[%s7867_s9 + $0x30] sm:$0xff]  ;;  %v6691_v27 = vld [vmem:[#allocation7 + $0x40] sm:$0xff]  ;;  %v413_v35 = vld [vmem:[%s7867_s9 + $0x18] sm:$0xff] }
  0x51   : > { %7223 = vmatpush.bf16.msra.mxu1 %v6688_v2  ;;  %636 = vmatpush.bf16.msra.mxu0 %v6688_v2  ;;  %v476_v25 = vpack.c.bf16 %v416_v24, %v414_v23  ;;  %v438_v28 = vld [vmem:[%s7867_s9 + $0xe0] sm:$0xff]  ;;  %v440_v29 = vld [vmem:[%s7867_s9 + $0xf0] sm:$0xff]  ;;  %v475_v36 = vpack.c.bf16 %v413_v35, %v411_v34  ;;  %v415_v40 = vld [vmem:[%s7867_s9 + $0x28] sm:$0xff]  ;;  %p7618_p5 = pneg %p7617_p3 }
  0x52   : > { %7224 = vmatpush.bf16.msra.mxu2 %v6688_v2  ;;  %7225 = vmatpush.bf16.msra.mxu3 %v6688_v2  ;;  %v488_v30 = vpack.c.bf16 %v440_v29, %v438_v28  ;;  %v418_v31 = vld [vmem:[%s7867_s9 + $0x40] sm:$0xff]  ;;  %v420_v32 = vld [vmem:[%s7867_s9 + $0x50] sm:$0xff]  ;;  %v417_v41 = vld [vmem:[%s7867_s9 + $0x38] sm:$0xff] }
  0x53   : > { %v478_v33 = vpack.c.bf16 %v420_v32, %v418_v31  ;;  %v422_v37 = vld [vmem:[%s7867_s9 + $0x60] sm:$0xff]  ;;  %v424_v38 = vld [vmem:[%s7867_s9 + $0x70] sm:$0xff]  ;;  %v477_v42 = vpack.c.bf16 %v417_v41, %v415_v40  ;;  %v419_v46 = vld [vmem:[%s7867_s9 + $0x48] sm:$0xff]  ;;  %v7690_v41 = vmov 0  }
  0x54   : > { %v480_v39 = vpack.c.bf16 %v424_v38, %v422_v37  ;;  %v426_v43 = vld [vmem:[%s7867_s9 + $0x80] sm:$0xff]  ;;  %v428_v44 = vld [vmem:[%s7867_s9 + $0x90] sm:$0xff]  ;;  %v421_v47 = vld [vmem:[%s7867_s9 + $0x58] sm:$0xff]  ;;  %1016 = vst [vmem:[#allocation2] sm:$0xf] %v7690_v41 }
  0x55   : > { %7226 = vmatpush.bf16.msra.mxu1 %v6687_v3  ;;  %637 = vmatpush.bf16.msra.mxu0 %v6687_v3  ;;  %v482_v45 = vpack.c.bf16 %v428_v44, %v426_v43  ;;  %v479_v48 = vpack.c.bf16 %v421_v47, %v419_v46  ;;  %v442_v49 = vld [vmem:[%s7867_s9 + $0x100] sm:$0xff]  ;;  %v444_v50 = vld [vmem:[%s7867_s9 + $0x110] sm:$0xff]  ;;  %v6722_v54 = vld [vmem:[#allocation9 + $0x38] sm:$0xff]  ;;  %1017 = vst [vmem:[#allocation2 + $0x4] sm:$0xf] %v7690_v41 }
  0x56   : > { %7227 = vmatpush.bf16.msra.mxu2 %v6687_v3  ;;  %7228 = vmatpush.bf16.msra.mxu3 %v6687_v3  ;;  %v458_v51 = vld [vmem:[%s7867_s9 + $0x180] sm:$0xff]  ;;  %v490_v52 = vpack.c.bf16 %v444_v50, %v442_v49  ;;  %v460_v53 = vld [vmem:[%s7867_s9 + $0x190] sm:$0xff]  ;;  %v423_v56 = vld [vmem:[%s7867_s9 + $0x68] sm:$0xff]  ;;  %1084 = vst [vmem:[#allocation2 + $0x88] sm:$0xf] %v7690_v41 }
  0x57   : > { %v498_v55 = vpack.c.bf16 %v460_v53, %v458_v51  ;;  %v425_v57 = vld [vmem:[%s7867_s9 + $0x78] sm:$0xff]  ;;  %v446_v59 = vld [vmem:[%s7867_s9 + $0x120] sm:$0xff]  ;;  %v448_v60 = vld [vmem:[%s7867_s9 + $0x130] sm:$0xff]  ;;  %1085 = vst [vmem:[#allocation2 + $0x8c] sm:$0xf] %v7690_v41 }
  0x58   : > { %v481_v58 = vpack.c.bf16 %v425_v57, %v423_v56  ;;  %v462_v61 = vld [vmem:[%s7867_s9 + $0x1a0] sm:$0xff]  ;;  %v492_v62 = vpack.c.bf16 %v448_v60, %v446_v59  ;;  %v464_v63 = vld [vmem:[%s7867_s9 + $0x1b0] sm:$0xff]  ;;  %v6720_v2 = vld [vmem:[#allocation9 + $0x28] sm:$0xff]  ;;  %1087 = vst [vmem:[#allocation2 + $0x90] sm:$0xf] %v7690_v41 }
  0x59   : > { %7229 = vmatpush.bf16.msra.mxu1 %v6686_v4  ;;  %638 = vmatpush.bf16.msra.mxu0 %v6686_v4  ;;  %v6721_v0 = vld [vmem:[#allocation9 + $0x30] sm:$0xff]  ;;  %v500_v1 = vpack.c.bf16 %v464_v63, %v462_v61  ;;  %v427_v3 = vld [vmem:[%s7867_s9 + $0x88] sm:$0xff]  ;;  %v466_v8 = vld [vmem:[%s7867_s9 + $0x1c0] sm:$0xff]  ;;  %1088 = vst [vmem:[#allocation2 + $0x94] sm:$0xf] %v7690_v41 }
  0x5a   : > { %7230 = vmatpush.bf16.msra.mxu2 %v6686_v4  ;;  %7231 = vmatpush.bf16.msra.mxu3 %v6686_v4  ;;  %v429_v4 = vld [vmem:[%s7867_s9 + $0x98] sm:$0xff]  ;;  %v6745_v14 = vld [vmem:[#allocation9 + $0x70] sm:$0xff]  ;;  %v431_v18 = vld [vmem:[%s7867_s9 + $0xa8] sm:$0xff]  ;;  %1155 = vst [vmem:[#allocation2 + $0x118] sm:$0xf] %v7690_v41 }
  0x5b   : > { %v433_v19 = vld [vmem:[%s7867_s9 + $0xb8] sm:$0xff]  ;;  %v6769_v23 = vld [vmem:[#allocation9 + $0xb0] sm:$0xff]  ;;  %v454_v24 = vld [vmem:[%s7867_s9 + $0x160] sm:$0xff]  ;;  %1156 = vst [vmem:[#allocation2 + $0x11c] sm:$0xf] %v7690_v41 }
  0x5c   : > { %v472_v28 = vld [vmem:[%s7867_s9 + $0x1f0] sm:$0xff]  ;;  %v6768_v32 = vld [vmem:[#allocation9 + $0xa8] sm:$0xff]  ;;  %v6767_v35 = vld [vmem:[#allocation9 + $0xa0] sm:$0xff]  ;;  %1263 = vst [vmem:[#allocation2 + $0x120] sm:$0xf] %v7690_v41 }
  0x5d   : > { %7232 = vmatpush.bf16.msra.mxu1 %v6685_v5  ;;  %639 = vmatpush.bf16.msra.mxu0 %v6685_v5  ;;  %v6717_v29 = vld [vmem:[#allocation9 + $0x10] sm:$0xff]  ;;  %v6740_v37 = vld [vmem:[#allocation9 + $0x48] sm:$0xff]  ;;  %v6766_v38 = vld [vmem:[#allocation9 + $0x98] sm:$0xff]  ;;  %1264 = vst [vmem:[#allocation2 + $0x124] sm:$0xf] %v7690_v41 }
  0x5e   : > { %7233 = vmatpush.bf16.msra.mxu2 %v6685_v5  ;;  %7234 = vmatpush.bf16.msra.mxu3 %v6685_v5  ;;  %v483_v5 = vpack.c.bf16 %v429_v4, %v427_v3  ;;  %v6741_v34 = vld [vmem:[#allocation9 + $0x50] sm:$0xff]  ;;  %v437_v40 = vld [vmem:[%s7867_s9 + $0xd8] sm:$0xff]  ;;  %v6715_v44 = vld [vmem:[#allocation9] sm:$0xff]  ;;  %1331 = vst [vmem:[#allocation2 + $0x1a8] sm:$0xf] %v7690_v41 }
  0x5f   : > { %v6765_v46 = vld [vmem:[#allocation9 + $0x90] sm:$0xff]  ;;  %1332 = vst [vmem:[#allocation2 + $0x1ac] sm:$0xf] %v7690_v41  ;;  %v6763_v51 = vld [vmem:[#allocation9 + $0x80] sm:$0xff]  ;;  %v441_v53 = vld [vmem:[%s7867_s9 + $0xf8] sm:$0xff] }
  0x60   : > { %v6699_v47 = vld [vmem:[#allocation2] sm:$0xff]  ;;  %v6723_v50 = vld [vmem:[#allocation2 + $0x90] sm:$0xff]  ;;  %v6794_v59 = vld [vmem:[#allocation9 + $0xf8] sm:$0xff] }
  0x61   : > { %7235 = vmatpush.bf16.msra.mxu1 %v6684_v6  ;;  %640 = vmatpush.bf16.msra.mxu0 %v6684_v6  ;;  %v445_v63 = vld [vmem:[%s7867_s9 + $0x118] sm:$0xff] }
  0x62   : > { %7236 = vmatpush.bf16.msra.mxu2 %v6684_v6  ;;  %7237 = vmatpush.bf16.msra.mxu3 %v6684_v6  ;;  %v450_v6 = vld [vmem:[%s7867_s9 + $0x140] sm:$0xff] }
  0x65   : > { %7238 = vmatpush.bf16.msra.mxu1 %v6683_v7  ;;  %641 = vmatpush.bf16.msra.mxu0 %v6683_v7 }
  0x66   : > { %7239 = vmatpush.bf16.msra.mxu2 %v6683_v7  ;;  %7240 = vmatpush.bf16.msra.mxu3 %v6683_v7  ;;  %v452_v7 = vld [vmem:[%s7867_s9 + $0x150] sm:$0xff] }
  0x67   : > { %v494_v9 = vpack.c.bf16 %v452_v7, %v450_v6 }
  0x68   : > { %667 = vmatmul.bf16.vlgmr.msra.gmra.mxu1 %v484_v11  ;;  %642 = vmatmul.bf16.vlgmr.msra.gmra.mxu0 %v474_v15  ;;  %v6719_v11 = vld [vmem:[#allocation9 + $0x20] sm:$0xff]  ;;  %v6718_v15 = vld [vmem:[#allocation9 + $0x18] sm:$0xff] }
  0x69   : > { %723 = vmatpush.bf16.msrb.mxu1 %v6698_v10  ;;  %682 = vmatmul.bf16.vlgmr.msra.gmra.mxu2 %v490_v52  ;;  %v468_v10 = vld [vmem:[%s7867_s9 + $0x1d0] sm:$0xff]  ;;  %v439_v52 = vld [vmem:[%s7867_s9 + $0xe8] sm:$0xff] }
  0x6a   : > { %702 = vmatmul.bf16.vlgmr.msra.gmra.mxu3 %v498_v55  ;;  %1525 = vmatpush.bf16.msrb.mxu2 %v6722_v54  ;;  %v502_v13 = vpack.c.bf16 %v468_v10, %v466_v8  ;;  %v6747_v54 = vld [vmem:[#allocation2 + $0x120] sm:$0xff]  ;;  %v489_v56 = vpack.c.bf16 %v441_v53, %v439_v52 }
  0x6d   : > { %724 = vmatpush.bf16.msrb.mxu1 %v6697_v12  ;;  %v6746_v12 = vld [vmem:[#allocation9 + $0x78] sm:$0xff] }
  0x6e   : > { %1526 = vmatpush.bf16.msrb.mxu2 %v6721_v0  ;;  %1839 = vmatpush.bf16.msrb.mxu3 %v6746_v12  ;;  %v908_v0 = vlaneseq }
  0x70   : > { %v7947_v3 = vshrl.u32 %v908_v0, 7 }
  0x71   : > { %725 = vmatpush.bf16.msrb.mxu1 %v6696_v16  ;;  %v6770_v16 = vld [vmem:[#allocation9 + $0xb8] sm:$0xff] }
  0x72   : > { %1527 = vmatpush.bf16.msrb.mxu2 %v6720_v2  ;;  %1840 = vmatpush.bf16.msrb.mxu3 %v6745_v14  ;;  %v910_v6 = vadd.s32 8, %v7947_v3  ;;  %v7951_v10 = vadd.s32 4294967295, %v7947_v3  ;;  %vm943_vm2 = vcmp.lt.s32.totalorder %v7947_v3, 1  ;;  %vm1189_vm3 = vcmp.lt.s32.totalorder %v7947_v3, 7 }
  0x73   : > { %2217 = vmatpush.bf16.msrb.mxu0 %v6770_v16  ;;  %v449_v16 = vld [vmem:[%s7867_s9 + $0x138] sm:$0xff] }
  0x74   : > { %vm978_vm4 = vcmp.ge.s32.totalorder %v7951_v10, 0 }
  0x75   : > { %726 = vmatpush.bf16.msrb.mxu1 %v6695_v17  ;;  %v6744_v17 = vld [vmem:[#allocation9 + $0x68] sm:$0xff] }
  0x76   : > { %1528 = vmatpush.bf16.msrb.mxu2 %v6719_v11  ;;  %1841 = vmatpush.bf16.msrb.mxu3 %v6744_v17  ;;  %v7953_v11 = vadd.s32 1, %v910_v6 }
  0x77   : > { %2218 = vmatpush.bf16.msrb.mxu0 %v6769_v23 }
  0x78   : > { %672 = vmatmul.bf16.gmra.mxu1 %v486_v21  ;;  %647 = vmatmul.bf16.gmra.mxu0 %v476_v25  ;;  %v456_v25 = vld [vmem:[%s7867_s9 + $0x170] sm:$0xff]  ;;  %vm1227_vm5 = vcmp.lt.s32.totalorder %v7953_v11, 16 }
  0x79   : > { %727 = vmatpush.bf16.msrb.mxu1 %v6694_v20  ;;  %687 = vmatmul.bf16.gmra.mxu2 %v492_v62  ;;  %v485_v20 = vpack.c.bf16 %v433_v19, %v431_v18  ;;  %v443_v62 = vld [vmem:[%s7867_s9 + $0x108] sm:$0xff] }
  0x7a   : > { %707 = vmatmul.bf16.gmra.mxu3 %v500_v1  ;;  %1529 = vmatpush.bf16.msrb.mxu2 %v6718_v15  ;;  %v491_v1 = vpack.c.bf16 %v445_v63, %v443_v62  ;;  %v447_v15 = vld [vmem:[%s7867_s9 + $0x128] sm:$0xff] }
  0x7b   : > { %2219 = vmatpush.bf16.msrb.mxu0 %v6768_v32 }
  0x7d   : > { %728 = vmatpush.bf16.msrb.mxu1 %v6693_v22  ;;  %v6743_v22 = vld [vmem:[#allocation9 + $0x60] sm:$0xff] }
  0x7e   : > { %1842 = vmatpush.bf16.msrb.mxu3 %v6743_v22  ;;  %1530 = vmatpush.bf16.msrb.mxu2 %v6717_v29 }
  0x7f   : > { %2220 = vmatpush.bf16.msrb.mxu0 %v6767_v35 }
  0x81   : > { %729 = vmatpush.bf16.msrb.mxu1 %v6692_v26  ;;  %v470_v26 = vld [vmem:[%s7867_s9 + $0x1e0] sm:$0xff] }
  0x82   : > { %v504_v31 = vpack.c.bf16 %v472_v28, %v470_v26 }
  0x83   : > { %2221 = vmatpush.bf16.msrb.mxu0 %v6766_v38 }
  0x85   : > { %730 = vmatpush.bf16.msrb.mxu1 %v6691_v27  ;;  %v496_v27 = vpack.c.bf16 %v456_v25, %v454_v24  ;;  %v493_v24 = vpack.c.bf16 %v449_v16, %v447_v15 }
  0x87   : > { %2222 = vmatpush.bf16.msrb.mxu0 %v6765_v46 }
  0x88   : > { %677 = vmatmul.bf16.gmra.mxu1 %v488_v30  ;;  %652 = vmatmul.bf16.gmra.mxu0 %v478_v33  ;;  %v6742_v30 = vld [vmem:[#allocation9 + $0x58] sm:$0xff] }
  0x89   : > { %692 = vmatmul.bf16.gmra.mxu2 %v494_v9  ;;  %1843 = vmatpush.bf16.msrb.mxu3 %v6742_v30 }
  0x8a   : > { %712 = vmatmul.bf16.gmra.mxu3 %v502_v13  ;;  %2595 = vmatpush.bf16.msra.mxu1 %v6794_v59 }
  0x8d   : > { %1844 = vmatpush.bf16.msrb.mxu3 %v6741_v34 }
  0x91   : > { %1845 = vmatpush.bf16.msrb.mxu3 %v6740_v37 }
  0x98   : > { %731 = vmatmul.bf16.vlgmr.msrb.gmra.mxu1 %v475_v36  ;;  %657 = vmatmul.bf16.gmra.mxu0 %v480_v39  ;;  %v6716_v36 = vld [vmem:[#allocation9 + $0x8] sm:$0xff] }
  0x99   : > { %697 = vmatmul.bf16.gmra.mxu2 %v496_v27  ;;  %v435_v39 = vld [vmem:[%s7867_s9 + $0xc8] sm:$0xff] }
  0x9a   : > { %717 = vmatmul.bf16.gmra.mxu3 %v504_v31  ;;  %1531 = vmatpush.bf16.msrb.mxu2 %v6716_v36  ;;  %v6817_v36 = vld [vmem:[#allocation9 + $0x130] sm:$0xff] }
  0x9e   : > { %1532 = vmatpush.bf16.msrb.mxu2 %v6715_v44 }
  0xa8   : > { %736 = vmatmul.bf16.gmra.mxu1 %v477_v42  ;;  %662 = vmatmul.bf16.gmra.mxu0 %v482_v45  ;;  %v487_v42 = vpack.c.bf16 %v437_v40, %v435_v39  ;;  %v6739_v45 = vld [vmem:[#allocation9 + $0x40] sm:$0xff]  ;;  %v6793_v39 = vld [vmem:[#allocation9 + $0xf0] sm:$0xff] }
  0xa9   : > { %1846 = vmatpush.bf16.msrb.mxu3 %v6739_v45  ;;  %1533 = vmatmul.bf16.vlgmr.msrb.gmra.mxu2 %v6699_v47 }
  0xaa   : > { %2596 = vmatpush.bf16.msra.mxu1 %v6793_v39 }
  0xac   : > { %1847 = vmatmul.bf16.vlgmr.msrb.gmra.mxu3 %v6723_v50  ;;  %v453_v50 = vld [vmem:[%s7867_s9 + $0x158] sm:$0xff] }
  0xb8   : > { %741 = vmatmul.bf16.gmra.mxu1 %v479_v48  ;;  %v6764_v48 = vld [vmem:[#allocation9 + $0x88] sm:$0xff] }
  0xb9   : > { %2223 = vmatpush.bf16.msrb.mxu0 %v6764_v48  ;;  %v451_v48 = vld [vmem:[%s7867_s9 + $0x148] sm:$0xff] }
  0xbd   : > { %2224 = vmatpush.bf16.msrb.mxu0 %v6763_v51 }
  0xc0   : > { %2225 = vmatmul.bf16.vlgmr.msrb.gmra.mxu0 %v6747_v54 }
  0xc8   : > { %746 = vmatmul.bf16.gmra.mxu1 %v481_v58  ;;  %v6818_v58 = vld [vmem:[#allocation9 + $0x138] sm:$0xff] }
  0xc9   : > { %2973 = vmatpush.bf16.msra.mxu2 %v6818_v58  ;;  %v495_v58 = vpack.c.bf16 %v453_v50, %v451_v48  ;;  %v6792_v48 = vld [vmem:[#allocation9 + $0xe8] sm:$0xff] }
  0xca   : > { %2597 = vmatpush.bf16.msra.mxu1 %v6792_v48 }
  0xcd   : > { %2974 = vmatpush.bf16.msra.mxu2 %v6817_v36 }
  0xd8   : > { %751 = vmatmul.bf16.gmra.mxu1 %v483_v5 }
  0xe5   : > { %v7925_v21 = vpop.f32.mrf.mxu1  ;;  %v643_v55 = vpop.f32.mrf.mxu0 }
  0xe8   : > { %756 = vmatmul.bf16.gmra.mxu1 %v485_v20 }
  0xed   : > { %v7931_v33 = vpop.f32.mrf.mxu1  ;;  %v645_v61 = vpop.f32.mrf.mxu0 }
  0xee   : > { %v7989_v15 = vpop.f32.mrf.mxu3 }
  0xf5   : > { %v7935_v43 = vpop.f32.mrf.mxu1  ;;  %v648_v5 = vpop.f32.mrf.mxu0 }
  0xf8   : > { %761 = vmatmul.bf16.gmra.mxu1 %v487_v42 }
  0xfd   : > { %v7937_v49 = vpop.f32.mrf.mxu1  ;;  %v650_v14 = vpop.f32.mrf.mxu0 }
 0x105   : > { %v7941_v57 = vpop.f32.mrf.mxu1  ;;  %v653_v38 = vpop.f32.mrf.mxu0 }
 0x108   : > { %766 = vmatmul.bf16.gmra.mxu1 %v489_v56 }
 0x10d   : > { %v7943_v60 = vpop.f32.mrf.mxu1  ;;  %v655_v0 = vpop.f32.mrf.mxu0 }
 0x115   : > { %v732_v2 = vpop.f32.mrf.mxu1 }
 0x116   : > { %v733_v4 = vadd.f32 %v732_v2, %v643_v55 }
 0x118   : > { %771 = vmatmul.bf16.gmra.mxu1 %v491_v1  ;;  %v844_v7 = vmul.f32 0.2, %v733_v4  ;;  %vm812_vm0 = vcmp.ge.f32.partialorder %v733_v4, 0.0 }
 0x11a   : > { %v876_v12 = vsel %vm812_vm0, %v733_v4, %v844_v7 }
 0x11b   : > { %v911_v17 = vrot.slane %v876_v12, 7  ;;  %v1157_v19 = vrot.slane %v876_v12, 1 }
 0x11d   : > { %v734_v8 = vpop.f32.mrf.mxu1 }
 0x11e   : > { %v735_v9 = vadd.f32 %v734_v8, %v645_v61 }
 0x120   : > { %vm813_vm1 = vcmp.ge.f32.partialorder %v735_v9, 0.0  ;;  %v845_v13 = vmul.f32 0.2, %v735_v9 }
 0x122   : > { %v877_v18 = vsel %vm813_vm1, %v735_v9, %v845_v13 }
 0x123   : > { %v927_v20 = vrot.slane %v877_v18, 7  ;;  %v7015_v22 = vpack.c.bf16 %v877_v18, %v876_v12  ;;  %v1173_v23 = vrot.slane %v877_v18, 1 }
 0x125   : > { %v944_v25 = vsel %vm943_vm2, %v911_v17, %v927_v20  ;;  %v960_v26 = vsel %vm943_vm2, %v927_v20, %v911_v17  ;;  %7016 = vst [vmem:[#allocation2 + $0x98] sm:$0xff] %v7015_v22   ;;  %v1190_v27 = vsel %vm1189_vm3, %v1157_v19, %v1173_v23  ;;  %v1206_v28 = vsel %vm1189_vm3, %v1173_v23, %v1157_v19  ;;  %v737_v29 = vpop.f32.mrf.mxu1  ;;  %v658_v17 = vpop.f32.mrf.mxu0  ;;  %v455_v22 = vld [vmem:[%s7867_s9 + $0x168] sm:$0xff]  ;;  %v457_v23 = vld [vmem:[%s7867_s9 + $0x178] sm:$0xff] }
 0x126   : > { %v984_v30 = vsel %vm978_vm4, %v960_v26, 0.0  ;;  %v1231_v31 = vsel %vm1227_vm5, %v1206_v28, 0.0  ;;  %v738_v35 = vadd.f32 %v737_v29, %v648_v5 }
 0x127   : > { %v6935_v32 = vpack.c.bf16 %v944_v25, %v984_v30  ;;  %v7095_v34 = vpack.c.bf16 %v1231_v31, %v1190_v27  ;;  %v497_v30 = vpack.c.bf16 %v457_v23, %v455_v22 }
 0x128   : > { %776 = vmatmul.bf16.gmra.mxu1 %v493_v24  ;;  %v846_v37 = vmul.f32 0.2, %v738_v35  ;;  %vm814_vm6 = vcmp.ge.f32.partialorder %v738_v35, 0.0 }
 0x129   : > { %6936 = vst [vmem:[#allocation2 + $0x8] sm:$0xff] %v6935_v32  }
 0x12a   : > { %7096 = vst [vmem:[#allocation2 + $0x128] sm:$0xff] %v7095_v34   ;;  %v878_v44 = vsel %vm814_vm6, %v738_v35, %v846_v37 }
 0x12b   : > { %v912_v51 = vrot.slane %v878_v44, 7  ;;  %v1158_v53 = vrot.slane %v878_v44, 1 }
 0x12c   : > { %v6724_v40 = vld [vmem:[#allocation2 + $0x98] sm:$0xff] }
 0x12d   : > { %v739_v41 = vpop.f32.mrf.mxu1  ;;  %1852 = vmatmul.bf16.gmra.mxu3 %v6724_v40  ;;  %v8007_v40 = vpop.f32.mrf.mxu3 }
 0x12e   : > { %v740_v42 = vadd.f32 %v739_v41, %v650_v14  ;;  %v7987_v14 = vpop.f32.mrf.mxu2 }
 0x130   : > { %vm815_vm7 = vcmp.ge.f32.partialorder %v740_v42, 0.0  ;;  %v847_v45 = vmul.f32 0.2, %v740_v42  ;;  %v6700_v46 = vld [vmem:[#allocation2 + $0x8] sm:$0xff] }
 0x131   : > { %v6748_v47 = vld [vmem:[#allocation2 + $0x128] sm:$0xff]  ;;  %1538 = vmatmul.bf16.gmra.mxu2 %v6700_v46  ;;  %v6816_v46 = vld [vmem:[#allocation9 + $0x128] sm:$0xff] }
 0x132   : > { %v879_v52 = vsel %vm815_vm7, %v740_v42, %v847_v45  ;;  %2230 = vmatmul.bf16.gmra.mxu0 %v6748_v47  ;;  %v660_v45 = vpop.f32.mrf.mxu0  ;;  %2975 = vmatpush.bf16.msra.mxu2 %v6816_v46 }
 0x133   : > { %v928_v54 = vrot.slane %v879_v52, 7  ;;  %v7020_v55 = vpack.c.bf16 %v879_v52, %v878_v44  ;;  %v1174_v56 = vrot.slane %v879_v52, 1 }
 0x135   : > { %v945_v59 = vsel %vm943_vm2, %v912_v51, %v928_v54  ;;  %v961_v61 = vsel %vm943_vm2, %v928_v54, %v912_v51  ;;  %7187 = vst [vmem:[#allocation2 + $0xa0] sm:$0xff] %v7020_v55   ;;  %v1191_v62 = vsel %vm1189_vm3, %v1158_v53, %v1174_v56  ;;  %v1207_v63 = vsel %vm1189_vm3, %v1174_v56, %v1158_v53  ;;  %v742_v1 = vpop.f32.mrf.mxu1  ;;  %v8011_v54 = vpop.f32.mrf.mxu3 }
 0x136   : > { %v986_v2 = vsel %vm978_vm4, %v961_v61, 0.0  ;;  %v1233_v4 = vsel %vm1227_vm5, %v1207_v63, 0.0  ;;  %v743_v7 = vadd.f32 %v742_v1, %v653_v38  ;;  %v8005_v39 = vpop.f32.mrf.mxu2  ;;  %v459_v61 = vld [vmem:[%s7867_s9 + $0x188] sm:$0xff] }
 0x137   : > { %v6940_v5 = vpack.c.bf16 %v945_v59, %v986_v2  ;;  %v7100_v6 = vpack.c.bf16 %v1233_v4, %v1191_v62  ;;  %v461_v62 = vld [vmem:[%s7867_s9 + $0x198] sm:$0xff] }
 0x138   : > { %781 = vmatmul.bf16.gmra.mxu1 %v495_v58  ;;  %v848_v8 = vmul.f32 0.2, %v743_v7  ;;  %vm816_vm8 = vcmp.ge.f32.partialorder %v743_v7, 0.0 }
 0x139   : > { %7172 = vst [vmem:[#allocation2 + $0x10] sm:$0xff] %v6940_v5  }
 0x13a   : > { %7202 = vst [vmem:[#allocation2 + $0x130] sm:$0xff] %v7100_v6   ;;  %v880_v16 = vsel %vm816_vm8, %v743_v7, %v848_v8  ;;  %v663_v2 = vpop.f32.mrf.mxu0  ;;  %v499_v7 = vpack.c.bf16 %v461_v62, %v459_v61 }
 0x13b   : > { %v913_v24 = vrot.slane %v880_v16, 7  ;;  %v1159_v26 = vrot.slane %v880_v16, 1 }
 0x13c   : > { %v6725_v9 = vld [vmem:[#allocation2 + $0xa0] sm:$0xff] }
 0x13d   : > { %v744_v12 = vpop.f32.mrf.mxu1  ;;  %1857 = vmatmul.bf16.gmra.mxu3 %v6725_v9 }
 0x13e   : > { %v745_v13 = vadd.f32 %v744_v12, %v655_v0  ;;  %v8009_v53 = vpop.f32.mrf.mxu2 }
 0x140   : > { %vm817_vm9 = vcmp.ge.f32.partialorder %v745_v13, 0.0  ;;  %v849_v18 = vmul.f32 0.2, %v745_v13  ;;  %v6701_v19 = vld [vmem:[#allocation2 + $0x10] sm:$0xff] }
 0x141   : > { %v6749_v20 = vld [vmem:[#allocation2 + $0x130] sm:$0xff]  ;;  %1543 = vmatmul.bf16.gmra.mxu2 %v6701_v19 }
 0x142   : > { %v881_v25 = vsel %vm817_vm9, %v745_v13, %v849_v18  ;;  %2235 = vmatmul.bf16.gmra.mxu0 %v6749_v20  ;;  %v8029_v20 = vpop.f32.mrf.mxu3 }
 0x143   : > { %v929_v27 = vrot.slane %v881_v25, 7  ;;  %v7025_v28 = vpack.c.bf16 %v881_v25, %v880_v16  ;;  %v1175_v29 = vrot.slane %v881_v25, 1 }
 0x145   : > { %v946_v31 = vsel %vm943_vm2, %v913_v24, %v929_v27  ;;  %v962_v32 = vsel %vm943_vm2, %v929_v27, %v913_v24  ;;  %7188 = vst [vmem:[#allocation2 + $0xa8] sm:$0xff] %v7025_v28   ;;  %v1192_v34 = vsel %vm1189_vm3, %v1159_v26, %v1175_v29  ;;  %v1208_v35 = vsel %vm1189_vm3, %v1175_v29, %v1159_v26  ;;  %v747_v36 = vpop.f32.mrf.mxu1  ;;  %v665_v27 = vpop.f32.mrf.mxu0 }
 0x146   : > { %v988_v37 = vsel %vm978_vm4, %v962_v32, 0.0  ;;  %v1235_v38 = vsel %vm1227_vm5, %v1208_v35, 0.0  ;;  %v748_v44 = vadd.f32 %v747_v36, %v658_v17  ;;  %v8027_v19 = vpop.f32.mrf.mxu2 }
 0x147   : > { %v6945_v41 = vpack.c.bf16 %v946_v31, %v988_v37  ;;  %v7105_v42 = vpack.c.bf16 %v1235_v38, %v1192_v34  ;;  %v463_v37 = vld [vmem:[%s7867_s9 + $0x1a8] sm:$0xff]  ;;  %v465_v38 = vld [vmem:[%s7867_s9 + $0x1b8] sm:$0xff] }
 0x148   : > { %786 = vmatmul.bf16.gmra.mxu1 %v497_v30  ;;  %v850_v47 = vmul.f32 0.2, %v748_v44  ;;  %vm818_vm10 = vcmp.ge.f32.partialorder %v748_v44, 0.0  ;;  %v501_v48 = vpack.c.bf16 %v465_v38, %v463_v37 }
 0x149   : > { %7173 = vst [vmem:[#allocation2 + $0x18] sm:$0xff] %v6945_v41  }
 0x14a   : > { %7203 = vst [vmem:[#allocation2 + $0x138] sm:$0xff] %v7105_v42   ;;  %v882_v55 = vsel %vm818_vm10, %v748_v44, %v850_v47  ;;  %v8033_v31 = vpop.f32.mrf.mxu3 }
 0x14b   : > { %v914_v63 = vrot.slane %v882_v55, 7  ;;  %v1160_v1 = vrot.slane %v882_v55, 1 }
 0x14c   : > { %v6726_v50 = vld [vmem:[#allocation2 + $0xa8] sm:$0xff] }
 0x14d   : > { %v749_v51 = vpop.f32.mrf.mxu1  ;;  %1862 = vmatmul.bf16.gmra.mxu3 %v6726_v50  ;;  %v6791_v50 = vld [vmem:[#allocation9 + $0xe0] sm:$0xff] }
 0x14e   : > { %v750_v52 = vadd.f32 %v749_v51, %v660_v45  ;;  %v8031_v30 = vpop.f32.mrf.mxu2  ;;  %2598 = vmatpush.bf16.msra.mxu1 %v6791_v50 }
 0x150   : > { %vm819_vm11 = vcmp.ge.f32.partialorder %v750_v52, 0.0  ;;  %v851_v56 = vmul.f32 0.2, %v750_v52  ;;  %v6702_v58 = vld [vmem:[#allocation2 + $0x18] sm:$0xff] }
 0x151   : > { %v6750_v59 = vld [vmem:[#allocation2 + $0x138] sm:$0xff]  ;;  %1548 = vmatmul.bf16.gmra.mxu2 %v6702_v58 }
 0x152   : > { %v883_v0 = vsel %vm819_vm11, %v750_v52, %v851_v56  ;;  %2240 = vmatmul.bf16.gmra.mxu0 %v6750_v59 }
 0x153   : > { %v930_v4 = vrot.slane %v883_v0, 7  ;;  %v7030_v5 = vpack.c.bf16 %v883_v0, %v882_v55  ;;  %v1176_v6 = vrot.slane %v883_v0, 1 }
 0x155   : > { %v947_v8 = vsel %vm943_vm2, %v914_v63, %v930_v4  ;;  %v963_v9 = vsel %vm943_vm2, %v930_v4, %v914_v63  ;;  %7189 = vst [vmem:[#allocation2 + $0xb0] sm:$0xff] %v7030_v5   ;;  %v1193_v12 = vsel %vm1189_vm3, %v1160_v1, %v1176_v6  ;;  %v1209_v13 = vsel %vm1189_vm3, %v1176_v6, %v1160_v1  ;;  %v752_v16 = vpop.f32.mrf.mxu1  ;;  %v6790_v4 = vld [vmem:[#allocation9 + $0xd8] sm:$0xff]  ;;  %v6815_v5 = vld [vmem:[#allocation9 + $0x120] sm:$0xff] }
 0x156   : > { %v990_v17 = vsel %vm978_vm4, %v963_v9, 0.0  ;;  %v1237_v18 = vsel %vm1227_vm5, %v1209_v13, 0.0  ;;  %v753_v24 = vadd.f32 %v752_v16, %v663_v2  ;;  %v8050_v1 = vpop.f32.mrf.mxu2  ;;  %v8052_v2 = vpop.f32.mrf.mxu3  ;;  %2599 = vmatpush.bf16.msra.mxu1 %v6790_v4  ;;  %2976 = vmatpush.bf16.msra.mxu2 %v6815_v5 }
 0x157   : > { %v6950_v22 = vpack.c.bf16 %v947_v8, %v990_v17  ;;  %v7110_v23 = vpack.c.bf16 %v1237_v18, %v1193_v12  ;;  %v6789_v8 = vld [vmem:[#allocation9 + $0xd0] sm:$0xff]  ;;  %v6788_v17 = vld [vmem:[#allocation9 + $0xc8] sm:$0xff] }
 0x158   : > { %791 = vmatmul.bf16.gmra.mxu1 %v499_v7  ;;  %v852_v25 = vmul.f32 0.2, %v753_v24  ;;  %vm820_vm12 = vcmp.ge.f32.partialorder %v753_v24, 0.0 }
 0x159   : > { %7174 = vst [vmem:[#allocation2 + $0x20] sm:$0xff] %v6950_v22   ;;  %v467_v22 = vld [vmem:[%s7867_s9 + $0x1c8] sm:$0xff] }
 0x15a   : > { %7204 = vst [vmem:[#allocation2 + $0x140] sm:$0xff] %v7110_v23   ;;  %v884_v32 = vsel %vm820_vm12, %v753_v24, %v852_v25  ;;  %2600 = vmatpush.bf16.msra.mxu1 %v6789_v8  ;;  %v469_v23 = vld [vmem:[%s7867_s9 + $0x1d8] sm:$0xff] }
 0x15b   : > { %v915_v41 = vrot.slane %v884_v32, 7  ;;  %v1161_v44 = vrot.slane %v884_v32, 1 }
 0x15c   : > { %v6727_v26 = vld [vmem:[#allocation2 + $0xb0] sm:$0xff] }
 0x15d   : > { %v754_v28 = vpop.f32.mrf.mxu1  ;;  %1867 = vmatmul.bf16.gmra.mxu3 %v6727_v26 }
 0x15e   : > { %v755_v29 = vadd.f32 %v754_v28, %v665_v27  ;;  %v8057_v26 = vpop.f32.mrf.mxu2  ;;  %v8059_v27 = vpop.f32.mrf.mxu3  ;;  %2601 = vmatpush.bf16.msra.mxu1 %v6788_v17 }
 0x160   : > { %vm821_vm13 = vcmp.ge.f32.partialorder %v755_v29, 0.0  ;;  %v853_v34 = vmul.f32 0.2, %v755_v29  ;;  %v6703_v35 = vld [vmem:[#allocation2 + $0x20] sm:$0xff] }
 0x161   : > { %v6751_v36 = vld [vmem:[#allocation2 + $0x140] sm:$0xff]  ;;  %1553 = vmatmul.bf16.gmra.mxu2 %v6703_v35  ;;  %v6787_v35 = vld [vmem:[#allocation9 + $0xc0] sm:$0xff] }
 0x162   : > { %v885_v42 = vsel %vm821_vm13, %v755_v29, %v853_v34  ;;  %2245 = vmatmul.bf16.gmra.mxu0 %v6751_v36  ;;  %v503_v34 = vpack.c.bf16 %v469_v23, %v467_v22  ;;  %2602 = vmatpush.bf16.msra.mxu1 %v6787_v35  ;;  %v6814_v35 = vld [vmem:[#allocation9 + $0x118] sm:$0xff] }
 0x163   : > { %v931_v45 = vrot.slane %v885_v42, 7  ;;  %v7035_v46 = vpack.c.bf16 %v885_v42, %v884_v32  ;;  %v1177_v47 = vrot.slane %v885_v42, 1  ;;  %2977 = vmatpush.bf16.msra.mxu2 %v6814_v35 }
 0x165   : > { %v948_v51 = vsel %vm943_vm2, %v915_v41, %v931_v45  ;;  %v964_v52 = vsel %vm943_vm2, %v931_v45, %v915_v41  ;;  %7190 = vst [vmem:[#allocation2 + $0xb8] sm:$0xff] %v7035_v46   ;;  %v1194_v55 = vsel %vm1189_vm3, %v1161_v44, %v1177_v47  ;;  %v1210_v56 = vsel %vm1189_vm3, %v1177_v47, %v1161_v44  ;;  %v757_v58 = vpop.f32.mrf.mxu1 }
 0x166   : > { %v992_v59 = vsel %vm978_vm4, %v964_v52, 0.0  ;;  %v1239_v61 = vsel %vm1227_vm5, %v1210_v56, 0.0  ;;  %v758_v0 = vadd.f32 %v757_v58, %v7925_v21  ;;  %v8074_v52 = vpop.f32.mrf.mxu2 }
 0x167   : > { %v6955_v62 = vpack.c.bf16 %v948_v51, %v992_v59  ;;  %v7115_v63 = vpack.c.bf16 %v1239_v61, %v1194_v55  ;;  %v8076_v55 = vpop.f32.mrf.mxu3 }
 0x168   : > { %796 = vmatmul.bf16.gmra.mxu1 %v501_v48  ;;  %v854_v6 = vmul.f32 0.2, %v758_v0  ;;  %vm822_vm14 = vcmp.ge.f32.partialorder %v758_v0, 0.0 }
 0x169   : > { %7175 = vst [vmem:[#allocation2 + $0x28] sm:$0xff] %v6955_v62  }
 0x16a   : > { %7205 = vst [vmem:[#allocation2 + $0x148] sm:$0xff] %v7115_v63   ;;  %v886_v12 = vsel %vm822_vm14, %v758_v0, %v854_v6  ;;  %v471_v63 = vld [vmem:[%s7867_s9 + $0x1e8] sm:$0xff]  ;;  %v473_v0 = vld [vmem:[%s7867_s9 + $0x1f8] sm:$0xff] }
 0x16b   : > { %v916_v24 = vrot.slane %v886_v12, 7  ;;  %v1162_v28 = vrot.slane %v886_v12, 1 }
 0x16c   : > { %v6728_v7 = vld [vmem:[#allocation2 + $0xb8] sm:$0xff] }
 0x16d   : > { %v759_v9 = vpop.f32.mrf.mxu1  ;;  %1872 = vmatmul.bf16.gmra.mxu3 %v6728_v7 }
 0x16e   : > { %v760_v21 = vadd.f32 %v759_v9, %v7931_v33  ;;  %v1534_v23 = vpop.f32.mrf.mxu2 }
 0x170   : > { %vm823_vm15 = vcmp.ge.f32.partialorder %v760_v21, 0.0  ;;  %v855_v13 = vmul.f32 0.2, %v760_v21  ;;  %v6704_v16 = vld [vmem:[#allocation2 + $0x28] sm:$0xff] }
 0x171   : > { %v6752_v18 = vld [vmem:[#allocation2 + $0x148] sm:$0xff]  ;;  %1558 = vmatmul.bf16.gmra.mxu2 %v6704_v16 }
 0x172   : > { %v887_v25 = vsel %vm823_vm15, %v760_v21, %v855_v13  ;;  %2250 = vmatmul.bf16.gmra.mxu0 %v6752_v18  ;;  %v505_v21 = vpack.c.bf16 %v473_v0, %v471_v63  ;;  %v6771_v0 = vld [vmem:[#allocation2 + $0x8] sm:$0xff] }
 0x173   : > { %v932_v33 = vrot.slane %v887_v25, 7  ;;  %v7040_v29 = vpack.c.bf16 %v887_v25, %v886_v12  ;;  %v1178_v32 = vrot.slane %v887_v25, 1 }
 0x175   : > { %v949_v36 = vsel %vm943_vm2, %v916_v24, %v932_v33  ;;  %v965_v37 = vsel %vm943_vm2, %v932_v33, %v916_v24  ;;  %7191 = vst [vmem:[#allocation2 + $0xc0] sm:$0xff] %v7040_v29   ;;  %v1195_v38 = vsel %vm1189_vm3, %v1162_v28, %v1178_v32  ;;  %v1211_v41 = vsel %vm1189_vm3, %v1178_v32, %v1162_v28  ;;  %v762_v42 = vpop.f32.mrf.mxu1  ;;  %v1848_v24 = vpop.f32.mrf.mxu3 }
 0x176   : > { %v994_v44 = vsel %vm978_vm4, %v965_v37, 0.0  ;;  %v1241_v45 = vsel %vm1227_vm5, %v1211_v41, 0.0  ;;  %v763_v48 = vadd.f32 %v762_v42, %v7935_v43  ;;  %v1960_v29 = vadd.f32 %v1848_v24, %v1534_v23  ;;  %v2226_v32 = vpop.f32.mrf.mxu0 }
 0x177   : > { %v6960_v46 = vpack.c.bf16 %v949_v36, %v994_v44  ;;  %v7120_v47 = vpack.c.bf16 %v1241_v45, %v1195_v38 }
 0x178   : > { %801 = vmatmul.bf16.gmra.mxu1 %v503_v34  ;;  %v856_v50 = vmul.f32 0.2, %v763_v48  ;;  %vm824_vm0 = vcmp.ge.f32.partialorder %v763_v48, 0.0  ;;  %v8094_v34 = vadd.f32 %v2226_v32, %v1960_v29 }
 0x179   : > { %7176 = vst [vmem:[#allocation2 + $0x30] sm:$0xff] %v6960_v46  }
 0x17a   : > { %7206 = vst [vmem:[#allocation2 + $0x150] sm:$0xff] %v7120_v47   ;;  %v888_v59 = vsel %vm824_vm0, %v763_v48, %v856_v50 }
 0x17b   : > { %v917_v4 = vrot.slane %v888_v59, 7  ;;  %v1163_v6 = vrot.slane %v888_v59, 1 }
 0x17c   : > { %v6729_v51 = vld [vmem:[#allocation2 + $0xc0] sm:$0xff] }
 0x17d   : > { %v764_v56 = vpop.f32.mrf.mxu1  ;;  %1877 = vmatmul.bf16.gmra.mxu3 %v6729_v51 }
 0x17e   : > { %v765_v58 = vadd.f32 %v764_v56, %v7937_v49 }
 0x180   : > { %vm825_vm1 = vcmp.ge.f32.partialorder %v765_v58, 0.0  ;;  %v857_v61 = vmul.f32 0.2, %v765_v58  ;;  %v6705_v43 = vld [vmem:[#allocation2 + $0x30] sm:$0xff] }
 0x181   : > { %v6753_v62 = vld [vmem:[#allocation2 + $0x150] sm:$0xff]  ;;  %1563 = vmatmul.bf16.gmra.mxu2 %v6705_v43 }
 0x182   : > { %v889_v5 = vsel %vm825_vm1, %v765_v58, %v857_v61  ;;  %2255 = vmatmul.bf16.gmra.mxu0 %v6753_v62 }
 0x183   : > { %v933_v7 = vrot.slane %v889_v5, 7  ;;  %v7045_v8 = vpack.c.bf16 %v889_v5, %v888_v59  ;;  %v1179_v9 = vrot.slane %v889_v5, 1 }
 0x185   : > { %v950_v49 = vsel %vm943_vm2, %v917_v4, %v933_v7  ;;  %v966_v12 = vsel %vm943_vm2, %v933_v7, %v917_v4  ;;  %7192 = vst [vmem:[#allocation2 + $0xc8] sm:$0xff] %v7045_v8   ;;  %v1196_v13 = vsel %vm1189_vm3, %v1163_v6, %v1179_v9  ;;  %v1212_v16 = vsel %vm1189_vm3, %v1179_v9, %v1163_v6  ;;  %v767_v17 = vpop.f32.mrf.mxu1  ;;  %v6842_v8 = vld [vmem:[#allocation9 + $0x178] sm:$0xff] }
 0x186   : > { %v996_v18 = vsel %vm978_vm4, %v966_v12, 0.0  ;;  %v1243_v22 = vsel %vm1227_vm5, %v1212_v16, 0.0  ;;  %v768_v33 = vadd.f32 %v767_v17, %v7941_v57  ;;  %v6866_v9 = vld [vmem:[#allocation9 + $0x1b8] sm:$0xff]  ;;  %3351 = vmatpush.bf16.msra.mxu3 %v6842_v8 }
 0x187   : > { %v6965_v25 = vpack.c.bf16 %v950_v49, %v996_v18  ;;  %v7125_v28 = vpack.c.bf16 %v1243_v22, %v1196_v13  ;;  %3730 = vmatpush.bf16.msra.mxu0 %v6866_v9 }
 0x188   : > { %806 = vmatmul.bf16.gmra.mxu1 %v505_v21  ;;  %v858_v36 = vmul.f32 0.2, %v768_v33  ;;  %vm826_vm6 = vcmp.ge.f32.partialorder %v768_v33, 0.0 }
 0x189   : > { %7177 = vst [vmem:[#allocation2 + $0x38] sm:$0xff] %v6965_v25  }
 0x18a   : > { %7207 = vst [vmem:[#allocation2 + $0x158] sm:$0xff] %v7125_v28   ;;  %v890_v42 = vsel %vm826_vm6, %v768_v33, %v858_v36 }
 0x18b   : > { %v918_v46 = vrot.slane %v890_v42, 7  ;;  %v1164_v48 = vrot.slane %v890_v42, 1 }
 0x18c   : > { %v6730_v37 = vld [vmem:[#allocation2 + $0xc8] sm:$0xff] }
 0x18d   : > { %v769_v38 = vpop.f32.mrf.mxu1  ;;  %1882 = vmatmul.bf16.gmra.mxu3 %v6730_v37 }
 0x18e   : > { %v770_v41 = vadd.f32 %v769_v38, %v7943_v60  ;;  %v8123_v38 = vpop.f32.mrf.mxu0 }
 0x190   : > { %vm827_vm7 = vcmp.ge.f32.partialorder %v770_v41, 0.0  ;;  %v859_v44 = vmul.f32 0.2, %v770_v41  ;;  %v6706_v57 = vld [vmem:[#allocation2 + $0x38] sm:$0xff] }
 0x191   : > { %v6754_v45 = vld [vmem:[#allocation2 + $0x158] sm:$0xff]  ;;  %1568 = vmatmul.bf16.gmra.mxu2 %v6706_v57 }
 0x192   : > { %v891_v47 = vsel %vm827_vm7, %v770_v41, %v859_v44  ;;  %2260 = vmatmul.bf16.gmra.mxu0 %v6754_v45  ;;  %v6772_v41 = vld [vmem:[#allocation2 + $0x10] sm:$0xff]  ;;  %v8126_v45 = vpop.f32.mrf.mxu3 }
 0x193   : > { %v934_v50 = vrot.slane %v891_v47, 7  ;;  %v7050_v51 = vpack.c.bf16 %v891_v47, %v890_v42  ;;  %v1180_v56 = vrot.slane %v891_v47, 1 }
 0x195   : > { %v951_v58 = vsel %vm943_vm2, %v918_v46, %v934_v50  ;;  %v967_v60 = vsel %vm943_vm2, %v934_v50, %v918_v46  ;;  %7193 = vst [vmem:[#allocation2 + $0xd0] sm:$0xff] %v7050_v51   ;;  %v1197_v59 = vsel %vm1189_vm3, %v1164_v48, %v1180_v56  ;;  %v1213_v61 = vsel %vm1189_vm3, %v1180_v56, %v1164_v48  ;;  %v772_v43 = vpop.f32.mrf.mxu1  ;;  %v6813_v46 = vld [vmem:[#allocation9 + $0x110] sm:$0xff]  ;;  %v8128_v50 = vpop.f32.mrf.mxu2 }
 0x196   : > { %v998_v62 = vsel %vm978_vm4, %v967_v60, 0.0  ;;  %v1245_v63 = vsel %vm1227_vm5, %v1213_v61, 0.0  ;;  %v773_v6 = vadd.f32 %v772_v43, %v7987_v14  ;;  %2978 = vmatpush.bf16.msra.mxu2 %v6813_v46 }
 0x197   : > { %v6970_v4 = vpack.c.bf16 %v951_v58, %v998_v62  ;;  %v7130_v5 = vpack.c.bf16 %v1245_v63, %v1197_v59 }
 0x198   : > { %2603 = vmatmul.bf16.vlgmr.msra.gmra.mxu1 %v6771_v0  ;;  %v860_v7 = vmul.f32 0.2, %v773_v6  ;;  %vm828_vm8 = vcmp.ge.f32.partialorder %v773_v6, 0.0 }
 0x199   : > { %7178 = vst [vmem:[#allocation2 + $0x40] sm:$0xff] %v6970_v4  }
 0x19a   : > { %7208 = vst [vmem:[#allocation2 + $0x160] sm:$0xff] %v7130_v5   ;;  %v892_v13 = vsel %vm828_vm8, %v773_v6, %v860_v7 }
 0x19b   : > { %v919_v14 = vrot.slane %v892_v13, 7  ;;  %v1165_v23 = vrot.slane %v892_v13, 1 }
 0x19c   : > { %v6731_v21 = vld [vmem:[#allocation2 + $0xd0] sm:$0xff] }
 0x19d   : > { %v774_v49 = vpop.f32.mrf.mxu1  ;;  %1887 = vmatmul.bf16.gmra.mxu3 %v6731_v21 }
 0x19e   : > { %v775_v12 = vadd.f32 %v774_v49, %v8005_v39 }
 0x1a0   : > { %vm829_vm9 = vcmp.ge.f32.partialorder %v775_v12, 0.0  ;;  %v861_v16 = vmul.f32 0.2, %v775_v12  ;;  %v6707_v17 = vld [vmem:[#allocation2 + $0x40] sm:$0xff] }
 0x1a1   : > { %v6755_v18 = vld [vmem:[#allocation2 + $0x160] sm:$0xff]  ;;  %1573 = vmatmul.bf16.gmra.mxu2 %v6707_v17  ;;  %v6773_v17 = vld [vmem:[#allocation2 + $0x18] sm:$0xff] }
 0x1a2   : > { %v893_v22 = vsel %vm829_vm9, %v775_v12, %v861_v16  ;;  %2265 = vmatmul.bf16.gmra.mxu0 %v6755_v18 }
 0x1a3   : > { %v935_v24 = vrot.slane %v893_v22, 7  ;;  %v7055_v25 = vpack.c.bf16 %v893_v22, %v892_v13  ;;  %v1181_v28 = vrot.slane %v893_v22, 1 }
 0x1a5   : > { %v952_v33 = vsel %vm943_vm2, %v919_v14, %v935_v24  ;;  %v968_v39 = vsel %vm943_vm2, %v935_v24, %v919_v14  ;;  %7194 = vst [vmem:[#allocation2 + $0xd8] sm:$0xff] %v7055_v25   ;;  %v1198_v29 = vsel %vm1189_vm3, %v1165_v23, %v1181_v28  ;;  %v1214_v32 = vsel %vm1189_vm3, %v1181_v28, %v1165_v23  ;;  %v777_v35 = vpop.f32.mrf.mxu1 }
 0x1a6   : > { %v1000_v36 = vsel %vm978_vm4, %v968_v39, 0.0  ;;  %v1247_v37 = vsel %vm1227_vm5, %v1214_v32, 0.0  ;;  %v778_v57 = vadd.f32 %v777_v35, %v8009_v53  ;;  %v6865_v39 = vld [vmem:[#allocation9 + $0x1b0] sm:$0xff] }
 0x1a7   : > { %v6975_v42 = vpack.c.bf16 %v952_v33, %v1000_v36  ;;  %v7135_v44 = vpack.c.bf16 %v1247_v37, %v1198_v29  ;;  %v6841_v33 = vld [vmem:[#allocation9 + $0x170] sm:$0xff]  ;;  %3731 = vmatpush.bf16.msra.mxu0 %v6865_v39 }
 0x1a8   : > { %2608 = vmatmul.bf16.gmra.mxu1 %v6772_v41  ;;  %v862_v47 = vmul.f32 0.2, %v778_v57  ;;  %vm830_vm10 = vcmp.ge.f32.partialorder %v778_v57, 0.0  ;;  %3352 = vmatpush.bf16.msra.mxu3 %v6841_v33 }
 0x1a9   : > { %7179 = vst [vmem:[#allocation2 + $0x48] sm:$0xff] %v6975_v42  }
 0x1aa   : > { %7209 = vst [vmem:[#allocation2 + $0x168] sm:$0xff] %v7135_v44   ;;  %v894_v58 = vsel %vm830_vm10, %v778_v57, %v862_v47 }
 0x1ab   : > { %v920_v62 = vrot.slane %v894_v58, 7  ;;  %v1166_v0 = vrot.slane %v894_v58, 1 }
 0x1ac   : > { %v6732_v48 = vld [vmem:[#allocation2 + $0xd8] sm:$0xff] }
 0x1ad   : > { %v779_v51 = vpop.f32.mrf.mxu1  ;;  %1892 = vmatmul.bf16.gmra.mxu3 %v6732_v48 }
 0x1ae   : > { %v780_v56 = vadd.f32 %v779_v51, %v8027_v19 }
 0x1af   : > { %v2231_v53 = vpop.f32.mrf.mxu0 }
 0x1b0   : > { %vm831_vm11 = vcmp.ge.f32.partialorder %v780_v56, 0.0  ;;  %v863_v60 = vmul.f32 0.2, %v780_v56  ;;  %v6708_v59 = vld [vmem:[#allocation2 + $0x48] sm:$0xff]  ;;  %v1853_v61 = vpop.f32.mrf.mxu3 }
 0x1b1   : > { %v6756_v43 = vld [vmem:[#allocation2 + $0x168] sm:$0xff]  ;;  %1578 = vmatmul.bf16.gmra.mxu2 %v6708_v59 }
 0x1b2   : > { %v895_v63 = vsel %vm831_vm11, %v780_v56, %v863_v60  ;;  %2270 = vmatmul.bf16.gmra.mxu0 %v6756_v43 }
 0x1b3   : > { %v936_v4 = vrot.slane %v895_v63, 7  ;;  %v7060_v5 = vpack.c.bf16 %v895_v63, %v894_v58  ;;  %v1182_v6 = vrot.slane %v895_v63, 1 }
 0x1b4   : > { %v1539_v49 = vpop.f32.mrf.mxu2 }
 0x1b5   : > { %v953_v7 = vsel %vm943_vm2, %v920_v62, %v936_v4  ;;  %v969_v19 = vsel %vm943_vm2, %v936_v4, %v920_v62  ;;  %7195 = vst [vmem:[#allocation2 + $0xe0] sm:$0xff] %v7060_v5   ;;  %v1199_v8 = vsel %vm1189_vm3, %v1166_v0, %v1182_v6  ;;  %v1215_v9 = vsel %vm1189_vm3, %v1182_v6, %v1166_v0  ;;  %v782_v21 = vpop.f32.mrf.mxu1  ;;  %v6774_v6 = vld [vmem:[#allocation2 + $0x20] sm:$0xff] }
 0x1b6   : > { %v1002_v12 = vsel %vm978_vm4, %v969_v19, 0.0  ;;  %v1249_v13 = vsel %vm1227_vm5, %v1215_v9, 0.0  ;;  %v1962_v16 = vadd.f32 %v1853_v61, %v1539_v49  ;;  %v783_v22 = vadd.f32 %v782_v21, %v8031_v30 }
 0x1b7   : > { %v6980_v18 = vpack.c.bf16 %v953_v7, %v1002_v12  ;;  %v7140_v14 = vpack.c.bf16 %v1249_v13, %v1199_v8  ;;  %v2233_v23 = vpop.f32.mrf.mxu0  ;;  %v6812_v12 = vld [vmem:[#allocation9 + $0x108] sm:$0xff] }
 0x1b8   : > { %2613 = vmatmul.bf16.gmra.mxu1 %v6773_v17  ;;  %v8144_v24 = vadd.f32 %v2231_v53, %v1962_v16  ;;  %v1855_v25 = vpop.f32.mrf.mxu3  ;;  %v864_v28 = vmul.f32 0.2, %v783_v22  ;;  %vm832_vm12 = vcmp.ge.f32.partialorder %v783_v22, 0.0  ;;  %2979 = vmatpush.bf16.msra.mxu2 %v6812_v12 }
 0x1b9   : > { %7180 = vst [vmem:[#allocation2 + $0x50] sm:$0xff] %v6980_v18  }
 0x1ba   : > { %7210 = vst [vmem:[#allocation2 + $0x170] sm:$0xff] %v7140_v14   ;;  %v896_v30 = vsel %vm832_vm12, %v783_v22, %v864_v28 }
 0x1bb   : > { %v921_v48 = vrot.slane %v896_v30, 7  ;;  %v1167_v56 = vrot.slane %v896_v30, 1 }
 0x1bc   : > { %v6733_v29 = vld [vmem:[#allocation2 + $0xe0] sm:$0xff]  ;;  %v1541_v35 = vpop.f32.mrf.mxu2 }
 0x1bd   : > { %v784_v32 = vpop.f32.mrf.mxu1  ;;  %v1963_v37 = vadd.f32 %v1855_v25, %v1541_v35  ;;  %1897 = vmatmul.bf16.gmra.mxu3 %v6733_v29 }
 0x1be   : > { %v785_v36 = vadd.f32 %v784_v32, %v8050_v1 }
 0x1bf   : > { %v2236_v42 = vpop.f32.mrf.mxu0  ;;  %v8147_v57 = vadd.f32 %v2233_v23, %v1963_v37 }
 0x1c0   : > { %vm833_vm13 = vcmp.ge.f32.partialorder %v785_v36, 0.0  ;;  %v865_v41 = vmul.f32 0.2, %v785_v36  ;;  %v6709_v44 = vld [vmem:[#allocation2 + $0x50] sm:$0xff]  ;;  %v1858_v46 = vpop.f32.mrf.mxu3 }
 0x1c1   : > { %v6757_v47 = vld [vmem:[#allocation2 + $0x170] sm:$0xff]  ;;  %1583 = vmatmul.bf16.gmra.mxu2 %v6709_v44 }
 0x1c2   : > { %v897_v51 = vsel %vm833_vm13, %v785_v36, %v865_v41  ;;  %2275 = vmatmul.bf16.gmra.mxu0 %v6757_v47 }
 0x1c3   : > { %v937_v58 = vrot.slane %v897_v51, 7  ;;  %v7065_v60 = vpack.c.bf16 %v897_v51, %v896_v30  ;;  %v1183_v53 = vrot.slane %v897_v51, 1 }
 0x1c4   : > { %v1544_v63 = vpop.f32.mrf.mxu2 }
 0x1c5   : > { %v954_v1 = vsel %vm943_vm2, %v921_v48, %v937_v58  ;;  %v970_v59 = vsel %vm943_vm2, %v937_v58, %v921_v48  ;;  %7196 = vst [vmem:[#allocation2 + $0xe8] sm:$0xff] %v7065_v60   ;;  %v1200_v61 = vsel %vm1189_vm3, %v1167_v56, %v1183_v53  ;;  %v1216_v43 = vsel %vm1189_vm3, %v1183_v53, %v1167_v56  ;;  %v787_v62 = vpop.f32.mrf.mxu1  ;;  %v6775_v60 = vld [vmem:[#allocation2 + $0x28] sm:$0xff] }
 0x1c6   : > { %v1004_v0 = vsel %vm978_vm4, %v970_v59, 0.0  ;;  %v1251_v4 = vsel %vm1227_vm5, %v1216_v43, 0.0  ;;  %v1964_v5 = vadd.f32 %v1858_v46, %v1544_v63  ;;  %v788_v8 = vadd.f32 %v787_v62, %v8057_v26 }
 0x1c7   : > { %v6985_v7 = vpack.c.bf16 %v954_v1, %v1004_v0  ;;  %v7145_v19 = vpack.c.bf16 %v1251_v4, %v1200_v61  ;;  %v2238_v9 = vpop.f32.mrf.mxu0  ;;  %v6840_v0 = vld [vmem:[#allocation9 + $0x168] sm:$0xff] }
 0x1c8   : > { %2618 = vmatmul.bf16.gmra.mxu1 %v6774_v6  ;;  %v8162_v21 = vadd.f32 %v2236_v42, %v1964_v5  ;;  %v1860_v49 = vpop.f32.mrf.mxu3  ;;  %v866_v13 = vmul.f32 0.2, %v788_v8  ;;  %vm834_vm14 = vcmp.ge.f32.partialorder %v788_v8, 0.0  ;;  %v6864_v4 = vld [vmem:[#allocation9 + $0x1a8] sm:$0xff]  ;;  %3353 = vmatpush.bf16.msra.mxu3 %v6840_v0 }
 0x1c9   : > { %7181 = vst [vmem:[#allocation2 + $0x58] sm:$0xff] %v6985_v7   ;;  %3732 = vmatpush.bf16.msra.mxu0 %v6864_v4 }
 0x1ca   : > { %7211 = vst [vmem:[#allocation2 + $0x178] sm:$0xff] %v7145_v19   ;;  %v898_v23 = vsel %vm834_vm14, %v788_v8, %v866_v13 }
 0x1cb   : > { %v922_v32 = vrot.slane %v898_v23, 7  ;;  %v1168_v36 = vrot.slane %v898_v23, 1 }
 0x1cc   : > { %v6734_v16 = vld [vmem:[#allocation2 + $0xe8] sm:$0xff]  ;;  %v1546_v18 = vpop.f32.mrf.mxu2 }
 0x1cd   : > { %v789_v17 = vpop.f32.mrf.mxu1  ;;  %v1965_v22 = vadd.f32 %v1860_v49, %v1546_v18  ;;  %1902 = vmatmul.bf16.gmra.mxu3 %v6734_v16 }
 0x1ce   : > { %v790_v14 = vadd.f32 %v789_v17, %v8074_v52 }
 0x1cf   : > { %v2241_v25 = vpop.f32.mrf.mxu0  ;;  %v8165_v33 = vadd.f32 %v2238_v9, %v1965_v22 }
 0x1d0   : > { %vm835_vm15 = vcmp.ge.f32.partialorder %v790_v14, 0.0  ;;  %v867_v26 = vmul.f32 0.2, %v790_v14  ;;  %v6710_v28 = vld [vmem:[#allocation2 + $0x58] sm:$0xff]  ;;  %v1863_v39 = vpop.f32.mrf.mxu3 }
 0x1d1   : > { %v6758_v29 = vld [vmem:[#allocation2 + $0x178] sm:$0xff]  ;;  %1588 = vmatmul.bf16.gmra.mxu2 %v6710_v28 }
 0x1d2   : > { %v899_v35 = vsel %vm835_vm15, %v790_v14, %v867_v26  ;;  %2280 = vmatmul.bf16.gmra.mxu0 %v6758_v29 }
 0x1d3   : > { %v938_v37 = vrot.slane %v899_v35, 7  ;;  %v7070_v30 = vpack.c.bf16 %v899_v35, %v898_v23  ;;  %v1184_v41 = vrot.slane %v899_v35, 1 }
 0x1d4   : > { %v1549_v48 = vpop.f32.mrf.mxu2 }
 0x1d5   : > { %v955_v52 = vsel %vm943_vm2, %v922_v32, %v938_v37  ;;  %v971_v42 = vsel %vm943_vm2, %v938_v37, %v922_v32  ;;  %7197 = vst [vmem:[#allocation2 + $0xf0] sm:$0xff] %v7070_v30   ;;  %v1201_v44 = vsel %vm1189_vm3, %v1168_v36, %v1184_v41  ;;  %v1217_v46 = vsel %vm1189_vm3, %v1184_v41, %v1168_v36  ;;  %v792_v47 = vpop.f32.mrf.mxu1  ;;  %v6776_v41 = vld [vmem:[#allocation2 + $0x30] sm:$0xff] }
 0x1d6   : > { %v1006_v51 = vsel %vm978_vm4, %v971_v42, 0.0  ;;  %v1253_v56 = vsel %vm1227_vm5, %v1217_v46, 0.0  ;;  %v1966_v58 = vadd.f32 %v1863_v39, %v1549_v48  ;;  %v793_v59 = vadd.f32 %v792_v47, %v7989_v15 }
 0x1d7   : > { %v6990_v53 = vpack.c.bf16 %v955_v52, %v1006_v51  ;;  %v7150_v1 = vpack.c.bf16 %v1253_v56, %v1201_v44  ;;  %v2243_v61 = vpop.f32.mrf.mxu0  ;;  %v6811_v51 = vld [vmem:[#allocation9 + $0x100] sm:$0xff] }
 0x1d8   : > { %2623 = vmatmul.bf16.gmra.mxu1 %v6775_v60  ;;  %v8180_v43 = vadd.f32 %v2241_v25, %v1966_v58  ;;  %v1865_v62 = vpop.f32.mrf.mxu3  ;;  %v868_v63 = vmul.f32 0.2, %v793_v59  ;;  %vm836_vm0 = vcmp.ge.f32.partialorder %v793_v59, 0.0  ;;  %v6839_v56 = vld [vmem:[#allocation9 + $0x160] sm:$0xff]  ;;  %2980 = vmatpush.bf16.msra.mxu2 %v6811_v51 }
 0x1d9   : > { %7182 = vst [vmem:[#allocation2 + $0x60] sm:$0xff] %v6990_v53   ;;  %3354 = vmatpush.bf16.msra.mxu3 %v6839_v56 }
 0x1da   : > { %7212 = vst [vmem:[#allocation2 + $0x180] sm:$0xff] %v7150_v1   ;;  %v900_v15 = vsel %vm836_vm0, %v793_v59, %v868_v63 }
 0x1db   : > { %v923_v18 = vrot.slane %v900_v15, 7  ;;  %v1169_v22 = vrot.slane %v900_v15, 1 }
 0x1dc   : > { %v6735_v5 = vld [vmem:[#allocation2 + $0xf0] sm:$0xff]  ;;  %v1551_v7 = vpop.f32.mrf.mxu2 }
 0x1dd   : > { %v794_v6 = vpop.f32.mrf.mxu1  ;;  %v1967_v8 = vadd.f32 %v1865_v62, %v1551_v7  ;;  %1907 = vmatmul.bf16.gmra.mxu3 %v6735_v5  ;;  %v6863_v62 = vld [vmem:[#allocation9 + $0x1a0] sm:$0xff] }
 0x1de   : > { %v795_v19 = vadd.f32 %v794_v6, %v8007_v40  ;;  %3733 = vmatpush.bf16.msra.mxu0 %v6863_v62 }
 0x1df   : > { %v2246_v49 = vpop.f32.mrf.mxu0  ;;  %v8183_v13 = vadd.f32 %v2243_v61, %v1967_v8 }
 0x1e0   : > { %vm837_vm1 = vcmp.ge.f32.partialorder %v795_v19, 0.0  ;;  %v869_v9 = vmul.f32 0.2, %v795_v19  ;;  %v6711_v12 = vld [vmem:[#allocation2 + $0x60] sm:$0xff]  ;;  %v1868_v16 = vpop.f32.mrf.mxu3 }
 0x1e1   : > { %v6759_v17 = vld [vmem:[#allocation2 + $0x180] sm:$0xff]  ;;  %1593 = vmatmul.bf16.gmra.mxu2 %v6711_v12 }
 0x1e2   : > { %v901_v14 = vsel %vm837_vm1, %v795_v19, %v869_v9  ;;  %2285 = vmatmul.bf16.gmra.mxu0 %v6759_v17  ;;  %v6837_v9 = vld [vmem:[#allocation9 + $0x150] sm:$0xff] }
 0x1e3   : > { %v939_v23 = vrot.slane %v901_v14, 7  ;;  %v7075_v26 = vpack.c.bf16 %v901_v14, %v900_v15  ;;  %v1185_v25 = vrot.slane %v901_v14, 1 }
 0x1e4   : > { %v1554_v35 = vpop.f32.mrf.mxu2 }
 0x1e5   : > { %v956_v40 = vsel %vm943_vm2, %v923_v18, %v939_v23  ;;  %v972_v28 = vsel %vm943_vm2, %v939_v23, %v923_v18  ;;  %7198 = vst [vmem:[#allocation2 + $0xf8] sm:$0xff] %v7075_v26   ;;  %v1202_v39 = vsel %vm1189_vm3, %v1169_v22, %v1185_v25  ;;  %v1218_v29 = vsel %vm1189_vm3, %v1185_v25, %v1169_v22  ;;  %v797_v32 = vpop.f32.mrf.mxu1 }
 0x1e6   : > { %v1008_v36 = vsel %vm978_vm4, %v972_v28, 0.0  ;;  %v1255_v37 = vsel %vm1227_vm5, %v1218_v29, 0.0  ;;  %v1968_v30 = vadd.f32 %v1868_v16, %v1554_v35  ;;  %v798_v44 = vadd.f32 %v797_v32, %v8011_v54  ;;  %v6838_v54 = vld [vmem:[#allocation9 + $0x158] sm:$0xff]  ;;  %v6777_v29 = vld [vmem:[#allocation2 + $0x38] sm:$0xff]  ;;  %v6861_v35 = vld [vmem:[#allocation9 + $0x190] sm:$0xff] }
 0x1e7   : > { %v6995_v52 = vpack.c.bf16 %v956_v40, %v1008_v36  ;;  %v7155_v42 = vpack.c.bf16 %v1255_v37, %v1202_v39  ;;  %v2248_v46 = vpop.f32.mrf.mxu0  ;;  %3355 = vmatpush.bf16.msra.mxu3 %v6838_v54  ;;  %v6836_v32 = vld [vmem:[#allocation9 + $0x148] sm:$0xff] }
 0x1e8   : > { %2628 = vmatmul.bf16.gmra.mxu1 %v6776_v41  ;;  %v8198_v47 = vadd.f32 %v2246_v49, %v1968_v30  ;;  %v1870_v48 = vpop.f32.mrf.mxu3  ;;  %v870_v58 = vmul.f32 0.2, %v798_v44  ;;  %vm838_vm6 = vcmp.ge.f32.partialorder %v798_v44, 0.0 }
 0x1e9   : > { %7183 = vst [vmem:[#allocation2 + $0x68] sm:$0xff] %v6995_v52  }
 0x1ea   : > { %7213 = vst [vmem:[#allocation2 + $0x188] sm:$0xff] %v7155_v42   ;;  %v902_v63 = vsel %vm838_vm6, %v798_v44, %v870_v58  ;;  %v6835_v44 = vld [vmem:[#allocation9 + $0x140] sm:$0xff] }
 0x1eb   : > { %v924_v8 = vrot.slane %v902_v63, 7  ;;  %v1170_v49 = vrot.slane %v902_v63, 1  ;;  %3356 = vmatpush.bf16.msra.mxu3 %v6837_v9 }
 0x1ec   : > { %v6736_v60 = vld [vmem:[#allocation2 + $0xf8] sm:$0xff]  ;;  %v1556_v1 = vpop.f32.mrf.mxu2 }
 0x1ed   : > { %v799_v53 = vpop.f32.mrf.mxu1  ;;  %v1969_v61 = vadd.f32 %v1870_v48, %v1556_v1  ;;  %1912 = vmatmul.bf16.gmra.mxu3 %v6736_v60 }
 0x1ee   : > { %v800_v59 = vadd.f32 %v799_v53, %v8029_v20  ;;  %v6862_v20 = vld [vmem:[#allocation9 + $0x198] sm:$0xff]  ;;  %v6859_v53 = vld [vmem:[#allocation9 + $0x180] sm:$0xff] }
 0x1ef   : > { %v2251_v4 = vpop.f32.mrf.mxu0  ;;  %v8201_v6 = vadd.f32 %v2248_v46, %v1969_v61  ;;  %3734 = vmatpush.bf16.msra.mxu0 %v6862_v20  ;;  %3357 = vmatpush.bf16.msra.mxu3 %v6836_v32  ;;  %v6860_v46 = vld [vmem:[#allocation9 + $0x188] sm:$0xff] }
 0x1f0   : > { %vm839_vm7 = vcmp.ge.f32.partialorder %v800_v59, 0.0  ;;  %v871_v0 = vmul.f32 0.2, %v800_v59  ;;  %v6712_v5 = vld [vmem:[#allocation2 + $0x68] sm:$0xff]  ;;  %v1873_v7 = vpop.f32.mrf.mxu3 }
 0x1f1   : > { %v6760_v19 = vld [vmem:[#allocation2 + $0x188] sm:$0xff]  ;;  %1598 = vmatmul.bf16.gmra.mxu2 %v6712_v5 }
 0x1f2   : > { %v903_v15 = vsel %vm839_vm7, %v800_v59, %v871_v0  ;;  %2290 = vmatmul.bf16.gmra.mxu0 %v6760_v19 }
 0x1f3   : > { %v940_v12 = vrot.slane %v903_v15, 7  ;;  %v7080_v16 = vpack.c.bf16 %v903_v15, %v902_v63  ;;  %v1186_v17 = vrot.slane %v903_v15, 1  ;;  %3735 = vmatpush.bf16.msra.mxu0 %v6861_v35  ;;  %3358 = vmatpush.bf16.msra.mxu3 %v6835_v44  ;;  %v6914_v15 = vld [vmem:[#allocation9 + $0x238] sm:$0xff] }
 0x1f4   : > { %v1559_v25 = vpop.f32.mrf.mxu2  ;;  %4488 = vmatpush.bf16.msrb.mxu2 %v6914_v15  ;;  %v6779_v15 = vld [vmem:[#allocation2 + $0x48] sm:$0xff] }
 0x1f5   : > { %v957_v18 = vsel %vm943_vm2, %v924_v8, %v940_v12  ;;  %v973_v14 = vsel %vm943_vm2, %v940_v12, %v924_v8  ;;  %7199 = vst [vmem:[#allocation2 + $0x100] sm:$0xff] %v7080_v16   ;;  %v1203_v22 = vsel %vm1189_vm3, %v1170_v49, %v1186_v17  ;;  %v1219_v23 = vsel %vm1189_vm3, %v1186_v17, %v1170_v49  ;;  %v802_v26 = vpop.f32.mrf.mxu1 }
 0x1f6   : > { %v1010_v40 = vsel %vm978_vm4, %v973_v14, 0.0  ;;  %v1257_v28 = vsel %vm1227_vm5, %v1219_v23, 0.0  ;;  %v1970_v39 = vadd.f32 %v1873_v7, %v1559_v25  ;;  %v803_v30 = vadd.f32 %v802_v26, %v8033_v31  ;;  %v6778_v26 = vld [vmem:[#allocation2 + $0x40] sm:$0xff]  ;;  %v6890_v25 = vld [vmem:[#allocation9 + $0x1f8] sm:$0xff] }
 0x1f7   : > { %v7000_v36 = vpack.c.bf16 %v957_v18, %v1010_v40  ;;  %v7160_v37 = vpack.c.bf16 %v1257_v28, %v1203_v22  ;;  %v2253_v41 = vpop.f32.mrf.mxu0  ;;  %3736 = vmatpush.bf16.msra.mxu0 %v6860_v46  ;;  %4109 = vmatpush.bf16.msrb.mxu1 %v6890_v25 }
 0x1f8   : > { %2633 = vmatmul.bf16.gmra.mxu1 %v6777_v29  ;;  %v8216_v52 = vadd.f32 %v2251_v4, %v1970_v39  ;;  %v1875_v42 = vpop.f32.mrf.mxu3  ;;  %v872_v48 = vmul.f32 0.2, %v803_v30  ;;  %vm840_vm8 = vcmp.ge.f32.partialorder %v803_v30, 0.0 }
 0x1f9   : > { %7184 = vst [vmem:[#allocation2 + $0x70] sm:$0xff] %v7000_v36  }
 0x1fa   : > { %7214 = vst [vmem:[#allocation2 + $0x190] sm:$0xff] %v7160_v37   ;;  %v904_v1 = vsel %vm840_vm8, %v803_v30, %v872_v48 }
 0x1fb   : > { %3737 = vmatpush.bf16.msra.mxu0 %v6859_v53  ;;  %v925_v4 = vrot.slane %v904_v1, 7  ;;  %v1171_v7 = vrot.slane %v904_v1, 1 }
 0x1fc   : > { %v6737_v51 = vld [vmem:[#allocation2 + $0x100] sm:$0xff]  ;;  %v1561_v58 = vpop.f32.mrf.mxu2 }
 0x1fd   : > { %v804_v56 = vpop.f32.mrf.mxu1  ;;  %v1971_v60 = vadd.f32 %v1875_v42, %v1561_v58  ;;  %1917 = vmatmul.bf16.gmra.mxu3 %v6737_v51 }
 0x1fe   : > { %v805_v31 = vadd.f32 %v804_v56, %v8052_v2 }
 0x1ff   : > { %v2256_v61 = vpop.f32.mrf.mxu0  ;;  %v8219_v62 = vadd.f32 %v2253_v41, %v1971_v60 }
 0x200   : > { %vm841_vm9 = vcmp.ge.f32.partialorder %v805_v31, 0.0  ;;  %v873_v59 = vmul.f32 0.2, %v805_v31  ;;  %v6713_v54 = vld [vmem:[#allocation2 + $0x70] sm:$0xff]  ;;  %v1878_v63 = vpop.f32.mrf.mxu3 }
 0x201   : > { %v6761_v0 = vld [vmem:[#allocation2 + $0x190] sm:$0xff]  ;;  %1603 = vmatmul.bf16.gmra.mxu2 %v6713_v54 }
 0x202   : > { %v905_v5 = vsel %vm841_vm9, %v805_v31, %v873_v59  ;;  %2295 = vmatmul.bf16.gmra.mxu0 %v6761_v0 }
 0x203   : > { %v941_v19 = vrot.slane %v905_v5, 7  ;;  %v7085_v8 = vpack.c.bf16 %v905_v5, %v904_v1  ;;  %v1187_v2 = vrot.slane %v905_v5, 1 }
 0x204   : > { %v1564_v17 = vpop.f32.mrf.mxu2 }
 0x205   : > { %v958_v9 = vsel %vm943_vm2, %v925_v4, %v941_v19  ;;  %v974_v20 = vsel %vm943_vm2, %v941_v19, %v925_v4  ;;  %7200 = vst [vmem:[#allocation2 + $0x108] sm:$0xff] %v7085_v8   ;;  %v1204_v49 = vsel %vm1189_vm3, %v1171_v7, %v1187_v2  ;;  %v1220_v12 = vsel %vm1189_vm3, %v1187_v2, %v1171_v7  ;;  %v807_v16 = vpop.f32.mrf.mxu1 }
 0x206   : > { %v1012_v18 = vsel %vm978_vm4, %v974_v20, 0.0  ;;  %v1259_v14 = vsel %vm1227_vm5, %v1220_v12, 0.0  ;;  %v808_v22 = vadd.f32 %v807_v16, %v8059_v27  ;;  %v1972_v23 = vadd.f32 %v1878_v63, %v1564_v17  ;;  %v6819_v16 = vld [vmem:[#allocation2 + $0x128] sm:$0xff] }
 0x207   : > { %v7005_v40 = vpack.c.bf16 %v958_v9, %v1012_v18  ;;  %v7165_v28 = vpack.c.bf16 %v1259_v14, %v1204_v49  ;;  %v2258_v39 = vpop.f32.mrf.mxu0 }
 0x208   : > { %2638 = vmatmul.bf16.gmra.mxu1 %v6778_v26  ;;  %v8234_v29 = vadd.f32 %v2256_v61, %v1972_v23  ;;  %v1880_v32 = vpop.f32.mrf.mxu3  ;;  %v874_v35 = vmul.f32 0.2, %v808_v22  ;;  %vm842_vm10 = vcmp.ge.f32.partialorder %v808_v22, 0.0  ;;  %v6843_v23 = vld [vmem:[#allocation2 + $0x10] sm:$0xff]  ;;  %v6913_v26 = vld [vmem:[#allocation9 + $0x230] sm:$0xff] }
 0x209   : > { %7185 = vst [vmem:[#allocation2 + $0x78] sm:$0xff] %v7005_v40   ;;  %4489 = vmatpush.bf16.msrb.mxu2 %v6913_v26 }
 0x20a   : > { %7215 = vst [vmem:[#allocation2 + $0x198] sm:$0xff] %v7165_v28   ;;  %v906_v27 = vsel %vm842_vm10, %v808_v22, %v874_v35  ;;  %v6889_v35 = vld [vmem:[#allocation9 + $0x1f0] sm:$0xff] }
 0x20b   : > { %v926_v56 = vrot.slane %v906_v27, 7  ;;  %v1172_v58 = vrot.slane %v906_v27, 1  ;;  %4110 = vmatpush.bf16.msrb.mxu1 %v6889_v35 }
 0x20c   : > { %v6738_v36 = vld [vmem:[#allocation2 + $0x108] sm:$0xff]  ;;  %v1566_v30 = vpop.f32.mrf.mxu2 }
 0x20d   : > { %v809_v37 = vpop.f32.mrf.mxu1  ;;  %v1973_v42 = vadd.f32 %v1880_v32, %v1566_v30  ;;  %1922 = vmatmul.bf16.gmra.mxu3 %v6738_v36  ;;  %v6780_v32 = vld [vmem:[#allocation2 + $0x50] sm:$0xff] }
 0x20e   : > { %v810_v41 = vadd.f32 %v809_v37, %v8076_v55 }
 0x20f   : > { %v2261_v46 = vpop.f32.mrf.mxu0  ;;  %v8237_v51 = vadd.f32 %v2258_v39, %v1973_v42 }
 0x210   : > { %vm843_vm11 = vcmp.ge.f32.partialorder %v810_v41, 0.0  ;;  %v875_v44 = vmul.f32 0.2, %v810_v41  ;;  %v6714_v48 = vld [vmem:[#allocation2 + $0x78] sm:$0xff]  ;;  %v1883_v31 = vpop.f32.mrf.mxu3 }
 0x211   : > { %v6762_v60 = vld [vmem:[#allocation2 + $0x198] sm:$0xff]  ;;  %1608 = vmatmul.bf16.gmra.mxu2 %v6714_v48 }
 0x212   : > { %v907_v53 = vsel %vm843_vm11, %v810_v41, %v875_v44  ;;  %2300 = vmatmul.bf16.gmra.mxu0 %v6762_v60 }
 0x213   : > { %v942_v1 = vrot.slane %v907_v53, 7  ;;  %v7090_v59 = vpack.c.bf16 %v907_v53, %v906_v27  ;;  %v1188_v61 = vrot.slane %v907_v53, 1  ;;  %v6820_v27 = vld [vmem:[#allocation2 + $0x130] sm:$0xff] }
 0x214   : > { %v1569_v5 = vpop.f32.mrf.mxu2 }
 0x215   : > { %v959_v55 = vsel %vm943_vm2, %v926_v56, %v942_v1  ;;  %v975_v54 = vsel %vm943_vm2, %v942_v1, %v926_v56  ;;  %7201 = vst [vmem:[#allocation2 + $0x110] sm:$0xff] %v7090_v59   ;;  %v1205_v63 = vsel %vm1189_vm3, %v1172_v58, %v1188_v61  ;;  %v1221_v0 = vsel %vm1189_vm3, %v1188_v61, %v1172_v58  ;;  %v2604_v4 = vpop.f32.mrf.mxu1  ;;  %v6781_v61 = vld [vmem:[#allocation2 + $0x58] sm:$0xff] }
 0x216   : > { %v1014_v7 = vsel %vm978_vm4, %v975_v54, 0.0  ;;  %v1261_v19 = vsel %vm1227_vm5, %v1221_v0, 0.0  ;;  %v8252_v8 = vadd.f32 %v2604_v4, %v8094_v34  ;;  %v1974_v2 = vadd.f32 %v1883_v31, %v1569_v5  ;;  %v6795_v34 = vld [vmem:[#allocation2 + $0x98] sm:$0xff] }
 0x217   : > { %v7010_v9 = vpack.c.bf16 %v959_v55, %v1014_v7  ;;  %v7170_v20 = vpack.c.bf16 %v1261_v19, %v1205_v63  ;;  %v2263_v49 = vpop.f32.mrf.mxu0  ;;  %v6844_v31 = vld [vmem:[#allocation2 + $0x18] sm:$0xff] }
 0x218   : > { %2643 = vmatmul.bf16.gmra.mxu1 %v6779_v15  ;;  %v8254_v12 = vadd.f32 %v2261_v46, %v1974_v2  ;;  %v1885_v3 = vpop.f32.mrf.mxu3  ;;  %v6821_v63 = vld [vmem:[#allocation2 + $0x138] sm:$0xff]  ;;  %v6797_v2 = vld [vmem:[#allocation2 + $0xa8] sm:$0xff] }
 0x219   : > { %7186 = vst [vmem:[#allocation2 + $0x80] sm:$0xff] %v7010_v9   ;;  %v6845_v9 = vld [vmem:[#allocation2 + $0x20] sm:$0xff] }
 0x21a   : > { %7216 = vst [vmem:[#allocation2 + $0x1a0] sm:$0xff] %v7170_v20   ;;  %v6912_v20 = vld [vmem:[#allocation9 + $0x228] sm:$0xff] }
 0x21b   : > { %4490 = vmatpush.bf16.msrb.mxu2 %v6912_v20 }
 0x21c   : > { %v1571_v17 = vpop.f32.mrf.mxu2 }
 0x21d   : > { %v8256_v10 = vpop.f32.mrf.mxu1  ;;  %v1975_v11 = vadd.f32 %v1885_v3, %v1571_v17  ;;  %3359 = vmatmul.bf16.vlgmr.msra.gmra.mxu3 %v6819_v16 }
 0x21f   : > { %v2266_v18 = vpop.f32.mrf.mxu0  ;;  %v8258_v14 = vadd.f32 %v2263_v49, %v1975_v11  ;;  %v6888_v11 = vld [vmem:[#allocation9 + $0x1e8] sm:$0xff] }
 0x220   : > { %v1888_v22 = vpop.f32.mrf.mxu3  ;;  %4111 = vmatpush.bf16.msrb.mxu1 %v6888_v11  ;;  %v6885_v11 = vld [vmem:[#allocation9 + $0x1d0] sm:$0xff] }
 0x221   : > { %2981 = vmatmul.bf16.vlgmr.msra.gmra.mxu2 %v6795_v34 }
 0x222   : > { %3738 = vmatmul.bf16.vlgmr.msra.gmra.mxu0 %v6843_v23  ;;  %v6822_v23 = vld [vmem:[#allocation2 + $0x140] sm:$0xff] }
 0x224   : > { %v1574_v40 = vpop.f32.mrf.mxu2 }
 0x225   : > { %v2609_v25 = vpop.f32.mrf.mxu1  ;;  %v1976_v39 = vadd.f32 %v1888_v22, %v1574_v40 }
 0x226   : > { %v8261_v28 = vadd.f32 %v2609_v25, %v8144_v24  ;;  %v6796_v24 = vld [vmem:[#allocation2 + $0xa0] sm:$0xff] }
 0x227   : > { %v2268_v36 = vpop.f32.mrf.mxu0  ;;  %v8263_v37 = vadd.f32 %v2266_v18, %v1976_v39 }
 0x228   : > { %2648 = vmatmul.bf16.gmra.mxu1 %v6780_v32  ;;  %v1890_v30 = vpop.f32.mrf.mxu3 }
 0x22c   : > { %v1576_v42 = vpop.f32.mrf.mxu2 }
 0x22d   : > { %v2611_v41 = vpop.f32.mrf.mxu1  ;;  %v1977_v46 = vadd.f32 %v1890_v30, %v1576_v42  ;;  %3364 = vmatmul.bf16.gmra.mxu3 %v6820_v27  ;;  %v6846_v30 = vld [vmem:[#allocation2 + $0x28] sm:$0xff] }
 0x22e   : > { %v8266_v44 = vadd.f32 %v2611_v41, %v8147_v57 }
 0x22f   : > { %v2271_v48 = vpop.f32.mrf.mxu0  ;;  %v8268_v56 = vadd.f32 %v2268_v36, %v1977_v46 }
 0x230   : > { %v1893_v58 = vpop.f32.mrf.mxu3 }
 0x231   : > { %2986 = vmatmul.bf16.gmra.mxu2 %v6796_v24 }
 0x232   : > { %3743 = vmatmul.bf16.gmra.mxu0 %v6844_v31  ;;  %v6823_v31 = vld [vmem:[#allocation2 + $0x148] sm:$0xff] }
 0x234   : > { %v1579_v53 = vpop.f32.mrf.mxu2 }
 0x235   : > { %v2614_v60 = vpop.f32.mrf.mxu1  ;;  %v1978_v59 = vadd.f32 %v1893_v58, %v1579_v53 }
 0x236   : > { %v8271_v1 = vadd.f32 %v2614_v60, %v8162_v21 }
 0x237   : > { %v2273_v55 = vpop.f32.mrf.mxu0  ;;  %v8273_v57 = vadd.f32 %v2271_v48, %v1978_v59  ;;  %v6783_v48 = vld [vmem:[#allocation2 + $0x68] sm:$0xff] }
 0x238   : > { %2653 = vmatmul.bf16.gmra.mxu1 %v6781_v61  ;;  %v1895_v54 = vpop.f32.mrf.mxu3 }
 0x23c   : > { %v1581_v4 = vpop.f32.mrf.mxu2 }
 0x23d   : > { %v2616_v0 = vpop.f32.mrf.mxu1  ;;  %v1979_v7 = vadd.f32 %v1895_v54, %v1581_v4  ;;  %3369 = vmatmul.bf16.gmra.mxu3 %v6821_v63  ;;  %v6799_v54 = vld [vmem:[#allocation2 + $0xb8] sm:$0xff]  ;;  %v6911_v4 = vld [vmem:[#allocation9 + $0x220] sm:$0xff] }
 0x23e   : > { %v8276_v5 = vadd.f32 %v2616_v0, %v8165_v33  ;;  %v6782_v33 = vld [vmem:[#allocation2 + $0x60] sm:$0xff]  ;;  %v6847_v0 = vld [vmem:[#allocation2 + $0x30] sm:$0xff]  ;;  %4491 = vmatpush.bf16.msrb.mxu2 %v6911_v4 }
 0x23f   : > { %v2276_v19 = vpop.f32.mrf.mxu0  ;;  %v8278_v15 = vadd.f32 %v2273_v55, %v1979_v7  ;;  %v6887_v7 = vld [vmem:[#allocation9 + $0x1e0] sm:$0xff] }
 0x240   : > { %v1898_v21 = vpop.f32.mrf.mxu3  ;;  %4112 = vmatpush.bf16.msrb.mxu1 %v6887_v7  ;;  %v6849_v7 = vld [vmem:[#allocation2 + $0x40] sm:$0xff] }
 0x241   : > { %2991 = vmatmul.bf16.gmra.mxu2 %v6797_v2 }
 0x242   : > { %3748 = vmatmul.bf16.gmra.mxu0 %v6845_v9  ;;  %v6784_v9 = vld [vmem:[#allocation2 + $0x70] sm:$0xff] }
 0x244   : > { %v1584_v3 = vpop.f32.mrf.mxu2 }
 0x245   : > { %v2619_v49 = vpop.f32.mrf.mxu1  ;;  %v1980_v17 = vadd.f32 %v1898_v21, %v1584_v3 }
 0x246   : > { %v8281_v16 = vadd.f32 %v2619_v49, %v8180_v43  ;;  %v6798_v43 = vld [vmem:[#allocation2 + $0xb0] sm:$0xff]  ;;  %v6886_v49 = vld [vmem:[#allocation9 + $0x1d8] sm:$0xff] }
 0x247   : > { %v2278_v18 = vpop.f32.mrf.mxu0  ;;  %v8283_v34 = vadd.f32 %v2276_v19, %v1980_v17  ;;  %4113 = vmatpush.bf16.msrb.mxu1 %v6886_v49 }
 0x248   : > { %2658 = vmatmul.bf16.gmra.mxu1 %v6782_v33  ;;  %v1900_v22 = vpop.f32.mrf.mxu3  ;;  %v6824_v33 = vld [vmem:[#allocation2 + $0x150] sm:$0xff] }
 0x24b   : > { %4114 = vmatpush.bf16.msrb.mxu1 %v6885_v11  ;;  %v6826_v11 = vld [vmem:[#allocation2 + $0x160] sm:$0xff] }
 0x24c   : > { %v1586_v25 = vpop.f32.mrf.mxu2 }
 0x24d   : > { %v2621_v26 = vpop.f32.mrf.mxu1  ;;  %v1981_v39 = vadd.f32 %v1900_v22, %v1586_v25  ;;  %3374 = vmatmul.bf16.gmra.mxu3 %v6822_v23  ;;  %v6800_v25 = vld [vmem:[#allocation2 + $0xc0] sm:$0xff] }
 0x24e   : > { %v8286_v40 = vadd.f32 %v2621_v26, %v8183_v13 }
 0x24f   : > { %v2281_v32 = vpop.f32.mrf.mxu0  ;;  %v8288_v35 = vadd.f32 %v2278_v18, %v1981_v39  ;;  %v6884_v39 = vld [vmem:[#allocation9 + $0x1c8] sm:$0xff] }
 0x250   : > { %v1903_v36 = vpop.f32.mrf.mxu3  ;;  %4115 = vmatpush.bf16.msrb.mxu1 %v6884_v39  ;;  %v6802_v39 = vld [vmem:[#allocation2 + $0xd0] sm:$0xff] }
 0x251   : > { %2996 = vmatmul.bf16.gmra.mxu2 %v6798_v43 }
 0x252   : > { %3753 = vmatmul.bf16.gmra.mxu0 %v6846_v30  ;;  %v6883_v30 = vld [vmem:[#allocation9 + $0x1c0] sm:$0xff] }
 0x254   : > { %v1589_v41 = vpop.f32.mrf.mxu2  ;;  %4116 = vmatpush.bf16.msrb.mxu1 %v6883_v30 }
 0x255   : > { %v2624_v27 = vpop.f32.mrf.mxu1  ;;  %v1982_v46 = vadd.f32 %v1903_v36, %v1589_v41  ;;  %v6848_v36 = vld [vmem:[#allocation2 + $0x38] sm:$0xff] }
 0x256   : > { %v8291_v42 = vadd.f32 %v2624_v27, %v8198_v47 }
 0x257   : > { %v2283_v24 = vpop.f32.mrf.mxu0  ;;  %v8293_v13 = vadd.f32 %v2281_v32, %v1982_v46 }
 0x258   : > { %2663 = vmatmul.bf16.gmra.mxu1 %v6783_v48  ;;  %v1905_v58 = vpop.f32.mrf.mxu3  ;;  %v6785_v48 = vld [vmem:[#allocation2 + $0x78] sm:$0xff] }
 0x25c   : > { %v1591_v53 = vpop.f32.mrf.mxu2 }
 0x25d   : > { %v2626_v60 = vpop.f32.mrf.mxu1  ;;  %v1983_v61 = vadd.f32 %v1905_v58, %v1591_v53  ;;  %3379 = vmatmul.bf16.gmra.mxu3 %v6823_v31 }
 0x25e   : > { %v8296_v59 = vadd.f32 %v2626_v60, %v8201_v6  ;;  %v6825_v60 = vld [vmem:[#allocation2 + $0x158] sm:$0xff] }
 0x25f   : > { %v2286_v55 = vpop.f32.mrf.mxu0  ;;  %v8298_v63 = vadd.f32 %v2283_v24, %v1983_v61 }
 0x260   : > { %v1908_v47 = vpop.f32.mrf.mxu3 }
 0x261   : > { %3001 = vmatmul.bf16.gmra.mxu2 %v6799_v54 }
 0x262   : > { %3758 = vmatmul.bf16.gmra.mxu0 %v6847_v0  ;;  %v6801_v0 = vld [vmem:[#allocation2 + $0xc8] sm:$0xff] }
 0x264   : > { %v1594_v2 = vpop.f32.mrf.mxu2 }
 0x265   : > { %v2629_v19 = vpop.f32.mrf.mxu1  ;;  %v1984_v6 = vadd.f32 %v1908_v47, %v1594_v2 }
 0x266   : > { %v8301_v21 = vadd.f32 %v2629_v19, %v8216_v52  ;;  %v6910_v19 = vld [vmem:[#allocation9 + $0x218] sm:$0xff] }
 0x267   : > { %v2288_v20 = vpop.f32.mrf.mxu0  ;;  %v8303_v3 = vadd.f32 %v2286_v55, %v1984_v6  ;;  %4492 = vmatpush.bf16.msrb.mxu2 %v6910_v19 }
 0x268   : > { %2668 = vmatmul.bf16.gmra.mxu1 %v6784_v9  ;;  %v1910_v17 = vpop.f32.mrf.mxu3 }
 0x26c   : > { %v1596_v22 = vpop.f32.mrf.mxu2 }
 0x26d   : > { %v2631_v18 = vpop.f32.mrf.mxu1  ;;  %v1985_v26 = vadd.f32 %v1910_v17, %v1596_v22  ;;  %3384 = vmatmul.bf16.gmra.mxu3 %v6824_v33 }
 0x26e   : > { %v8306_v23 = vadd.f32 %v2631_v18, %v8219_v62 }
 0x26f   : > { %v2291_v52 = vpop.f32.mrf.mxu0  ;;  %v8308_v32 = vadd.f32 %v2288_v20, %v1985_v26 }
 0x270   : > { %v1913_v43 = vpop.f32.mrf.mxu3 }
 0x271   : > { %3006 = vmatmul.bf16.gmra.mxu2 %v6800_v25 }
 0x272   : > { %3763 = vmatmul.bf16.gmra.mxu0 %v6848_v36  ;;  %v6850_v36 = vld [vmem:[#allocation2 + $0x48] sm:$0xff] }
 0x274   : > { %v1599_v41 = vpop.f32.mrf.mxu2 }
 0x275   : > { %v2634_v27 = vpop.f32.mrf.mxu1  ;;  %v1986_v62 = vadd.f32 %v1913_v43, %v1599_v41 }
 0x276   : > { %v8311_v46 = vadd.f32 %v2634_v27, %v8234_v29 }
 0x277   : > { %v2293_v24 = vpop.f32.mrf.mxu0  ;;  %v8313_v58 = vadd.f32 %v2291_v52, %v1986_v62 }
 0x278   : > { %2673 = vmatmul.bf16.gmra.mxu1 %v6785_v48  ;;  %v1915_v31 = vpop.f32.mrf.mxu3  ;;  %v6867_v48 = vld [vmem:[#allocation2 + $0xa0] sm:$0xff] }
 0x27c   : > { %v1601_v61 = vpop.f32.mrf.mxu2 }
 0x27d   : > { %v2636_v53 = vpop.f32.mrf.mxu1  ;;  %v1987_v54 = vadd.f32 %v1915_v31, %v1601_v61  ;;  %3389 = vmatmul.bf16.gmra.mxu3 %v6825_v60  ;;  %v6930_v31 = vld [vmem:[#allocation10 + $0x74] sm:$0xf0]  ;;  %v6929_v60 = vld [vmem:[#allocation10 + $0x74] sm:$0xf] }
 0x27e   : > { %v8316_v55 = vadd.f32 %v2636_v53, %v8237_v51  ;;  %v6786_v51 = vld [vmem:[#allocation2 + $0x80] sm:$0xff] }
 0x27f   : > { %v2296_v47 = vpop.f32.mrf.mxu0  ;;  %v8318_v29 = vadd.f32 %v2293_v24, %v1987_v54 }
 0x280   : > { %v1918_v4 = vpop.f32.mrf.mxu3 }
 0x281   : > { %3011 = vmatmul.bf16.gmra.mxu2 %v6801_v0 }
 0x282   : > { %3768 = vmatmul.bf16.gmra.mxu0 %v6849_v7 }
 0x284   : > { %v1604_v6 = vpop.f32.mrf.mxu2 }
 0x285   : > { %v2639_v2 = vpop.f32.mrf.mxu1  ;;  %v1988_v20 = vadd.f32 %v1918_v4, %v1604_v6  ;;  %v6827_v4 = vld [vmem:[#allocation2 + $0x168] sm:$0xff] }
 0x286   : > { %v8321_v9 = vadd.f32 %v2639_v2, %v8254_v12 }
 0x287   : > { %v2298_v49 = vpop.f32.mrf.mxu0  ;;  %v8323_v17 = vadd.f32 %v2296_v47, %v1988_v20  ;;  %v6671_v47 = vld [vmem:[#allocation10 + $0x78] sm:$0xf0]  ;;  %v6803_v20 = vld [vmem:[#allocation2 + $0xd8] sm:$0xff] }
 0x288   : > { %2678 = vmatmul.bf16.gmra.mxu1 %v6786_v51  ;;  %v1920_v33 = vpop.f32.mrf.mxu3  ;;  %v6674_v0 = vor.u32 %v6929_v60, %v6671_v47  ;;  %v6804_v60 = vld [vmem:[#allocation2 + $0xe0] sm:$0xff] }
 0x28a   : > { %5002 = vmatpush.bf16.msrb.mxu0 %v6674_v0 }
 0x28c   : > { %v1606_v22 = vpop.f32.mrf.mxu2 }
 0x28d   : > { %v2641_v18 = vpop.f32.mrf.mxu1  ;;  %v1989_v52 = vadd.f32 %v1920_v33, %v1606_v22  ;;  %3394 = vmatmul.bf16.gmra.mxu3 %v6826_v11  ;;  %v6851_v33 = vld [vmem:[#allocation2 + $0x50] sm:$0xff]  ;;  %v6909_v11 = vld [vmem:[#allocation9 + $0x210] sm:$0xff] }
 0x28e   : > { %v8326_v26 = vadd.f32 %v2641_v18, %v8258_v14  ;;  %v6669_v14 = vld [vmem:[#allocation10 + $0x70] sm:$0xf]  ;;  %4493 = vmatpush.bf16.msrb.mxu2 %v6909_v11  ;;  %v6663_v11 = vld [vmem:[#allocation10 + $0x68] sm:$0xf0] }
 0x28f   : > { %v2301_v25 = vpop.f32.mrf.mxu0  ;;  %v8328_v43 = vadd.f32 %v2298_v49, %v1989_v52  ;;  %v6670_v54 = vor.u32 %v6930_v31, %v6669_v14  ;;  %v1961_v52 = vadd.f32 %v8126_v45, %v8128_v50 }
 0x290   : > { %v1923_v12 = vpop.f32.mrf.mxu3 }
 0x291   : > { %3016 = vmatmul.bf16.gmra.mxu2 %v6802_v39  ;;  %4913 = vmatpush.bf16.msrb.mxu3 %v6670_v54  ;;  %v6868_v39 = vld [vmem:[#allocation2 + $0xa8] sm:$0xff]  ;;  %v6852_v54 = vld [vmem:[#allocation2 + $0x58] sm:$0xff] }
 0x292   : > { %3773 = vmatmul.bf16.gmra.mxu0 %v6850_v36 }
 0x294   : > { %v1609_v27 = vpop.f32.mrf.mxu2 }
 0x295   : > { %v2644_v30 = vpop.f32.mrf.mxu1  ;;  %v1990_v62 = vadd.f32 %v1923_v12, %v1609_v27  ;;  %v2339_v27 = vadd.f32 %v8123_v38, %v1961_v52  ;;  %v6829_v52 = vld [vmem:[#allocation2 + $0x178] sm:$0xff] }
 0x296   : > { %v8331_v41 = vadd.f32 %v2644_v30, %v8263_v37 }
 0x297   : > { %v2303_v24 = vpop.f32.mrf.mxu0  ;;  %v8333_v53 = vadd.f32 %v2301_v25, %v1990_v62 }
 0x298   : > { %4117 = vmatmul.bf16.vlgmr.msrb.gmra.mxu1 %v6867_v48  ;;  %v1925_v61 = vpop.f32.mrf.mxu3  ;;  %v2717_v48 = vadd.f32 %v8256_v10, %v2339_v27 }
 0x29c   : > { %v1611_v19 = vpop.f32.mrf.mxu2 }
 0x29d   : > { %v2646_v7 = vpop.f32.mrf.mxu1  ;;  %v1991_v2 = vadd.f32 %v1925_v61, %v1611_v19  ;;  %3399 = vmatmul.bf16.gmra.mxu3 %v6827_v4 }
 0x29e   : > { %v8336_v37 = vadd.f32 %v2646_v7, %v8268_v56 }
 0x29f   : > { %v3739_v6 = vpop.f32.mrf.mxu0  ;;  %v8338_v51 = vadd.f32 %v2303_v24, %v1991_v2  ;;  %v6828_v24 = vld [vmem:[#allocation2 + $0x170] sm:$0xff] }
 0x2a0   : > { %v3360_v49 = vpop.f32.mrf.mxu3  ;;  %v6661_v2 = vld [vmem:[#allocation10 + $0x60] sm:$0xf] }
 0x2a1   : > { %3021 = vmatmul.bf16.gmra.mxu2 %v6803_v20  ;;  %v6927_v20 = vld [vmem:[#allocation10 + $0x64] sm:$0xf] }
 0x2a2   : > { %3778 = vmatmul.bf16.gmra.mxu0 %v6851_v33 }
 0x2a4   : > { %v2982_v22 = vpop.f32.mrf.mxu2 }
 0x2a5   : > { %v2649_v18 = vpop.f32.mrf.mxu1  ;;  %v3094_v25 = vadd.f32 %v2982_v22, %v8252_v8 }
 0x2a6   : > { %v8343_v56 = vadd.f32 %v2649_v18, %v8273_v57  ;;  %v6666_v18 = vor.u32 %v6927_v20, %v6663_v11 }
 0x2a7   : > { %v3472_v12 = vadd.f32 %v3360_v49, %v3094_v25  ;;  %v3741_v36 = vpop.f32.mrf.mxu0 }
 0x2a8   : > { %4122 = vmatmul.bf16.gmra.mxu1 %v6868_v39  ;;  %v3362_v30 = vpop.f32.mrf.mxu3  ;;  %5003 = vmatpush.bf16.msrb.mxu0 %v6666_v18  ;;  %v6871_v18 = vld [vmem:[#allocation2 + $0xc0] sm:$0xff] }
 0x2a9   : > { %v8347_v62 = vadd.f32 %v3739_v6, %v3472_v12  ;;  %v6928_v6 = vld [vmem:[#allocation10 + $0x64] sm:$0xf0] }
 0x2aa   : > { %v6662_v33 = vor.u32 %v6928_v6, %v6661_v2  ;;  %v6806_v2 = vld [vmem:[#allocation2 + $0xf0] sm:$0xff]  ;;  %v6854_v6 = vld [vmem:[#allocation2 + $0x68] sm:$0xff] }
 0x2ac   : > { %v2984_v31 = vpop.f32.mrf.mxu2  ;;  %4914 = vmatpush.bf16.msrb.mxu3 %v6662_v33 }
 0x2ad   : > { %v2651_v14 = vpop.f32.mrf.mxu1  ;;  %v3095_v50 = vadd.f32 %v2984_v31, %v2717_v48  ;;  %3404 = vmatmul.bf16.gmra.mxu3 %v6828_v24  ;;  %v6853_v48 = vld [vmem:[#allocation2 + $0x60] sm:$0xff] }
 0x2ae   : > { %v8351_v45 = vadd.f32 %v2651_v14, %v8278_v15  ;;  %v6869_v15 = vld [vmem:[#allocation2 + $0xb0] sm:$0xff]  ;;  %v6908_v14 = vld [vmem:[#allocation9 + $0x208] sm:$0xff] }
 0x2af   : > { %v3473_v8 = vadd.f32 %v3362_v30, %v3095_v50  ;;  %v3744_v57 = vpop.f32.mrf.mxu0  ;;  %v6805_v30 = vld [vmem:[#allocation2 + $0xe8] sm:$0xff]  ;;  %4494 = vmatpush.bf16.msrb.mxu2 %v6908_v14 }
 0x2b0   : > { %v3365_v61 = vpop.f32.mrf.mxu3  ;;  %v6831_v14 = vld [vmem:[#allocation2 + $0x188] sm:$0xff] }
 0x2b1   : > { %3026 = vmatmul.bf16.gmra.mxu2 %v6804_v60  ;;  %v8353_v47 = vadd.f32 %v3741_v36, %v3473_v8 }
 0x2b2   : > { %3783 = vmatmul.bf16.gmra.mxu0 %v6852_v54 }
 0x2b4   : > { %v2987_v0 = vpop.f32.mrf.mxu2 }
 0x2b5   : > { %v2654_v38 = vpop.f32.mrf.mxu1  ;;  %v3096_v4 = vadd.f32 %v2987_v0, %v8261_v28 }
 0x2b6   : > { %v8356_v10 = vadd.f32 %v2654_v38, %v8283_v34  ;;  %v6830_v38 = vld [vmem:[#allocation2 + $0x180] sm:$0xff] }
 0x2b7   : > { %v3474_v7 = vadd.f32 %v3365_v61, %v3096_v4  ;;  %v3746_v19 = vpop.f32.mrf.mxu0 }
 0x2b8   : > { %4127 = vmatmul.bf16.gmra.mxu1 %v6869_v15  ;;  %v3367_v49 = vpop.f32.mrf.mxu3 }
 0x2b9   : > { %v8359_v22 = vadd.f32 %v3744_v57, %v3474_v7 }
 0x2bc   : > { %v2989_v25 = vpop.f32.mrf.mxu2 }
 0x2bd   : > { %v2656_v34 = vpop.f32.mrf.mxu1  ;;  %v3097_v39 = vadd.f32 %v2989_v25, %v8266_v44  ;;  %3409 = vmatmul.bf16.gmra.mxu3 %v6829_v52  ;;  %v6870_v44 = vld [vmem:[#allocation2 + $0xb8] sm:$0xff]  ;;  %v6926_v25 = vld [vmem:[#allocation10 + $0x54] sm:$0xf0] }
 0x2be   : > { %v8362_v28 = vadd.f32 %v2656_v34, %v8288_v35  ;;  %v6653_v34 = vld [vmem:[#allocation10 + $0x50] sm:$0xf] }
 0x2bf   : > { %v3475_v12 = vadd.f32 %v3367_v49, %v3097_v39  ;;  %v3749_v36 = vpop.f32.mrf.mxu0  ;;  %v6925_v39 = vld [vmem:[#allocation10 + $0x54] sm:$0xf] }
 0x2c0   : > { %v3370_v27 = vpop.f32.mrf.mxu3 }
 0x2c1   : > { %3031 = vmatmul.bf16.gmra.mxu2 %v6805_v30  ;;  %v8365_v24 = vadd.f32 %v3746_v19, %v3475_v12  ;;  %v6655_v30 = vld [vmem:[#allocation10 + $0x58] sm:$0xf0] }
 0x2c2   : > { %3788 = vmatmul.bf16.gmra.mxu0 %v6853_v48 }
 0x2c4   : > { %v2992_v50 = vpop.f32.mrf.mxu2 }
 0x2c5   : > { %v2659_v31 = vpop.f32.mrf.mxu1  ;;  %v3098_v35 = vadd.f32 %v2992_v50, %v8271_v1 }
 0x2c6   : > { %v8368_v8 = vadd.f32 %v2659_v31, %v8293_v13 }
 0x2c7   : > { %v3476_v57 = vadd.f32 %v3370_v27, %v3098_v35  ;;  %v3751_v60 = vpop.f32.mrf.mxu0  ;;  %v6658_v27 = vor.u32 %v6925_v39, %v6655_v30  ;;  %v6873_v30 = vld [vmem:[#allocation2 + $0xd0] sm:$0xff] }
 0x2c8   : > { %4132 = vmatmul.bf16.gmra.mxu1 %v6870_v44  ;;  %v3372_v61 = vpop.f32.mrf.mxu3 }
 0x2c9   : > { %v8371_v54 = vadd.f32 %v3749_v36, %v3476_v57  ;;  %v6654_v36 = vor.u32 %v6926_v25, %v6653_v34  ;;  %5004 = vmatpush.bf16.msrb.mxu0 %v6658_v27  ;;  %v6807_v57 = vld [vmem:[#allocation2 + $0xf8] sm:$0xff] }
 0x2ca   : > { %v6856_v34 = vld [vmem:[#allocation2 + $0x78] sm:$0xff] }
 0x2cb   : > { %4915 = vmatpush.bf16.msrb.mxu3 %v6654_v36 }
 0x2cc   : > { %v2994_v4 = vpop.f32.mrf.mxu2 }
 0x2cd   : > { %v2661_v0 = vpop.f32.mrf.mxu1  ;;  %v3099_v7 = vadd.f32 %v2994_v4, %v8276_v5  ;;  %3414 = vmatmul.bf16.gmra.mxu3 %v6830_v38 }
 0x2ce   : > { %v8374_v15 = vadd.f32 %v2661_v0, %v8298_v63  ;;  %v6907_v0 = vld [vmem:[#allocation9 + $0x200] sm:$0xff] }
 0x2cf   : > { %v3477_v13 = vadd.f32 %v3372_v61, %v3099_v7  ;;  %v3754_v19 = vpop.f32.mrf.mxu0  ;;  %v6855_v61 = vld [vmem:[#allocation2 + $0x70] sm:$0xff]  ;;  %4495 = vmatpush.bf16.msrb.mxu2 %v6907_v0 }
 0x2d0   : > { %v3375_v1 = vpop.f32.mrf.mxu3 }
 0x2d1   : > { %3036 = vmatmul.bf16.gmra.mxu2 %v6806_v2  ;;  %v8377_v20 = vadd.f32 %v3751_v60, %v3477_v13 }
 0x2d2   : > { %3793 = vmatmul.bf16.gmra.mxu0 %v6854_v6 }
 0x2d4   : > { %v2997_v33 = vpop.f32.mrf.mxu2 }
 0x2d5   : > { %v2664_v49 = vpop.f32.mrf.mxu1  ;;  %v3100_v63 = vadd.f32 %v2997_v33, %v8281_v16 }
 0x2d6   : > { %v8380_v11 = vadd.f32 %v2664_v49, %v8303_v3  ;;  %v6832_v49 = vld [vmem:[#allocation2 + $0x190] sm:$0xff] }
 0x2d7   : > { %v3478_v52 = vadd.f32 %v3375_v1, %v3100_v63  ;;  %v3756_v5 = vpop.f32.mrf.mxu0 }
 0x2d8   : > { %4137 = vmatmul.bf16.gmra.mxu1 %v6871_v18  ;;  %v3377_v12 = vpop.f32.mrf.mxu3 }
 0x2d9   : > { %v8383_v48 = vadd.f32 %v3754_v19, %v3478_v52  ;;  %v6808_v52 = vld [vmem:[#allocation2 + $0x100] sm:$0xff] }
 0x2dc   : > { %v2999_v31 = vpop.f32.mrf.mxu2 }
 0x2dd   : > { %v2666_v3 = vpop.f32.mrf.mxu1  ;;  %v3101_v50 = vadd.f32 %v2999_v31, %v8286_v40  ;;  %3419 = vmatmul.bf16.gmra.mxu3 %v6831_v14  ;;  %v6872_v40 = vld [vmem:[#allocation2 + $0xc8] sm:$0xff]  ;;  %v6924_v14 = vld [vmem:[#allocation10 + $0x44] sm:$0xf0] }
 0x2de   : > { %v8386_v16 = vadd.f32 %v2666_v3, %v8308_v32  ;;  %v6923_v3 = vld [vmem:[#allocation10 + $0x44] sm:$0xf] }
 0x2df   : > { %v3479_v35 = vadd.f32 %v3377_v12, %v3101_v50  ;;  %v3759_v44 = vpop.f32.mrf.mxu0 }
 0x2e0   : > { %v3380_v60 = vpop.f32.mrf.mxu3 }
 0x2e1   : > { %3041 = vmatmul.bf16.gmra.mxu2 %v6807_v57  ;;  %v8389_v38 = vadd.f32 %v3756_v5, %v3479_v35  ;;  %v6647_v35 = vld [vmem:[#allocation10 + $0x48] sm:$0xf0] }
 0x2e2   : > { %3798 = vmatmul.bf16.gmra.mxu0 %v6855_v61 }
 0x2e4   : > { %v3002_v7 = vpop.f32.mrf.mxu2 }
 0x2e5   : > { %v2669_v4 = vpop.f32.mrf.mxu1  ;;  %v3102_v32 = vadd.f32 %v3002_v7, %v8291_v42  ;;  %v6809_v7 = vld [vmem:[#allocation2 + $0x108] sm:$0xff] }
 0x2e6   : > { %v8392_v13 = vadd.f32 %v2669_v4, %v8313_v58 }
 0x2e7   : > { %v3480_v19 = vadd.f32 %v3380_v60, %v3102_v32  ;;  %v8395_v2 = vpop.f32.mrf.mxu0 }
 0x2e8   : > { %4142 = vmatmul.bf16.gmra.mxu1 %v6872_v40  ;;  %v8397_v1 = vpop.f32.mrf.mxu3  ;;  %v6857_v40 = vld [vmem:[#allocation2 + $0x80] sm:$0xff] }
 0x2e9   : > { %v8399_v6 = vadd.f32 %v3759_v44, %v3480_v19  ;;  %v6650_v44 = vor.u32 %v6923_v3, %v6647_v35 }
 0x2eb   : > { %5005 = vmatpush.bf16.msrb.mxu0 %v6650_v44  ;;  %v6875_v44 = vld [vmem:[#allocation2 + $0xe0] sm:$0xff] }
 0x2ec   : > { %v3004_v63 = vpop.f32.mrf.mxu2 }
 0x2ed   : > { %v2671_v33 = vpop.f32.mrf.mxu1  ;;  %v8405_v58 = vadd.f32 %v3004_v63, %v8296_v59  ;;  %3424 = vmatmul.bf16.gmra.mxu3 %v6832_v49  ;;  %v6645_v59 = vld [vmem:[#allocation10 + $0x40] sm:$0xf] }
 0x2ee   : > { %v8402_v18 = vadd.f32 %v2671_v33, %v8318_v29  ;;  %v6646_v50 = vor.u32 %v6924_v14, %v6645_v59 }
 0x2ef   : > { %v3764_v42 = vpop.f32.mrf.mxu0 }
 0x2f0   : > { %v3385_v5 = vpop.f32.mrf.mxu3  ;;  %4916 = vmatpush.bf16.msrb.mxu3 %v6646_v50 }
 0x2f1   : > { %3046 = vmatmul.bf16.gmra.mxu2 %v6808_v52 }
 0x2f2   : > { %3803 = vmatmul.bf16.gmra.mxu0 %v6856_v34  ;;  %v6834_v34 = vld [vmem:[#allocation2 + $0x1a0] sm:$0xff] }
 0x2f4   : > { %v3007_v39 = vpop.f32.mrf.mxu2 }
 0x2f5   : > { %v2674_v25 = vpop.f32.mrf.mxu1  ;;  %v3104_v36 = vadd.f32 %v3007_v39, %v8301_v21 }
 0x2f6   : > { %v8408_v12 = vadd.f32 %v2674_v25, %v8323_v17  ;;  %v6833_v17 = vld [vmem:[#allocation2 + $0x198] sm:$0xff] }
 0x2f7   : > { %v3482_v29 = vadd.f32 %v3385_v5, %v3104_v36  ;;  %v8411_v27 = vpop.f32.mrf.mxu0 }
 0x2f8   : > { %4147 = vmatmul.bf16.gmra.mxu1 %v6873_v30  ;;  %v8413_v31 = vpop.f32.mrf.mxu3 }
 0x2f9   : > { %v8415_v57 = vadd.f32 %v3764_v42, %v3482_v29  ;;  %v6874_v42 = vld [vmem:[#allocation2 + $0xd8] sm:$0xff]  ;;  %v6810_v29 = vld [vmem:[#allocation2 + $0x110] sm:$0xff] }
 0x2fc   : > { %v3009_v21 = vpop.f32.mrf.mxu2 }
 0x2fd   : > { %v2676_v60 = vpop.f32.mrf.mxu1  ;;  %v8421_v0 = vadd.f32 %v3009_v21, %v8306_v23  ;;  %3429 = vmatmul.bf16.gmra.mxu3 %v6833_v17  ;;  %v6921_v21 = vld [vmem:[#allocation10 + $0x34] sm:$0xf] }
 0x2fe   : > { %v8418_v61 = vadd.f32 %v2676_v60, %v8328_v43  ;;  %v6922_v60 = vld [vmem:[#allocation10 + $0x34] sm:$0xf0] }
 0x2ff   : > { %v3769_v4 = vpop.f32.mrf.mxu0 }
 0x300   : > { %v3390_v32 = vpop.f32.mrf.mxu3 }
 0x301   : > { %3051 = vmatmul.bf16.gmra.mxu2 %v6809_v7 }
 0x302   : > { %3808 = vmatmul.bf16.gmra.mxu0 %v6857_v40 }
 0x304   : > { %v3012_v49 = vpop.f32.mrf.mxu2 }
 0x305   : > { %v2679_v19 = vpop.f32.mrf.mxu1  ;;  %v3106_v63 = vadd.f32 %v3012_v49, %v8311_v46  ;;  %v6858_v46 = vld [vmem:[#allocation2 + $0x88] sm:$0xff] }
 0x306   : > { %v8424_v33 = vadd.f32 %v2679_v19, %v8333_v53 }
 0x307   : > { %v3484_v43 = vadd.f32 %v3390_v32, %v3106_v63  ;;  %v8427_v52 = vpop.f32.mrf.mxu0  ;;  %v6639_v32 = vld [vmem:[#allocation10 + $0x38] sm:$0xf0] }
 0x308   : > { %4152 = vmatmul.bf16.gmra.mxu1 %v6874_v42  ;;  %v8429_v23 = vpop.f32.mrf.mxu3  ;;  %v6642_v40 = vor.u32 %v6921_v21, %v6639_v32 }
 0x309   : > { %v8431_v5 = vadd.f32 %v3769_v4, %v3484_v43  ;;  %v6891_v43 = vld [vmem:[#allocation2 + $0x130] sm:$0xff] }
 0x30a   : > { %5006 = vmatpush.bf16.msrb.mxu0 %v6642_v40  ;;  %v6877_v40 = vld [vmem:[#allocation2 + $0xf0] sm:$0xff] }
 0x30c   : > { %v3014_v39 = vpop.f32.mrf.mxu2 }
 0x30d   : > { %v2681_v25 = vpop.f32.mrf.mxu1  ;;  %v8437_v53 = vadd.f32 %v3014_v39, %v8316_v55  ;;  %3434 = vmatmul.bf16.gmra.mxu3 %v6834_v34  ;;  %v6637_v55 = vld [vmem:[#allocation10 + $0x30] sm:$0xf] }
 0x30e   : > { %v8434_v36 = vadd.f32 %v2681_v25, %v8338_v51  ;;  %v6638_v7 = vor.u32 %v6922_v60, %v6637_v55  ;;  %v6892_v55 = vld [vmem:[#allocation2 + $0x138] sm:$0xff] }
 0x30f   : > { %v3774_v30 = vpop.f32.mrf.mxu0 }
 0x310   : > { %v3395_v59 = vpop.f32.mrf.mxu3  ;;  %4917 = vmatpush.bf16.msrb.mxu3 %v6638_v7 }
 0x311   : > { %3056 = vmatmul.bf16.gmra.mxu2 %v6810_v29  ;;  %v6876_v29 = vld [vmem:[#allocation2 + $0xe8] sm:$0xff] }
 0x312   : > { %3813 = vmatmul.bf16.gmra.mxu0 %v6858_v46 }
 0x314   : > { %v3017_v3 = vpop.f32.mrf.mxu2 }
 0x315   : > { %v4118_v14 = vpop.f32.mrf.mxu1  ;;  %v3108_v35 = vadd.f32 %v3017_v3, %v8321_v9 }
 0x316   : > { %v8440_v50 = vadd.f32 %v4118_v14, %v8347_v62 }
 0x317   : > { %v3486_v51 = vadd.f32 %v3395_v59, %v3108_v35  ;;  %v8443_v17 = vpop.f32.mrf.mxu0 }
 0x318   : > { %4157 = vmatmul.bf16.gmra.mxu1 %v6875_v44  ;;  %v8445_v4 = vpop.f32.mrf.mxu3 }
 0x319   : > { %v8447_v19 = vadd.f32 %v3774_v30, %v3486_v51 }
 0x31c   : > { %v3019_v49 = vpop.f32.mrf.mxu2 }
 0x31d   : > { %v4120_v62 = vpop.f32.mrf.mxu1  ;;  %v8453_v63 = vadd.f32 %v3019_v49, %v8326_v26 }
 0x31e   : > { %v8450_v9 = vadd.f32 %v4120_v62, %v8353_v47 }
 0x31f   : > { %v3779_v42 = vpop.f32.mrf.mxu0 }
 0x320   : > { %v3400_v34 = vpop.f32.mrf.mxu3 }
 0x321   : > { %4496 = vmatmul.bf16.vlgmr.msrb.gmra.mxu2 %v6891_v43 }
 0x324   : > { %v3022_v39 = vpop.f32.mrf.mxu2 }
 0x325   : > { %v4123_v25 = vpop.f32.mrf.mxu1  ;;  %v3110_v30 = vadd.f32 %v3022_v39, %v8331_v41 }
 0x326   : > { %v8456_v46 = vadd.f32 %v4123_v25, %v8359_v22  ;;  %v6631_v25 = vld [vmem:[#allocation10 + $0x28] sm:$0xf0] }
 0x327   : > { %v3488_v59 = vadd.f32 %v3400_v34, %v3110_v30  ;;  %v8459_v14 = vpop.f32.mrf.mxu0 }
 0x328   : > { %4162 = vmatmul.bf16.gmra.mxu1 %v6876_v29  ;;  %v8461_v47 = vpop.f32.mrf.mxu3 }
 0x329   : > { %v8463_v26 = vadd.f32 %v3779_v42, %v3488_v59  ;;  %v6920_v42 = vld [vmem:[#allocation10 + $0x24] sm:$0xf0] }
 0x32c   : > { %v3024_v35 = vpop.f32.mrf.mxu2 }
 0x32d   : > { %v4125_v3 = vpop.f32.mrf.mxu1  ;;  %v8469_v51 = vadd.f32 %v3024_v35, %v8336_v37  ;;  %v6919_v37 = vld [vmem:[#allocation10 + $0x24] sm:$0xf]  ;;  %v6893_v35 = vld [vmem:[#allocation2 + $0x140] sm:$0xff] }
 0x32e   : > { %v8466_v44 = vadd.f32 %v4125_v3, %v8365_v24  ;;  %v6629_v24 = vld [vmem:[#allocation10 + $0x20] sm:$0xf]  ;;  %v6634_v39 = vor.u32 %v6919_v37, %v6631_v25  ;;  %v6894_v25 = vld [vmem:[#allocation2 + $0x148] sm:$0xff] }
 0x32f   : > { %v3784_v22 = vpop.f32.mrf.mxu0  ;;  %v6630_v34 = vor.u32 %v6920_v42, %v6629_v24 }
 0x330   : > { %v3405_v41 = vpop.f32.mrf.mxu3  ;;  %5007 = vmatpush.bf16.msrb.mxu0 %v6634_v39 }
 0x331   : > { %4501 = vmatmul.bf16.gmra.mxu2 %v6892_v55  ;;  %4918 = vmatpush.bf16.msrb.mxu3 %v6630_v34 }
 0x334   : > { %v3027_v21 = vpop.f32.mrf.mxu2 }
 0x335   : > { %v4128_v60 = vpop.f32.mrf.mxu1  ;;  %v3112_v32 = vadd.f32 %v3027_v21, %v8343_v56 }
 0x336   : > { %v8472_v7 = vadd.f32 %v4128_v60, %v8371_v54 }
 0x337   : > { %v3490_v62 = vadd.f32 %v3405_v41, %v3112_v32  ;;  %v8475_v49 = vpop.f32.mrf.mxu0  ;;  %v6878_v32 = vld [vmem:[#allocation2 + $0xf8] sm:$0xff] }
 0x338   : > { %4167 = vmatmul.bf16.gmra.mxu1 %v6877_v40  ;;  %v8477_v43 = vpop.f32.mrf.mxu3 }
 0x339   : > { %v8479_v30 = vadd.f32 %v3784_v22, %v3490_v62 }
 0x33c   : > { %v3029_v29 = vpop.f32.mrf.mxu2 }
 0x33d   : > { %v4130_v54 = vpop.f32.mrf.mxu1  ;;  %v8485_v59 = vadd.f32 %v3029_v29, %v8351_v45  ;;  %v6879_v29 = vld [vmem:[#allocation2 + $0x100] sm:$0xff] }
 0x33e   : > { %v8482_v56 = vadd.f32 %v4130_v54, %v8377_v20 }
 0x33f   : > { %v3789_v3 = vpop.f32.mrf.mxu0 }
 0x340   : > { %v3410_v55 = vpop.f32.mrf.mxu3 }
 0x341   : > { %4506 = vmatmul.bf16.gmra.mxu2 %v6893_v35 }
 0x344   : > { %v3032_v60 = vpop.f32.mrf.mxu2 }
 0x345   : > { %v4133_v41 = vpop.f32.mrf.mxu1  ;;  %v3114_v22 = vadd.f32 %v3032_v60, %v8356_v10  ;;  %v6917_v60 = vld [vmem:[#allocation10 + $0x14] sm:$0xf] }
 0x346   : > { %v8488_v21 = vadd.f32 %v4133_v41, %v8383_v48  ;;  %v6918_v41 = vld [vmem:[#allocation10 + $0x14] sm:$0xf0] }
 0x347   : > { %v3492_v40 = vadd.f32 %v3410_v55, %v3114_v22  ;;  %v8491_v62 = vpop.f32.mrf.mxu0 }
 0x348   : > { %4172 = vmatmul.bf16.gmra.mxu1 %v6878_v32  ;;  %v8493_v20 = vpop.f32.mrf.mxu3 }
 0x349   : > { %v8495_v45 = vadd.f32 %v3789_v3, %v3492_v40  ;;  %v6621_v3 = vld [vmem:[#allocation10 + $0x10] sm:$0xf] }
 0x34a   : > { %v6622_v22 = vor.u32 %v6918_v41, %v6621_v3 }
 0x34c   : > { %v3034_v42 = vpop.f32.mrf.mxu2  ;;  %4919 = vmatpush.bf16.msrb.mxu3 %v6622_v22 }
 0x34d   : > { %v4135_v24 = vpop.f32.mrf.mxu1  ;;  %v8501_v34 = vadd.f32 %v3034_v42, %v8362_v28  ;;  %v6623_v28 = vld [vmem:[#allocation10 + $0x18] sm:$0xf0] }
 0x34e   : > { %v8498_v37 = vadd.f32 %v4135_v24, %v8389_v38  ;;  %v6626_v32 = vor.u32 %v6917_v60, %v6623_v28  ;;  %v6896_v60 = vld [vmem:[#allocation2 + $0x158] sm:$0xff] }
 0x34f   : > { %v3794_v48 = vpop.f32.mrf.mxu0 }
 0x350   : > { %v3415_v10 = vpop.f32.mrf.mxu3  ;;  %5008 = vmatpush.bf16.msrb.mxu0 %v6626_v32 }
 0x351   : > { %4511 = vmatmul.bf16.gmra.mxu2 %v6894_v25  ;;  %v6895_v25 = vld [vmem:[#allocation2 + $0x150] sm:$0xff] }
 0x354   : > { %v3037_v39 = vpop.f32.mrf.mxu2 }
 0x355   : > { %v3116_v54 = vadd.f32 %v3037_v39, %v8368_v8 }
 0x357   : > { %v3494_v35 = vadd.f32 %v3415_v10, %v3116_v54  ;;  %v8504_v55 = vpop.f32.mrf.mxu0 }
 0x358   : > { %9154 = vst [vmem:[#allocation21_spill] sm:$0xff] %v8504_v55  ;;  %4177 = vmatmul.bf16.gmra.mxu1 %v6879_v29  ;;  %v8506_v38 = vpop.f32.mrf.mxu3  ;;  %v6880_v29 = vld [vmem:[#allocation2 + $0x108] sm:$0xff] }
 0x359   : > { %v8508_v40 = vadd.f32 %v3794_v48, %v3494_v35 }
 0x35c   : > { %v3039_v24 = vpop.f32.mrf.mxu2 }
 0x35d   : > { %v8511_v8 = vadd.f32 %v3039_v24, %v8374_v15  ;;  %v6881_v24 = vld [vmem:[#allocation2 + $0x110] sm:$0xff] }
 0x35f   : > { %v3799_v42 = vpop.f32.mrf.mxu0 }
 0x360   : > { %v3420_v10 = vpop.f32.mrf.mxu3 }
 0x361   : > { %4516 = vmatmul.bf16.gmra.mxu2 %v6895_v25  ;;  %v6613_v25 = vld [vmem:[#allocation10] sm:$0xf] }
 0x364   : > { %v3042_v39 = vpop.f32.mrf.mxu2 }
 0x365   : > { %v3118_v54 = vadd.f32 %v3042_v39, %v8380_v11  ;;  %v6915_v39 = vld [vmem:[#allocation10 + $0x4] sm:$0xf] }
 0x367   : > { %v3496_v55 = vadd.f32 %v3420_v10, %v3118_v54  ;;  %v8514_v3 = vpop.f32.mrf.mxu0  ;;  %v6916_v10 = vld [vmem:[#allocation10 + $0x4] sm:$0xf0] }
 0x368   : > { %9155 = vst [vmem:[#allocation22_spill] sm:$0xff] %v8514_v3  ;;  %4182 = vmatmul.bf16.gmra.mxu1 %v6880_v29  ;;  %v8516_v48 = vpop.f32.mrf.mxu3  ;;  %v6614_v54 = vor.u32 %v6916_v10, %v6613_v25  ;;  %v6615_v29 = vld [vmem:[#allocation10 + $0x8] sm:$0xf0] }
 0x369   : > { %v8518_v35 = vadd.f32 %v3799_v42, %v3496_v55  ;;  %v6618_v55 = vor.u32 %v6915_v39, %v6615_v29  ;;  %v6882_v25 = vld [vmem:[#allocation2 + $0x118] sm:$0xff]  ;;  %v6898_v29 = vld [vmem:[#allocation2 + $0x168] sm:$0xff] }
 0x36a   : > { %4920 = vmatpush.bf16.msrb.mxu3 %v6614_v54 }
 0x36b   : > { %9156 = vst [vmem:[#allocation23_spill] sm:$0xff] %v8518_v35  ;;  %5009 = vmatpush.bf16.msrb.mxu0 %v6618_v55 }
 0x36c   : > { %v3044_v41 = vpop.f32.mrf.mxu2 }
 0x36d   : > { %v8521_v15 = vadd.f32 %v3044_v41, %v8386_v16 }
 0x36f   : > { %v3804_v22 = vpop.f32.mrf.mxu0 }
 0x370   : > { %v3425_v28 = vpop.f32.mrf.mxu3 }
 0x371   : > { %4521 = vmatmul.bf16.gmra.mxu2 %v6896_v60 }
 0x374   : > { %v3047_v32 = vpop.f32.mrf.mxu2 }
 0x375   : > { %v3120_v11 = vadd.f32 %v3047_v32, %v8392_v13  ;;  %v6897_v13 = vld [vmem:[#allocation2 + $0x160] sm:$0xff] }
 0x377   : > { %v3498_v3 = vadd.f32 %v3425_v28, %v3120_v11  ;;  %v8528_v41 = vpop.f32.mrf.mxu0 }
 0x378   : > { %4187 = vmatmul.bf16.gmra.mxu1 %v6881_v24  ;;  %v8524_v42 = vpop.f32.mrf.mxu3  ;;  %9157 = vst [vmem:[#allocation24_spill] sm:$0xff] %v8528_v41 }
 0x379   : > { %v8526_v16 = vadd.f32 %v3804_v22, %v3498_v3 }
 0x37c   : > { %v3049_v60 = vpop.f32.mrf.mxu2 }
 0x37d   : > { %v8531_v35 = vadd.f32 %v3049_v60, %v8402_v18 }
 0x37f   : > { %v3809_v10 = vpop.f32.mrf.mxu0 }
 0x380   : > { %v3430_v32 = vpop.f32.mrf.mxu3 }
 0x381   : > { %4526 = vmatmul.bf16.gmra.mxu2 %v6897_v13 }
 0x384   : > { %v3052_v28 = vpop.f32.mrf.mxu2 }
 0x385   : > { %v3122_v24 = vadd.f32 %v3052_v28, %v8408_v12  ;;  %v6899_v28 = vld [vmem:[#allocation2 + $0x170] sm:$0xff] }
 0x387   : > { %v3500_v11 = vadd.f32 %v3430_v32, %v3122_v24  ;;  %v8541_v18 = vpop.f32.mrf.mxu0 }
 0x388   : > { %4192 = vmatmul.bf16.gmra.mxu1 %v6882_v25  ;;  %v8536_v3 = vpop.f32.mrf.mxu3 }
 0x389   : > { %v8534_v39 = vadd.f32 %v3809_v10, %v3500_v11 }
 0x38c   : > { %v3054_v22 = vpop.f32.mrf.mxu2 }
 0x38d   : > { %v8539_v54 = vadd.f32 %v3054_v22, %v8418_v61 }
 0x38f   : > { %v3814_v41 = vpop.f32.mrf.mxu0 }
 0x390   : > { %v3435_v13 = vpop.f32.mrf.mxu3 }
 0x391   : > { %4531 = vmatmul.bf16.gmra.mxu2 %v6898_v29 }
 0x394   : > { %v3057_v55 = vpop.f32.mrf.mxu2 }
 0x395   : > { %v3124_v60 = vadd.f32 %v3057_v55, %v8424_v33  ;;  %v6900_v55 = vld [vmem:[#allocation2 + $0x178] sm:$0xff] }
 0x397   : > { %v3502_v12 = vadd.f32 %v3435_v13, %v3124_v60  ;;  %v4138_v13 = vpop.f32.mrf.mxu1 }
 0x399   : > { %v8544_v32 = vadd.f32 %v3814_v41, %v3502_v12 }
 0x39b   : > { %9158 = vst [vmem:[#allocation25_spill] sm:$0xff] %v8544_v32 }
 0x39c   : > { %v3059_v25 = vpop.f32.mrf.mxu2 }
 0x39d   : > { %v8547_v10 = vadd.f32 %v3059_v25, %v8434_v36 }
 0x3a1   : > { %4536 = vmatmul.bf16.gmra.mxu2 %v6899_v28  ;;  %v4140_v28 = vpop.f32.mrf.mxu1 }
 0x3a4   : > { %v4497_v61 = vpop.f32.mrf.mxu2 }
 0x3a5   : > { %v4609_v24 = vadd.f32 %v4497_v61, %v8440_v50 }
 0x3a7   : > { %v4737_v22 = vmul.f32 0.2, %v4609_v24  ;;  %vm4705_vm2 = vcmp.ge.f32.partialorder %v4609_v24, 0.0 }
 0x3a9   : > { %v4769_v60 = vsel %vm4705_vm2, %v4609_v24, %v4737_v22 }
 0x3ac   : > { %v4499_v11 = vpop.f32.mrf.mxu2 }
 0x3ad   : > { %v4610_v29 = vadd.f32 %v4499_v11, %v8450_v9  ;;  %v6901_v11 = vld [vmem:[#allocation2 + $0x180] sm:$0xff] }
 0x3af   : > { %vm4706_vm3 = vcmp.ge.f32.partialorder %v4610_v29, 0.0  ;;  %v4738_v33 = vmul.f32 0.2, %v4610_v29 }
 0x3b1   : > { %v4770_v41 = vsel %vm4706_vm3, %v4610_v29, %v4738_v33  ;;  %4541 = vmatmul.bf16.gmra.mxu2 %v6900_v55  ;;  %v4143_v55 = vpop.f32.mrf.mxu1 }
 0x3b2   : > { %v4801_v12 = vpack.c.bf16 %v4770_v41, %v4769_v60 }
 0x3b4   : > { %v4502_v36 = vpop.f32.mrf.mxu2  ;;  %4921 = vmatmul.bf16.vlgmr.msrb.gmra.mxu3 %v4801_v12  ;;  %5010 = vmatmul.bf16.vlgmr.msrb.gmra.mxu0 %v4801_v12 }
 0x3b5   : > { %v4611_v25 = vadd.f32 %v4502_v36, %v8456_v46  ;;  %v6902_v36 = vld [vmem:[#allocation2 + $0x188] sm:$0xff] }
 0x3b7   : > { %v4739_v61 = vmul.f32 0.2, %v4611_v25  ;;  %vm4707_vm4 = vcmp.ge.f32.partialorder %v4611_v25, 0.0 }
 0x3b9   : > { %v4771_v24 = vsel %vm4707_vm4, %v4611_v25, %v4739_v61 }
 0x3bc   : > { %v4504_v50 = vpop.f32.mrf.mxu2 }
 0x3bd   : > { %v4612_v32 = vadd.f32 %v4504_v50, %v8466_v44  ;;  %v4145_v50 = vpop.f32.mrf.mxu1 }
 0x3bf   : > { %vm4708_vm5 = vcmp.ge.f32.partialorder %v4612_v32, 0.0  ;;  %v4740_v9 = vmul.f32 0.2, %v4612_v32 }
 0x3c1   : > { %4546 = vmatmul.bf16.gmra.mxu2 %v6901_v11  ;;  %v4772_v22 = vsel %vm4708_vm5, %v4612_v32, %v4740_v9 }
 0x3c2   : > { %v4802_v29 = vpack.c.bf16 %v4772_v22, %v4771_v24 }
 0x3c4   : > { %v4507_v33 = vpop.f32.mrf.mxu2  ;;  %4926 = vmatmul.bf16.gmra.mxu3 %v4802_v29  ;;  %5015 = vmatmul.bf16.gmra.mxu0 %v4802_v29 }
 0x3c5   : > { %v4613_v60 = vadd.f32 %v4507_v33, %v8472_v7  ;;  %v4148_v24 = vpop.f32.mrf.mxu1  ;;  %v6903_v33 = vld [vmem:[#allocation2 + $0x190] sm:$0xff] }
 0x3c7   : > { %v4741_v41 = vmul.f32 0.2, %v4613_v60  ;;  %vm4709_vm12 = vcmp.ge.f32.partialorder %v4613_v60, 0.0 }
 0x3c9   : > { %v4773_v11 = vsel %vm4709_vm12, %v4613_v60, %v4741_v41 }
 0x3cc   : > { %v4509_v46 = vpop.f32.mrf.mxu2 }
 0x3cd   : > { %v4614_v12 = vadd.f32 %v4509_v46, %v8482_v56  ;;  %v4150_v41 = vpop.f32.mrf.mxu1 }
 0x3cf   : > { %vm4710_vm13 = vcmp.ge.f32.partialorder %v4614_v12, 0.0  ;;  %v4742_v44 = vmul.f32 0.2, %v4614_v12 }
 0x3d1   : > { %4551 = vmatmul.bf16.gmra.mxu2 %v6902_v36  ;;  %v4774_v25 = vsel %vm4710_vm13, %v4614_v12, %v4742_v44  ;;  %v4238_v44 = vadd.f32 %v4138_v13, %v8399_v6 }
 0x3d2   : > { %v4803_v32 = vpack.c.bf16 %v4774_v25, %v4773_v11 }
 0x3d4   : > { %v4512_v61 = vpop.f32.mrf.mxu2  ;;  %4931 = vmatmul.bf16.gmra.mxu3 %v4803_v32  ;;  %5020 = vmatmul.bf16.gmra.mxu0 %v4803_v32 }
 0x3d5   : > { %v4615_v9 = vadd.f32 %v4512_v61, %v8488_v21  ;;  %v3481_v21 = vadd.f32 %v8397_v1, %v8405_v58  ;;  %v4240_v1 = vadd.f32 %v4143_v55, %v8415_v57  ;;  %v4242_v57 = vadd.f32 %v4148_v24, %v8431_v5 }
 0x3d7   : > { %v4743_v22 = vmul.f32 0.2, %v4615_v9  ;;  %vm4711_vm14 = vcmp.ge.f32.partialorder %v4615_v9, 0.0  ;;  %v3860_v11 = vadd.f32 %v8395_v2, %v3481_v21  ;;  %v3483_v2 = vadd.f32 %v8413_v31, %v8421_v0 }
 0x3d9   : > { %v4775_v46 = vsel %vm4711_vm14, %v4615_v9, %v4743_v22  ;;  %v4239_v25 = vadd.f32 %v4140_v28, %v3860_v11  ;;  %v6904_v22 = vld [vmem:[#allocation2 + $0x198] sm:$0xff]  ;;  %v3862_v58 = vadd.f32 %v8411_v27, %v3483_v2  ;;  %v6905_v11 = vld [vmem:[#allocation2 + $0x1a0] sm:$0xff]  ;;  %v3485_v27 = vadd.f32 %v8429_v23, %v8437_v53 }
 0x3db   : > { %v4241_v28 = vadd.f32 %v4145_v50, %v3862_v58  ;;  %v3864_v0 = vadd.f32 %v8427_v52, %v3485_v27  ;;  %v3487_v52 = vadd.f32 %v8445_v4, %v8453_v63 }
 0x3dc   : > { %v4514_v7 = vpop.f32.mrf.mxu2 }
 0x3dd   : > { %v4616_v29 = vadd.f32 %v4514_v7, %v8498_v37  ;;  %v4243_v50 = vadd.f32 %v4150_v41, %v3864_v0  ;;  %v3866_v53 = vadd.f32 %v8443_v17, %v3487_v52  ;;  %v3489_v17 = vadd.f32 %v8461_v47, %v8469_v51  ;;  %v5181_v47 = vld [vmem:[#allocation12 + $0x70] sm:$0xff] }
 0x3df   : > { %vm4712_vm15 = vcmp.ge.f32.partialorder %v4616_v29, 0.0  ;;  %v4744_v56 = vmul.f32 0.2, %v4616_v29 }
 0x3e1   : > { %4556 = vmatmul.bf16.gmra.mxu2 %v6903_v33  ;;  %v4776_v36 = vsel %vm4712_vm15, %v4616_v29, %v4744_v56  ;;  %v4153_v33 = vpop.f32.mrf.mxu1 }
 0x3e2   : > { %v4804_v60 = vpack.c.bf16 %v4776_v36, %v4775_v46  ;;  %v4244_v5 = vadd.f32 %v4153_v33, %v8447_v19  ;;  %v3868_v33 = vadd.f32 %v8459_v14, %v3489_v17 }
 0x3e4   : > { %v4517_v12 = vpop.f32.mrf.mxu2  ;;  %4936 = vmatmul.bf16.gmra.mxu3 %v4804_v60  ;;  %5025 = vmatmul.bf16.gmra.mxu0 %v4804_v60 }
 0x3e5   : > { %v4617_v37 = vadd.f32 %v4517_v12, %v4238_v44 }
 0x3e7   : > { %v4745_v61 = vmul.f32 0.2, %v4617_v37  ;;  %vm4713_vm0 = vcmp.ge.f32.partialorder %v4617_v37, 0.0 }
 0x3e9   : > { %v4777_v29 = vsel %vm4713_vm0, %v4617_v37, %v4745_v61  ;;  %v4155_v6 = vpop.f32.mrf.mxu1 }
 0x3ea   : > { %v4245_v41 = vadd.f32 %v4155_v6, %v3866_v53  ;;  %v8577_v6 = vpop.f32.mrf.mxu0 }
 0x3ec   : > { %v4519_v32 = vpop.f32.mrf.mxu2 }
 0x3ed   : > { %v4618_v7 = vadd.f32 %v4519_v32, %v4239_v25 }
 0x3ef   : > { %vm4714_vm1 = vcmp.ge.f32.partialorder %v4618_v7, 0.0  ;;  %v4746_v9 = vmul.f32 0.2, %v4618_v7 }
 0x3f1   : > { %4561 = vmatmul.bf16.gmra.mxu2 %v6904_v22  ;;  %v4778_v56 = vsel %vm4714_vm1, %v4618_v7, %v4746_v9  ;;  %v4158_v32 = vpop.f32.mrf.mxu1 }
 0x3f2   : > { %v4805_v46 = vpack.c.bf16 %v4778_v56, %v4777_v29  ;;  %v6906_v56 = vld [vmem:[#allocation2 + $0x1a8] sm:$0xff]  ;;  %v4246_v19 = vadd.f32 %v4158_v32, %v8463_v26 }
 0x3f4   : > { %v4522_v36 = vpop.f32.mrf.mxu2  ;;  %4941 = vmatmul.bf16.gmra.mxu3 %v4805_v46  ;;  %5030 = vmatmul.bf16.gmra.mxu0 %v4805_v46 }
 0x3f5   : > { %v4619_v13 = vadd.f32 %v4522_v36, %v4240_v1 }
 0x3f7   : > { %v4747_v12 = vmul.f32 0.2, %v4619_v13  ;;  %vm4715_vm6 = vcmp.ge.f32.partialorder %v4619_v13, 0.0 }
 0x3f9   : > { %v4779_v37 = vsel %vm4715_vm6, %v4619_v13, %v4747_v12  ;;  %v4160_v7 = vpop.f32.mrf.mxu1 }
 0x3fa   : > { %v4247_v27 = vadd.f32 %v4160_v7, %v3868_v33  ;;  %v3491_v7 = vadd.f32 %v8477_v43, %v8485_v59  ;;  %v5196_v43 = vld [vmem:[#allocation12 + $0xe8] sm:$0xff] }
 0x3fc   : > { %v4524_v60 = vpop.f32.mrf.mxu2 }
 0x3fd   : > { %v4620_v21 = vadd.f32 %v4524_v60, %v4241_v28 }
 0x3ff   : > { %vm4716_vm7 = vcmp.ge.f32.partialorder %v4620_v21, 0.0  ;;  %v4748_v44 = vmul.f32 0.2, %v4620_v21 }
 0x401   : > { %4566 = vmatmul.bf16.gmra.mxu2 %v6905_v11  ;;  %v4780_v25 = vsel %vm4716_vm7, %v4620_v21, %v4748_v44  ;;  %v4163_v23 = vpop.f32.mrf.mxu1  ;;  %v5198_v21 = vld [vmem:[#allocation12 + $0xf8] sm:$0xff] }
 0x402   : > { %v4806_v61 = vpack.c.bf16 %v4780_v25, %v4779_v37  ;;  %5220 = vmatpush.msra.mxu2 %v5198_v21  ;;  %v5182_v11 = vld [vmem:[#allocation12 + $0x78] sm:$0xff]  ;;  %v3493_v21 = vadd.f32 %v8493_v20, %v8501_v34  ;;  %v5195_v20 = vld [vmem:[#allocation12 + $0xe0] sm:$0xff] }
 0x403   : > { %5200 = vmatpush.msra.mxu1 %v5182_v11 }
 0x404   : > { %v4527_v31 = vpop.f32.mrf.mxu2  ;;  %4946 = vmatmul.bf16.gmra.mxu3 %v4806_v61  ;;  %5035 = vmatmul.bf16.gmra.mxu0 %v4806_v61 }
 0x405   : > { %v4621_v55 = vadd.f32 %v4527_v31, %v4242_v57  ;;  %5201 = vmatpush.msra.mxu1 %v5181_v47 }
 0x407   : > { %v4749_v22 = vmul.f32 0.2, %v4621_v55  ;;  %vm4717_vm8 = vcmp.ge.f32.partialorder %v4621_v55, 0.0 }
 0x409   : > { %v4781_v36 = vsel %vm4717_vm8, %v4621_v55, %v4749_v22  ;;  %v4165_v44 = vpop.f32.mrf.mxu1  ;;  %v5197_v22 = vld [vmem:[#allocation12 + $0xf0] sm:$0xff] }
 0x40a   : > { %5221 = vmatpush.msra.mxu2 %v5197_v22  ;;  %v3495_v22 = vadd.f32 %v8506_v38, %v8511_v8  ;;  %v5194_v38 = vld [vmem:[#allocation12 + $0xd8] sm:$0xff] }
 0x40c   : > { %v4529_v9 = vpop.f32.mrf.mxu2  ;;  %5222 = vmatpush.msra.mxu2 %v5196_v43 }
 0x40d   : > { %v4622_v29 = vadd.f32 %v4529_v9, %v4243_v50  ;;  %v8579_v50 = vpop.f32.mrf.mxu3 }
 0x40e   : > { %5223 = vmatpush.msra.mxu2 %v5195_v20  ;;  %v5177_v20 = vld [vmem:[#allocation12 + $0x50] sm:$0xff] }
 0x40f   : > { %vm4718_vm9 = vcmp.ge.f32.partialorder %v4622_v29, 0.0  ;;  %v4750_v46 = vmul.f32 0.2, %v4622_v29 }
 0x410   : > { %5224 = vmatpush.msra.mxu2 %v5194_v38 }
 0x411   : > { %4571 = vmatmul.bf16.gmra.mxu2 %v6906_v56  ;;  %v4782_v2 = vsel %vm4718_vm9, %v4622_v29, %v4750_v46  ;;  %v4168_v31 = vpop.f32.mrf.mxu1  ;;  %v4248_v46 = vadd.f32 %v4163_v23, %v8479_v30  ;;  %v5180_v30 = vld [vmem:[#allocation12 + $0x68] sm:$0xff] }
 0x412   : > { %v4807_v1 = vpack.c.bf16 %v4782_v2, %v4781_v36  ;;  %v3870_v2 = vadd.f32 %v8475_v49, %v3491_v7  ;;  %5202 = vmatpush.msra.mxu1 %v5180_v30  ;;  %v3497_v30 = vadd.f32 %v8516_v48, %v8521_v15  ;;  %v5193_v48 = vld [vmem:[#allocation12 + $0xd0] sm:$0xff] }
 0x413   : > { %5225 = vmatpush.msra.mxu2 %v5193_v48 }
 0x414   : > { %v4532_v58 = vpop.f32.mrf.mxu2  ;;  %4951 = vmatmul.bf16.gmra.mxu3 %v4807_v1  ;;  %5040 = vmatmul.bf16.gmra.mxu0 %v4807_v1  ;;  %v4249_v52 = vadd.f32 %v4165_v44, %v3870_v2  ;;  %v4250_v44 = vadd.f32 %v4168_v31, %v8495_v45  ;;  %v5179_v45 = vld [vmem:[#allocation12 + $0x60] sm:$0xff] }
 0x415   : > { %v4623_v24 = vadd.f32 %v4532_v58, %v4244_v5  ;;  %5203 = vmatpush.msra.mxu1 %v5179_v45 }
 0x417   : > { %v4751_v28 = vmul.f32 0.2, %v4623_v24  ;;  %vm4719_vm10 = vcmp.ge.f32.partialorder %v4623_v24, 0.0 }
 0x419   : > { %v4783_v37 = vsel %vm4719_vm10, %v4623_v24, %v4751_v28  ;;  %v4170_v29 = vpop.f32.mrf.mxu1 }
 0x41c   : > { %v4534_v13 = vpop.f32.mrf.mxu2 }
 0x41d   : > { %v4624_v60 = vadd.f32 %v4534_v13, %v4245_v41 }
 0x41f   : > { %vm4720_vm11 = vcmp.ge.f32.partialorder %v4624_v60, 0.0  ;;  %v4752_v12 = vmul.f32 0.2, %v4624_v60 }
 0x421   : > { %v4784_v25 = vsel %vm4720_vm11, %v4624_v60, %v4752_v12  ;;  %v4173_v41 = vpop.f32.mrf.mxu1 }
 0x422   : > { %v4808_v4 = vpack.c.bf16 %v4784_v25, %v4783_v37  ;;  %v3872_v25 = vadd.f32 %v8491_v62, %v3493_v21  ;;  %v4252_v47 = vadd.f32 %v4173_v41, %v8508_v40  ;;  %v5178_v40 = vld [vmem:[#allocation12 + $0x58] sm:$0xff]  ;;  %v9162_v21 = vld [vmem:[#allocation22_spill] sm:$0xff] }
 0x423   : > { %5204 = vmatpush.msra.mxu1 %v5178_v40 }
 0x424   : > { %v4537_v63 = vpop.f32.mrf.mxu2  ;;  %4956 = vmatmul.bf16.gmra.mxu3 %v4808_v4  ;;  %5045 = vmatmul.bf16.gmra.mxu0 %v4808_v4  ;;  %v4251_v17 = vadd.f32 %v4170_v29, %v3872_v25 }
 0x425   : > { %v4625_v61 = vadd.f32 %v4537_v63, %v4246_v19  ;;  %5205 = vmatpush.msra.mxu1 %v5177_v20 }
 0x427   : > { %v4753_v0 = vmul.f32 0.2, %v4625_v61  ;;  %vm4721_vm2 = vcmp.ge.f32.partialorder %v4625_v61, 0.0 }
 0x429   : > { %v4785_v26 = vsel %vm4721_vm2, %v4625_v61, %v4753_v0  ;;  %v4175_v37 = vpop.f32.mrf.mxu1  ;;  %vm5251_vm2 = vcmask 130048  }
 0x42c   : > { %v4539_v57 = vpop.f32.mrf.mxu2 }
 0x42d   : > { %v4626_v55 = vadd.f32 %v4539_v57, %v4247_v27 }
 0x42f   : > { %vm4722_vm3 = vcmp.ge.f32.partialorder %v4626_v55, 0.0  ;;  %v4754_v9 = vmul.f32 0.2, %v4626_v55 }
 0x431   : > { %v8581_v51 = vpop.f32.mrf.mxu0  ;;  %v4786_v14 = vsel %vm4722_vm3, %v4626_v55, %v4754_v9  ;;  %v4178_v62 = vpop.f32.mrf.mxu1 }
 0x432   : > { %v4809_v32 = vpack.c.bf16 %v4786_v14, %v4785_v26  ;;  %v9159_v14 = vld [vmem:[#allocation21_spill] sm:$0xff] }
 0x434   : > { %v4542_v56 = vpop.f32.mrf.mxu2  ;;  %4961 = vmatmul.bf16.gmra.mxu3 %v4809_v32  ;;  %5050 = vmatmul.bf16.gmra.mxu0 %v4809_v32  ;;  %v3874_v32 = vadd.f32 %v9159_v14, %v3495_v22  ;;  %v9164_v14 = vld [vmem:[#allocation24_spill] sm:$0xff] }
 0x435   : > { %v4627_v1 = vadd.f32 %v4542_v56, %v4248_v46 }
 0x436   : > { %v4253_v7 = vadd.f32 %v4175_v37, %v3874_v32 }
 0x437   : > { %v8586_v36 = vpop.f32.mrf.mxu3  ;;  %v4755_v53 = vmul.f32 0.2, %v4627_v1  ;;  %vm4723_vm4 = vcmp.ge.f32.partialorder %v4627_v1, 0.0 }
 0x439   : > { %v8589_v58 = vpop.f32.mrf.mxu0  ;;  %v4787_v23 = vsel %vm4723_vm4, %v4627_v1, %v4755_v53  ;;  %v4180_v46 = vpop.f32.mrf.mxu1 }
 0x43c   : > { %v4544_v5 = vpop.f32.mrf.mxu2 }
 0x43d   : > { %v4628_v24 = vadd.f32 %v4544_v5, %v4249_v52 }
 0x43f   : > { %vm4724_vm5 = vcmp.ge.f32.partialorder %v4628_v24, 0.0  ;;  %v4756_v13 = vmul.f32 0.2, %v4628_v24  ;;  %v8591_v28 = vpop.f32.mrf.mxu3 }
 0x441   : > { %v8593_v59 = vpop.f32.mrf.mxu0  ;;  %v4788_v49 = vsel %vm4724_vm5, %v4628_v24, %v4756_v13 }
 0x442   : > { %v4810_v60 = vpack.c.bf16 %v4788_v49, %v4787_v23  ;;  %v4183_v23 = vpop.f32.mrf.mxu1  ;;  %v9160_v49 = vld [vmem:[#allocation23_spill] sm:$0xff] }
 0x443   : > { %v4256_v22 = vadd.f32 %v4183_v23, %v8526_v16  ;;  %v3501_v23 = vadd.f32 %v8536_v3, %v8539_v54 }
 0x444   : > { %v4547_v12 = vpop.f32.mrf.mxu2  ;;  %4966 = vmatmul.bf16.gmra.mxu3 %v4810_v60  ;;  %5055 = vmatmul.bf16.gmra.mxu0 %v4810_v60  ;;  %v4254_v60 = vadd.f32 %v4178_v62, %v9160_v49 }
 0x445   : > { %v4629_v4 = vadd.f32 %v4547_v12, %v4250_v44  ;;  %v3876_v44 = vadd.f32 %v9162_v21, %v3497_v30  ;;  %v3880_v21 = vadd.f32 %v8541_v18, %v3501_v23  ;;  %v5189_v23 = vld [vmem:[#allocation12 + $0xb0] sm:$0xff] }
 0x447   : > { %v8598_v11 = vpop.f32.mrf.mxu3  ;;  %v4757_v33 = vmul.f32 0.2, %v4629_v4  ;;  %vm4725_vm12 = vcmp.ge.f32.partialorder %v4629_v4, 0.0 }
 0x449   : > { %v8601_v63 = vpop.f32.mrf.mxu0  ;;  %v4789_v31 = vsel %vm4725_vm12, %v4629_v4, %v4757_v33  ;;  %v4255_v4 = vadd.f32 %v4180_v46, %v3876_v44 }
 0x44a   : > { %v4185_v15 = vpop.f32.mrf.mxu1 }
 0x44c   : > { %v4549_v19 = vpop.f32.mrf.mxu2 }
 0x44d   : > { %v4630_v61 = vadd.f32 %v4549_v19, %v4251_v17 }
 0x44f   : > { %vm4726_vm13 = vcmp.ge.f32.partialorder %v4630_v61, 0.0  ;;  %v4758_v27 = vmul.f32 0.2, %v4630_v61  ;;  %v8603_v57 = vpop.f32.mrf.mxu3 }
 0x451   : > { %v8605_v34 = vpop.f32.mrf.mxu0  ;;  %v4790_v0 = vsel %vm4726_vm13, %v4630_v61, %v4758_v27 }
 0x452   : > { %v4811_v55 = vpack.c.bf16 %v4790_v0, %v4789_v31  ;;  %v4188_v46 = vpop.f32.mrf.mxu1 }
 0x453   : > { %v4258_v49 = vadd.f32 %v4188_v46, %v8534_v39  ;;  %v5175_v39 = vld [vmem:[#allocation12 + $0x40] sm:$0xff] }
 0x454   : > { %v4552_v9 = vpop.f32.mrf.mxu2  ;;  %4971 = vmatmul.bf16.gmra.mxu3 %v4811_v55  ;;  %5060 = vmatmul.bf16.gmra.mxu0 %v4811_v55 }
 0x455   : > { %v4631_v29 = vadd.f32 %v4552_v9, %v4252_v47  ;;  %v3499_v9 = vadd.f32 %v8524_v42, %v8531_v35  ;;  %v5192_v35 = vld [vmem:[#allocation12 + $0xc8] sm:$0xff] }
 0x456   : > { %5226 = vmatpush.msra.mxu2 %v5192_v35  ;;  %v5176_v42 = vld [vmem:[#allocation12 + $0x48] sm:$0xff] }
 0x457   : > { %v8610_v26 = vpop.f32.mrf.mxu3  ;;  %v4759_v1 = vmul.f32 0.2, %v4631_v29  ;;  %vm4727_vm14 = vcmp.ge.f32.partialorder %v4631_v29, 0.0  ;;  %v3878_v32 = vadd.f32 %v9164_v14, %v3499_v9  ;;  %5206 = vmatpush.msra.mxu1 %v5176_v42 }
 0x459   : > { %v8613_v56 = vpop.f32.mrf.mxu0  ;;  %v4791_v24 = vsel %vm4727_vm14, %v4631_v29, %v4759_v1  ;;  %5207 = vmatpush.msra.mxu1 %v5175_v39 }
 0x45c   : > { %v4554_v2 = vpop.f32.mrf.mxu2 }
 0x45d   : > { %v4632_v52 = vadd.f32 %v4554_v2, %v4253_v7  ;;  %v4257_v2 = vadd.f32 %v4185_v15, %v3878_v32 }
 0x45f   : > { %vm4728_vm15 = vcmp.ge.f32.partialorder %v4632_v52, 0.0  ;;  %v4760_v5 = vmul.f32 0.2, %v4632_v52  ;;  %v8615_v53 = vpop.f32.mrf.mxu3 }
 0x461   : > { %v8617_v8 = vpop.f32.mrf.mxu0  ;;  %v4792_v41 = vsel %vm4728_vm15, %v4632_v52, %v4760_v5 }
 0x462   : > { %v4812_v13 = vpack.c.bf16 %v4792_v41, %v4791_v24 }
 0x464   : > { %v4557_v43 = vpop.f32.mrf.mxu2  ;;  %4976 = vmatmul.bf16.gmra.mxu3 %v4812_v13  ;;  %5065 = vmatmul.bf16.gmra.mxu0 %v4812_v13 }
 0x465   : > { %v4633_v37 = vadd.f32 %v4557_v43, %v4254_v60  ;;  %v4190_v43 = vpop.f32.mrf.mxu1 }
 0x467   : > { %v8622_v12 = vpop.f32.mrf.mxu3  ;;  %v4761_v19 = vmul.f32 0.2, %v4633_v37  ;;  %vm4729_vm0 = vcmp.ge.f32.partialorder %v4633_v37, 0.0 }
 0x468   : > { %9161 = vst [vmem:[#allocation21_spill] sm:$0xff] %v8622_v12 }
 0x469   : > { %v8625_v25 = vpop.f32.mrf.mxu0  ;;  %v4793_v31 = vsel %vm4729_vm0, %v4633_v37, %v4761_v19 }
 0x46c   : > { %v4559_v17 = vpop.f32.mrf.mxu2 }
 0x46d   : > { %v4634_v33 = vadd.f32 %v4559_v17, %v4255_v4  ;;  %v5191_v4 = vld [vmem:[#allocation12 + $0xc0] sm:$0xff]  ;;  %v4259_v17 = vadd.f32 %v4190_v43, %v3880_v21  ;;  %v4193_v48 = vpop.f32.mrf.mxu1  ;;  %v5173_v21 = vld [vmem:[#allocation12 + $0x30] sm:$0xff] }
 0x46e   : > { %5227 = vmatpush.msra.mxu2 %v5191_v4 }
 0x46f   : > { %vm4730_vm1 = vcmp.ge.f32.partialorder %v4634_v33, 0.0  ;;  %v4762_v61 = vmul.f32 0.2, %v4634_v33  ;;  %v8627_v27 = vpop.f32.mrf.mxu3 }
 0x470   : > { %9163 = vst [vmem:[#allocation23_spill] sm:$0xff] %v8627_v27 }
 0x471   : > { %v8629_v45 = vpop.f32.mrf.mxu0  ;;  %v4794_v0 = vsel %vm4730_vm1, %v4634_v33, %v4762_v61 }
 0x472   : > { %v4813_v62 = vpack.c.bf16 %v4794_v0, %v4793_v31 }
 0x474   : > { %v4562_v55 = vpop.f32.mrf.mxu2  ;;  %4981 = vmatmul.bf16.gmra.mxu3 %v4813_v62  ;;  %5070 = vmatmul.bf16.gmra.mxu0 %v4813_v62  ;;  %v3503_v62 = vadd.f32 %v8579_v50, %v8547_v10  ;;  %v5174_v50 = vld [vmem:[#allocation12 + $0x38] sm:$0xff] }
 0x475   : > { %v4635_v29 = vadd.f32 %v4562_v55, %v4256_v22  ;;  %v9166_v55 = vld [vmem:[#allocation25_spill] sm:$0xff]  ;;  %v4195_v14 = vpop.f32.mrf.mxu1  ;;  %5208 = vmatpush.msra.mxu1 %v5174_v50  ;;  %v5169_v50 = vld [vmem:[#allocation12 + $0x10] sm:$0xff] }
 0x476   : > { %v4260_v9 = vadd.f32 %v4193_v48, %v9166_v55  ;;  %v3882_v32 = vadd.f32 %v8577_v6, %v3503_v62 }
 0x477   : > { %v8634_v47 = vpop.f32.mrf.mxu3  ;;  %v4763_v52 = vmul.f32 0.2, %v4635_v29  ;;  %vm4731_vm6 = vcmp.ge.f32.partialorder %v4635_v29, 0.0  ;;  %5209 = vmatpush.msra.mxu1 %v5173_v21 }
 0x479   : > { %v8637_v7 = vpop.f32.mrf.mxu0  ;;  %v4795_v24 = vsel %vm4731_vm6, %v4635_v29, %v4763_v52 }
 0x47c   : > { %v4564_v1 = vpop.f32.mrf.mxu2 }
 0x47d   : > { %v4636_v5 = vadd.f32 %v4564_v1, %v4257_v2  ;;  %v5190_v2 = vld [vmem:[#allocation12 + $0xb8] sm:$0xff]  ;;  %v4261_v1 = vadd.f32 %v4195_v14, %v3882_v32 }
 0x47e   : > { %5228 = vmatpush.msra.mxu2 %v5190_v2  ;;  %v5170_v32 = vld [vmem:[#allocation12 + $0x18] sm:$0xff] }
 0x47f   : > { %vm4732_vm7 = vcmp.ge.f32.partialorder %v4636_v5, 0.0  ;;  %v4764_v38 = vmul.f32 0.2, %v4636_v5  ;;  %v8639_v40 = vpop.f32.mrf.mxu3 }
 0x480   : > { %5229 = vmatpush.msra.mxu2 %v5189_v23 }
 0x481   : > { %v8641_v16 = vpop.f32.mrf.mxu0  ;;  %v4796_v41 = vsel %vm4732_vm7, %v4636_v5, %v4764_v38 }
 0x482   : > { %v4814_v13 = vpack.c.bf16 %v4796_v41, %v4795_v24 }
 0x484   : > { %v4567_v30 = vpop.f32.mrf.mxu2  ;;  %4986 = vmatmul.bf16.gmra.mxu3 %v4814_v13  ;;  %5075 = vmatmul.bf16.gmra.mxu0 %v4814_v13  ;;  %v5243_v13 = vld [vmem:[#allocation13 + $0x10] sm:$0xff] }
 0x485   : > { %v4637_v44 = vadd.f32 %v4567_v30, %v4258_v49  ;;  %5269 = vmatpush.msra.mxu3 %v5243_v13 }
 0x487   : > { %v8646_v60 = vpop.f32.mrf.mxu3  ;;  %v4765_v33 = vmul.f32 0.2, %v4637_v44  ;;  %vm4733_vm8 = vcmp.ge.f32.partialorder %v4637_v44, 0.0 }
 0x489   : > { %v8649_v37 = vpop.f32.mrf.mxu0  ;;  %v4797_v20 = vsel %vm4733_vm8, %v4637_v44, %v4765_v33 }
 0x48c   : > { %v4569_v19 = vpop.f32.mrf.mxu2 }
 0x48d   : > { %v4638_v61 = vadd.f32 %v4569_v19, %v4259_v17  ;;  %v5188_v19 = vld [vmem:[#allocation12 + $0xa8] sm:$0xff] }
 0x48e   : > { %5230 = vmatpush.msra.mxu2 %v5188_v19 }
 0x48f   : > { %vm4734_vm9 = vcmp.ge.f32.partialorder %v4638_v61, 0.0  ;;  %v4766_v15 = vmul.f32 0.2, %v4638_v61  ;;  %v8651_v3 = vpop.f32.mrf.mxu3 }
 0x490   : > { %9165 = vst [vmem:[#allocation22_spill] sm:$0xff] %v8651_v3 }
 0x491   : > { %v8653_v54 = vpop.f32.mrf.mxu0  ;;  %v4798_v18 = vsel %vm4734_vm9, %v4638_v61, %v4766_v15  ;;  %v5172_v61 = vld [vmem:[#allocation12 + $0x28] sm:$0xff] }
 0x492   : > { %v4815_v31 = vpack.c.bf16 %v4798_v18, %v4797_v20  ;;  %5210 = vmatpush.msra.mxu1 %v5172_v61  ;;  %v5187_v20 = vld [vmem:[#allocation12 + $0xa0] sm:$0xff] }
 0x493   : > { %5231 = vmatpush.msra.mxu2 %v5187_v20 }
 0x494   : > { %v4572_v0 = vpop.f32.mrf.mxu2  ;;  %4991 = vmatmul.bf16.gmra.mxu3 %v4815_v31  ;;  %5080 = vmatmul.bf16.gmra.mxu0 %v4815_v31  ;;  %v5171_v31 = vld [vmem:[#allocation12 + $0x20] sm:$0xff] }
 0x495   : > { %v4639_v29 = vadd.f32 %v4572_v0, %v4260_v9  ;;  %5211 = vmatpush.msra.mxu1 %v5171_v31  ;;  %v5186_v9 = vld [vmem:[#allocation12 + $0x98] sm:$0xff] }
 0x496   : > { %5232 = vmatpush.msra.mxu2 %v5186_v9 }
 0x497   : > { %v8658_v22 = vpop.f32.mrf.mxu3  ;;  %v4767_v5 = vmul.f32 0.2, %v4639_v29  ;;  %vm4735_vm10 = vcmp.ge.f32.partialorder %v4639_v29, 0.0  ;;  %5212 = vmatpush.msra.mxu1 %v5170_v32 }
 0x499   : > { %v8661_v46 = vpop.f32.mrf.mxu0  ;;  %v4799_v24 = vsel %vm4735_vm10, %v4639_v29, %v4767_v5  ;;  %v5128_v5 = vadd.f32 %v8589_v58, %v8581_v51  ;;  %5213 = vmatpush.msra.mxu1 %v5169_v50 }
 0x49c   : > { %v4574_v52 = vpop.f32.mrf.mxu2 }
 0x49d   : > { %v4640_v38 = vadd.f32 %v4574_v52, %v4261_v1  ;;  %v5185_v52 = vld [vmem:[#allocation12 + $0x90] sm:$0xff] }
 0x49e   : > { %5233 = vmatpush.msra.mxu2 %v5185_v52  ;;  %v5184_v52 = vld [vmem:[#allocation12 + $0x88] sm:$0xff] }
 0x49f   : > { %vm4736_vm11 = vcmp.ge.f32.partialorder %v4640_v38, 0.0  ;;  %v4768_v35 = vmul.f32 0.2, %v4640_v38  ;;  %v8663_v10 = vpop.f32.mrf.mxu3 }
 0x4a0   : > { %5234 = vmatpush.msra.mxu2 %v5184_v52 }
 0x4a1   : > { %v8665_v42 = vpop.f32.mrf.mxu0  ;;  %v4800_v41 = vsel %vm4736_vm11, %v4640_v38, %v4768_v35  ;;  %v5129_v35 = vadd.f32 %v5128_v5, %v8593_v59 }
 0x4a2   : > { %v4816_v6 = vpack.c.bf16 %v4800_v41, %v4799_v24 }
 0x4a3   : > { %v5130_v41 = vadd.f32 %v5129_v35, %v8601_v63 }
 0x4a4   : > { %4996 = vmatmul.bf16.gmra.mxu3 %v4816_v6  ;;  %5085 = vmatmul.bf16.gmra.mxu0 %v4816_v6  ;;  %v5091_v6 = vadd.f32 %v8591_v28, %v8586_v36 }
 0x4a5   : > { %v5131_v13 = vadd.f32 %v5130_v41, %v8605_v34 }
 0x4a6   : > { %v5092_v23 = vadd.f32 %v5091_v6, %v8598_v11 }
 0x4a7   : > { %v8667_v43 = vpop.f32.mrf.mxu3  ;;  %v5132_v21 = vadd.f32 %v5131_v13, %v8613_v56 }
 0x4a8   : > { %v5093_v61 = vadd.f32 %v5092_v23, %v8603_v57 }
 0x4a9   : > { %v8669_v30 = vpop.f32.mrf.mxu0  ;;  %v5133_v20 = vadd.f32 %v5132_v21, %v8617_v8  ;;  %v5168_v21 = vld [vmem:[#allocation12 + $0x8] sm:$0xff] }
 0x4aa   : > { %v5094_v9 = vadd.f32 %v5093_v61, %v8610_v26  ;;  %5214 = vmatpush.msra.mxu1 %v5168_v21 }
 0x4ab   : > { %v5134_v32 = vadd.f32 %v5133_v20, %v8625_v25 }
 0x4ac   : > { %v5095_v5 = vadd.f32 %v5094_v9, %v8615_v53 }
 0x4ad   : > { %v5135_v35 = vadd.f32 %v5134_v32, %v8629_v45 }
 0x4ae   : > { %v5096_v50 = vadd.f32 %v5095_v5, %v8622_v12 }
 0x4af   : > { %v8671_v49 = vpop.f32.mrf.mxu3  ;;  %v5136_v41 = vadd.f32 %v5135_v35, %v8637_v7 }
 0x4b0   : > { %9167 = vst [vmem:[#allocation24_spill] sm:$0xff] %v8671_v49  ;;  %v5097_v13 = vadd.f32 %v5096_v50, %v8627_v27 }
 0x4b1   : > { %v8673_v44 = vpop.f32.mrf.mxu0  ;;  %v5137_v23 = vadd.f32 %v5136_v41, %v8641_v16 }
 0x4b2   : > { %v5098_v20 = vadd.f32 %v5097_v13, %v8634_v47 }
 0x4b3   : > { %v5138_v9 = vadd.f32 %v5137_v23, %v8649_v37 }
 0x4b4   : > { %v5099_v32 = vadd.f32 %v5098_v20, %v8639_v40 }
 0x4b5   : > { %v5139_v52 = vadd.f32 %v5138_v9, %v8653_v54 }
 0x4b6   : > { %v5100_v5 = vadd.f32 %v5099_v32, %v8646_v60 }
 0x4b7   : > { %v8675_v4 = vpop.f32.mrf.mxu3  ;;  %v5140_v35 = vadd.f32 %v5139_v52, %v8661_v46 }
 0x4b8   : > { %v5101_v50 = vadd.f32 %v5100_v5, %v8651_v3 }
 0x4b9   : > { %v8677_v17 = vpop.f32.mrf.mxu0  ;;  %v5141_v41 = vadd.f32 %v5140_v35, %v8665_v42 }
 0x4ba   : > { %9168 = vst [vmem:[#allocation25_spill] sm:$0xff] %v8677_v17  ;;  %v5102_v13 = vadd.f32 %v5101_v50, %v8658_v22 }
 0x4bb   : > { %v5142_v23 = vadd.f32 %v5141_v41, %v8669_v30 }
 0x4bc   : > { %v5103_v21 = vadd.f32 %v5102_v13, %v8663_v10 }
 0x4bd   : > { %v5143_v20 = vadd.f32 %v5142_v23, %v8673_v44 }
 0x4be   : > { %v5104_v9 = vadd.f32 %v5103_v21, %v8667_v43 }
 0x4bf   : > { %v8679_v33 = vpop.f32.mrf.mxu3  ;;  %v5144_v32 = vadd.f32 %v5143_v20, %v8677_v17 }
 0x4c0   : > { %v5105_v5 = vadd.f32 %v5104_v9, %v8671_v49 }
 0x4c1   : > { %v8681_v48 = vpop.f32.mrf.mxu0 }
 0x4c2   : > { %9169 = vst [vmem:[#allocation26_spill] sm:$0xff] %v8681_v48  ;;  %v5145_v35 = vadd.f32 %v5144_v32, %v8681_v48  ;;  %v5106_v50 = vadd.f32 %v5105_v5, %v8675_v4  ;;  %v5183_v48 = vld [vmem:[#allocation12 + $0x80] sm:$0xff] }
 0x4c3   : > { %5235 = vmatpush.msra.mxu2 %v5183_v48 }
 0x4c4   : > { %v5107_v13 = vadd.f32 %v5106_v50, %v8679_v33 }
 0x4c7   : > { %v8683_v15 = vpop.f32.mrf.mxu3 }
 0x4c8   : > { %v5108_v21 = vadd.f32 %v5107_v13, %v8683_v15 }
 0x4c9   : > { %v8685_v39 = vpop.f32.mrf.mxu0 }
 0x4ca   : > { %v5146_v41 = vadd.f32 %v5145_v35, %v8685_v39 }
 0x4cf   : > { %v8687_v18 = vpop.f32.mrf.mxu3 }
 0x4d0   : > { %v5109_v9 = vadd.f32 %v5108_v21, %v8687_v18 }
 0x4d1   : > { %v8689_v0 = vpop.f32.mrf.mxu0 }
 0x4d2   : > { %v5147_v23 = vadd.f32 %v5146_v41, %v8689_v0 }
 0x4d7   : > { %v8691_v62 = vpop.f32.mrf.mxu3 }
 0x4d8   : > { %v5110_v5 = vadd.f32 %v5109_v9, %v8691_v62 }
 0x4d9   : > { %v8693_v55 = vpop.f32.mrf.mxu0 }
 0x4da   : > { %9170 = vst [vmem:[#allocation27_spill] sm:$0xff] %v8693_v55  ;;  %v5148_v20 = vadd.f32 %v5147_v23, %v8693_v55  ;;  %v5167_v55 = vld [vmem:[#allocation12] sm:$0xff] }
 0x4db   : > { %5215 = vmatpush.msra.mxu1 %v5167_v55 }
 0x4df   : > { %v8695_v14 = vpop.f32.mrf.mxu3 }
 0x4e0   : > { %v5111_v50 = vadd.f32 %v5110_v5, %v8695_v14 }
 0x4e1   : > { %v8697_v29 = vpop.f32.mrf.mxu0 }
 0x4e2   : > { %9171 = vst [vmem:[#allocation28_spill] sm:$0xff] %v8697_v29  ;;  %v5149_v32 = vadd.f32 %v5148_v20, %v8697_v29  ;;  %v5241_v29 = vld [vmem:[#allocation13] sm:$0xff] }
 0x4e3   : > { %5270 = vmatpush.msra.mxu3 %v5241_v29 }
 0x4e7   : > { %v8699_v2 = vpop.f32.mrf.mxu3 }
 0x4e8   : > { %v5112_v13 = vadd.f32 %v5111_v50, %v8699_v2 }
 0x4e9   : > { %v8701_v1 = vpop.f32.mrf.mxu0 }
 0x4ea   : > { %v5150_v35 = vadd.f32 %v5149_v32, %v8701_v1 }
 0x4ef   : > { %v8705_v38 = vpop.f32.mrf.mxu3 }
 0x4f0   : > { %v5113_v20 = vadd.f32 %v5112_v13, %v8705_v38 }
 0x4f1   : > { %v8708_v24 = vpop.f32.mrf.mxu0 }
 0x4f2   : > { %v5151_v41 = vadd.f32 %v5150_v35, %v8708_v24 }
 0x4f7   : > { %v8716_v19 = vpop.f32.mrf.mxu3 }
 0x4f8   : > { %v5114_v32 = vadd.f32 %v5113_v20, %v8716_v19 }
 0x4f9   : > { %v8720_v31 = vpop.f32.mrf.mxu0 }
 0x4fa   : > { %9172 = vst [vmem:[#allocation29_spill] sm:$0xff] %v8720_v31  ;;  %v5152_v23 = vadd.f32 %v5151_v41, %v8720_v31 }
 0x4ff   : > { %v8728_v6 = vpop.f32.mrf.mxu3 }
 0x500   : > { %v5115_v35 = vadd.f32 %v5114_v32, %v8728_v6 }
 0x501   : > { %v8732_v61 = vpop.f32.mrf.mxu0 }
 0x502   : > { %9173 = vst [vmem:[#allocation30_spill] sm:$0xff] %v8732_v61  ;;  %v5153_v48 = vadd.f32 %v5152_v23, %v8732_v61 }
 0x507   : > { %v8740_v12 = vpop.f32.mrf.mxu3 }
 0x508   : > { %9174 = vst [vmem:[#allocation31_spill] sm:$0xff] %v8740_v12  ;;  %v5116_v41 = vadd.f32 %v5115_v35, %v8740_v12 }
 0x509   : > { %v8744_v27 = vpop.f32.mrf.mxu0 }
 0x50a   : > { %9175 = vst [vmem:[#allocation32_spill] sm:$0xff] %v8744_v27  ;;  %v5154_v5 = vadd.f32 %v5153_v48, %v8744_v27 }
 0x50f   : > { %v8752_v52 = vpop.f32.mrf.mxu3 }
 0x510   : > { %9176 = vst [vmem:[#allocation33_spill] sm:$0xff] %v8752_v52  ;;  %v5117_v13 = vadd.f32 %v5116_v41, %v8752_v52 }
 0x511   : > { %v8756_v3 = vpop.f32.mrf.mxu0 }
 0x512   : > { %9177 = vst [vmem:[#allocation34_spill] sm:$0xff] %v8756_v3  ;;  %v5155_v50 = vadd.f32 %v5154_v5, %v8756_v3 }
 0x517   : > { %v8764_v17 = vpop.f32.mrf.mxu3 }
 0x518   : > { %9178 = vst [vmem:[#allocation35_spill] sm:$0xff] %v8764_v17  ;;  %v5118_v29 = vadd.f32 %v5117_v13, %v8764_v17 }
 0x519   : > { %v8768_v49 = vpop.f32.mrf.mxu0 }
 0x51a   : > { %9179 = vst [vmem:[#allocation36_spill] sm:$0xff] %v8768_v49  ;;  %v5156_v55 = vadd.f32 %v5155_v50, %v8768_v49 }
 0x51f   : > { %v8776_v21 = vpop.f32.mrf.mxu3 }
 0x520   : > { %v5119_v48 = vadd.f32 %v5118_v29, %v8776_v21 }
 0x521   : > { %v8780_v9 = vpop.f32.mrf.mxu0 }
 0x522   : > { %9180 = vst [vmem:[#allocation37_spill] sm:$0xff] %v8780_v9  ;;  %v5157_v23 = vadd.f32 %v5156_v55, %v8780_v9 }
 0x527   : > { %v8788_v31 = vpop.f32.mrf.mxu3 }
 0x528   : > { %v5120_v5 = vadd.f32 %v5119_v48, %v8788_v31  ;;  %v5244_v48 = vld [vmem:[#allocation13 + $0x18] sm:$0xff] }
 0x529   : > { %v8792_v61 = vpop.f32.mrf.mxu0  ;;  %5289 = vmatpush.msrb.mxu1 %v5244_v48 }
 0x52a   : > { %9181 = vst [vmem:[#allocation38_spill] sm:$0xff] %v8792_v61  ;;  %v5158_v20 = vadd.f32 %v5157_v23, %v8792_v61 }
 0x52c   : > { %v5159_v32 = vrot.slane %v5158_v20, 4 }
 0x52e   : > { %v5160_v35 = vadd.f32 %v5159_v32, %v5158_v20  ;;  %v5242_v20 = vld [vmem:[#allocation13 + $0x8] sm:$0xff]  ;;  %v5199_v32 = vld [vmem:[%s9117_s5] sm:$0x1] }
 0x52f   : > { %v8798_v3 = vpop.f32.mrf.mxu3  ;;  %5290 = vmatpush.msrb.mxu1 %v5242_v20 }
 0x530   : > { %9182 = vst [vmem:[#allocation39_spill] sm:$0xff] %v8798_v3  ;;  %v5161_v50 = vrot.slane %v5160_v35, 2  ;;  %v5121_v49 = vadd.f32 %v5120_v5, %v8798_v3 }
 0x532   : > { %v5162_v41 = vadd.f32 %v5161_v50, %v5160_v35  ;;  %v5122_v27 = vrot.slane %v5121_v49, 4 }
 0x534   : > { %v5163_v55 = vrot.slane %v5162_v41, 1  ;;  %v5123_v9 = vadd.f32 %v5122_v27, %v5121_v49 }
 0x536   : > { %v5164_v52 = vadd.f32 %v5163_v55, %v5162_v41  ;;  %v5124_v12 = vrot.slane %v5123_v9, 2 }
 0x538   : > { %v5166_v13 = vmul.f32 0.00390625, %v5164_v52  ;;  %v5125_v17 = vadd.f32 %v5124_v12, %v5123_v9  ;;  %v5245_v12 = vld [vmem:[%s9119_s7] sm:$0x3] }
 0x539   : > { %v5247_v41 = vperm.slane %v5245_v12, 0 }
 0x53a   : > { %v5126_v23 = vrot.slane %v5125_v17, 1  ;;  %5236 = vmatmul.f32.vlgmr.msra.gmra.mxu2 %v5166_v13 }
 0x53c   : > { %v5127_v29 = vadd.f32 %v5126_v23, %v5125_v17  ;;  %v5248_v17 = vperm.slane %v5245_v12, 1 }
 0x53e   : > { %v5165_v61 = vmul.f32 0.00390625, %v5127_v29 }
 0x540   : > { %5216 = vmatmul.f32.vlgmr.msra.gmra.mxu1 %v5165_v61 }
 0x5bd   : > { %v5217_v5 = vpop.f32.mrf.mxu1  ;;  %v5237_v27 = vpop.f32.mrf.mxu2 }
 0x5be   : > { %v5218_v35 = vadd.f32 %v5217_v5, %v5199_v32 }
 0x5c0   : > { %v5238_v49 = vadd.f32 %v5237_v27, %v5218_v35 }
 0x5c2   : > { %v5240_v52 = vmax.f32 %v5238_v49, 0.0 }
 0x5c4   : > { %6675 = vmatmul.msk.f32.vlgmr.msra.gmra.mxu3 %vm5251_vm2, %v5240_v52  ;;  %6676 = vmatmul.msk.f32.vlgmr.msrb.gmra.mxu1 %vm5251_vm2, %v5240_v52 }
 0x641   : > { %v5292_v61 = vpop.f32.mrf.mxu1 }
 0x642   : > { %v5293_v9 = vadd.f32 %v5292_v61, %v5248_v17 }
 0x644   : > { %v5296_v50 = vsub.f32 0.0, %v5293_v9 }
 0x646   : > { %v5299_v55 = vmul.f32 1.442695, %v5296_v50 }
 0x647   : > { %v5272_v13 = vpop.f32.mrf.mxu3 }
 0x648   : > { %7347 = vpow2.f32 %v5299_v55  ;;  %v5273_v23 = vadd.f32 %v5272_v13, %v5247_v41 }
 0x64a   : > { %v5295_v29 = vsub.f32 0.0, %v5273_v23 }
 0x64c   : > { %v5297_v48 = vmul.f32 1.442695, %v5295_v29 }
 0x64e   : > { %v7348_v20 = vpop.eup %7347  ;;  %7349 = vpow2.f32 %v5297_v48 }
 0x64f   : > { %v5302_v32 = vadd.f32 1.0, %v7348_v20 }
 0x651   : > { %7351 = vrcp.f32 %v5302_v32  ;;  %v5329_v3 = vand.u32 2147483648, %v5302_v32  ;;  %v5327_v12 = vand.u32 2147483647, %v5302_v32  ;;  %vm5323_vm4 = vweird.f32 %v5302_v32 }
 0x653   : > { %v5330_v50 = vor.u32 1.1754944e-38, %v5329_v3  ;;  %vm5328_vm12 = vcmp.eq.f32.partialorder %v5327_v12, 8.507059e+37  ;;  %v7356_v12 = vld [vmem:[%s7867_s9 + $0x18] sm:$0xff] }
 0x654   : > { %v7350_v5 = vpop.eup %7349 }
 0x655   : > { %v5301_v35 = vadd.f32 1.0, %v7350_v5 }
 0x657   : > { %v7352_v27 = vpop.eup %7351  ;;  %7353 = vrcp.f32 %v5301_v35  ;;  %vm5308_vm14 = vweird.f32 %v5301_v35 }
 0x658   : > { %v5319_v49 = vmul.f32 %v7352_v27, %v5302_v32  ;;  %vm5324_vm3 = vweird.f32 %v7352_v27 }
 0x659   : > { %vm5325_vm5 = vmor %vm5323_vm4, %vm5324_vm3 }
 0x65a   : > { %v5320_v52 = vsub.f32 1.0, %v5319_v49 }
 0x65c   : > { %v5321_v17 = vmul.f32 %v7352_v27, %v5320_v52 }
 0x65d   : > { %v7354_v61 = vpop.eup %7353 }
 0x65e   : > { %v5322_v9 = vadd.f32 %v7352_v27, %v5321_v17  ;;  %v5304_v55 = vmul.f32 %v7354_v61, %v5301_v35  ;;  %vm5309_vm13 = vweird.f32 %v7354_v61 }
 0x65f   : > { %vm8832_vm15 = vmor %vm5308_vm14, %vm5309_vm13 }
 0x660   : > { %v5326_v41 = vsel %vm5325_vm5, %v7352_v27, %v5322_v9  ;;  %v5305_v29 = vsub.f32 1.0, %v5304_v55 }
 0x661   : > { %v5331_v13 = vsel %vm5328_vm12, %v5330_v50, %v5326_v41  ;;  %v7358_v41 = vld [vmem:[%s7867_s9 + $0x38] sm:$0xff] }
 0x662   : > { %v8807_v23 = vperm.slane %v5331_v13, 0  ;;  %v5306_v3 = vmul.f32 %v7354_v61, %v5305_v29  ;;  %v7359_v29 = vld [vmem:[%s7867_s9 + $0x48] sm:$0xff] }
 0x664   : > { %v5336_v48 = vmul.f32 %v8807_v23, %v8581_v51  ;;  %v5338_v20 = vmul.f32 %v8807_v23, %v8589_v58  ;;  %v5340_v32 = vmul.f32 %v8807_v23, %v8593_v59  ;;  %v5342_v5 = vmul.f32 %v8807_v23, %v8601_v63  ;;  %v7355_v59 = vld [vmem:[%s7867_s9 + $0x8] sm:$0xff] }
 0x665   : > { %v5344_v27 = vmul.f32 %v8807_v23, %v8605_v34  ;;  %v5346_v49 = vmul.f32 %v8807_v23, %v8613_v56  ;;  %v5348_v51 = vmul.f32 %v8807_v23, %v8617_v8  ;;  %v5314_v58 = vand.u32 2147483648, %v5301_v35  ;;  %v7357_v63 = vld [vmem:[%s7867_s9 + $0x28] sm:$0xff] }
 0x666   : > { %v5307_v52 = vadd.f32 %v7354_v61, %v5306_v3  ;;  %v5400_v17 = vadd.f32 %v7355_v59, %v5336_v48  ;;  %v5402_v9 = vadd.f32 %v7356_v12, %v5338_v20  ;;  %v5404_v50 = vadd.f32 %v7357_v63, %v5340_v32 }
 0x667   : > { %v5350_v34 = vmul.f32 %v8807_v23, %v8625_v25  ;;  %v5312_v56 = vand.u32 2147483647, %v5301_v35  ;;  %v5406_v8 = vadd.f32 %v7358_v41, %v5342_v5  ;;  %v5352_v55 = vmul.f32 %v8807_v23, %v8629_v45  ;;  %v7360_v35 = vld [vmem:[%s7867_s9 + $0x58] sm:$0xff]  ;;  %v7361_v5 = vld [vmem:[%s7867_s9 + $0x68] sm:$0xff] }
 0x668   : > { %v5408_v48 = vadd.f32 %v7359_v29, %v5344_v27  ;;  %5464 = vst [vmem:[%s8839_s20 + $0x8] sm:$0xff] %v5400_v17  ;;  %v5354_v25 = vmul.f32 %v8807_v23, %v8637_v7  ;;  %v5311_v45 = vsel %vm8832_vm15, %v7354_v61, %v5307_v52  ;;  %v5410_v20 = vadd.f32 %v7360_v35, %v5346_v49  ;;  %v7362_v61 = vld [vmem:[%s7867_s9 + $0x78] sm:$0xff]  ;;  %v7367_v41 = vld [vmem:[%s7867_s9 + $0xc8] sm:$0xff] }
 0x669   : > { %5466 = vst [vmem:[%s8839_s20 + $0x18] sm:$0xff] %v5402_v9  ;;  %v5356_v32 = vmul.f32 %v8807_v23, %v8641_v16  ;;  %v5315_v3 = vor.u32 1.1754944e-38, %v5314_v58  ;;  %v5412_v27 = vadd.f32 %v7361_v5, %v5348_v51  ;;  %v5358_v7 = vmul.f32 %v8807_v23, %v8649_v37  ;;  %v7363_v58 = vld [vmem:[%s7867_s9 + $0x88] sm:$0xff]  ;;  %v7364_v37 = vld [vmem:[%s7867_s9 + $0x98] sm:$0xff]  ;;  %v7372_v5 = vld [vmem:[%s7867_s9] sm:$0xff] }
 0x66a   : > { %5468 = vst [vmem:[%s8839_s20 + $0x28] sm:$0xff] %v5404_v50  ;;  %vm5313_vm0 = vcmp.eq.f32.partialorder %v5312_v56, 8.507059e+37  ;;  %v5414_v52 = vadd.f32 %v7362_v61, %v5350_v34  ;;  %v5360_v49 = vmul.f32 %v8807_v23, %v8653_v54  ;;  %v5416_v59 = vadd.f32 %v7363_v58, %v5352_v55  ;;  %v7365_v54 = vld [vmem:[%s7867_s9 + $0xa8] sm:$0xff]  ;;  %v7374_v61 = vld [vmem:[%s7867_s9 + $0x20] sm:$0xff] }
 0x66b   : > { %5470 = vst [vmem:[%s8839_s20 + $0x38] sm:$0xff] %v5406_v8  ;;  %v5316_v16 = vsel %vm5313_vm0, %v5315_v3, %v5311_v45  ;;  %v5362_v51 = vmul.f32 %v8807_v23, %v8661_v46  ;;  %v5418_v17 = vadd.f32 %v7364_v37, %v5354_v25  ;;  %v5364_v12 = vmul.f32 %v8807_v23, %v8665_v42  ;;  %v7366_v46 = vld [vmem:[%s7867_s9 + $0xb8] sm:$0xff] }
 0x66c   : > { %5472 = vst [vmem:[%s8839_s20 + $0x48] sm:$0xff] %v5408_v48  ;;  %v5420_v9 = vadd.f32 %v7365_v54, %v5356_v32  ;;  %v5366_v63 = vmul.f32 %v8807_v23, %v8669_v30  ;;  %v8870_v50 = vperm.slane %v5316_v16, 0  ;;  %v5422_v34 = vadd.f32 %v7366_v46, %v5358_v7  ;;  %v7368_v8 = vld [vmem:[%s7867_s9 + $0xd8] sm:$0xff]  ;;  %v7369_v30 = vld [vmem:[%s7867_s9 + $0xe8] sm:$0xff] }
 0x66d   : > { %5474 = vst [vmem:[%s8839_s20 + $0x58] sm:$0xff] %v5410_v20  ;;  %v5368_v56 = vmul.f32 %v8807_v23, %v8673_v44  ;;  %v5424_v42 = vadd.f32 %v7367_v41, %v5360_v49  ;;  %v5426_v55 = vadd.f32 %v7368_v8, %v5362_v51  ;;  %v5428_v13 = vadd.f32 %v7369_v30, %v5364_v12  ;;  %v7370_v25 = vld [vmem:[%s7867_s9 + $0xf8] sm:$0xff]  ;;  %v7371_v20 = vld [vmem:[%s7867_s9 + $0x108] sm:$0xff]  ;;  %v7380_v41 = vld [vmem:[%s7867_s9 + $0x80] sm:$0xff] }
 0x66e   : > { %5476 = vst [vmem:[%s8839_s20 + $0x68] sm:$0xff] %v5412_v27  ;;  %v5335_v29 = vmul.f32 %v8870_v50, %v8586_v36  ;;  %v5337_v44 = vmul.f32 %v8870_v50, %v8591_v28  ;;  %v5339_v48 = vmul.f32 %v8870_v50, %v8598_v11  ;;  %v5430_v45 = vadd.f32 %v7370_v25, %v5366_v63  ;;  %v9185_v11 = vld [vmem:[#allocation21_spill] sm:$0xff]  ;;  %v7373_v27 = vld [vmem:[%s7867_s9 + $0x10] sm:$0xff] }
 0x66f   : > { %5478 = vst [vmem:[%s8839_s20 + $0x78] sm:$0xff] %v5414_v52  ;;  %v5341_v35 = vmul.f32 %v8870_v50, %v8603_v57  ;;  %v5432_v32 = vadd.f32 %v7371_v20, %v5368_v56  ;;  %v5343_v36 = vmul.f32 %v8870_v50, %v8610_v26  ;;  %v5345_v28 = vmul.f32 %v8870_v50, %v8615_v53  ;;  %v9186_v26 = vld [vmem:[#allocation23_spill] sm:$0xff] }
 0x670   : > { %5480 = vst [vmem:[%s8839_s20 + $0x88] sm:$0xff] %v5416_v59  ;;  %v5347_v3 = vmul.f32 %v8870_v50, %v9185_v11  ;;  %v5399_v57 = vadd.f32 %v7372_v5, %v5335_v29  ;;  %v5401_v7 = vadd.f32 %v7373_v27, %v5337_v44  ;;  %v5403_v52 = vadd.f32 %v7374_v61, %v5339_v48  ;;  %v7375_v53 = vld [vmem:[%s7867_s9 + $0x30] sm:$0xff]  ;;  %v7376_v59 = vld [vmem:[%s7867_s9 + $0x40] sm:$0xff] }
 0x671   : > { %5482 = vst [vmem:[%s8839_s20 + $0x98] sm:$0xff] %v5418_v17  ;;  %v5349_v49 = vmul.f32 %v8870_v50, %v9186_v26  ;;  %v5405_v16 = vadd.f32 %v7375_v53, %v5341_v35  ;;  %v5351_v58 = vmul.f32 %v8870_v50, %v8634_v47  ;;  %v5407_v51 = vadd.f32 %v7376_v59, %v5343_v36  ;;  %v7377_v17 = vld [vmem:[%s7867_s9 + $0x50] sm:$0xff]  ;;  %v9187_v47 = vld [vmem:[#allocation22_spill] sm:$0xff]  ;;  %v9189_v36 = vld [vmem:[#allocation25_spill] sm:$0xff] }
 0x672   : > { %5484 = vst [vmem:[%s8839_s20 + $0xa8] sm:$0xff] %v5420_v9  ;;  %v5353_v37 = vmul.f32 %v8870_v50, %v8639_v40  ;;  %v5409_v12 = vadd.f32 %v7377_v17, %v5345_v28  ;;  %v5355_v54 = vmul.f32 %v8870_v50, %v8646_v60  ;;  %v7378_v9 = vld [vmem:[%s7867_s9 + $0x60] sm:$0xff]  ;;  %v5357_v46 = vmul.f32 %v8870_v50, %v9187_v47  ;;  %v7381_v8 = vld [vmem:[%s7867_s9 + $0x90] sm:$0xff]  ;;  %v7390_v53 = vld [vmem:[%s7867_s9 + $0x118] sm:$0xff] }
 0x673   : > { %5486 = vst [vmem:[%s8839_s20 + $0xb8] sm:$0xff] %v5422_v34  ;;  %v5411_v63 = vadd.f32 %v7378_v9, %v5347_v3  ;;  %v7379_v34 = vld [vmem:[%s7867_s9 + $0x70] sm:$0xff]  ;;  %v5359_v40 = vmul.f32 %v8870_v50, %v8658_v22  ;;  %v5361_v60 = vmul.f32 %v8870_v50, %v8663_v10  ;;  %v5363_v30 = vmul.f32 %v8870_v50, %v8667_v43  ;;  %v9188_v22 = vld [vmem:[#allocation24_spill] sm:$0xff]  ;;  %v7386_v11 = vld [vmem:[%s7867_s9 + $0xe0] sm:$0xff] }
 0x674   : > { %5488 = vst [vmem:[%s8839_s20 + $0xc8] sm:$0xff] %v5424_v42  ;;  %v5413_v56 = vadd.f32 %v7379_v34, %v5349_v49  ;;  %v5415_v42 = vadd.f32 %v7380_v41, %v5351_v58  ;;  %v5365_v44 = vmul.f32 %v8870_v50, %v9188_v22  ;;  %v7383_v48 = vld [vmem:[%s7867_s9 + $0xb0] sm:$0xff]  ;;  %v5367_v10 = vmul.f32 %v8870_v50, %v8675_v4  ;;  %v7391_v59 = vld [vmem:[%s7867_s9 + $0x120] sm:$0xff] }
 0x675   : > { %5490 = vst [vmem:[%s8839_s20 + $0xd8] sm:$0xff] %v5426_v55  ;;  %v5417_v55 = vadd.f32 %v7381_v8, %v5353_v37  ;;  %v5421_v25 = vadd.f32 %v7383_v48, %v5357_v46  ;;  %v5369_v43 = vmul.f32 %v8870_v50, %v8679_v33  ;;  %v7385_v20 = vld [vmem:[%s7867_s9 + $0xd0] sm:$0xff]  ;;  %v5370_v28 = vmul.f32 %v8807_v23, %v9189_v36  ;;  %v9190_v33 = vld [vmem:[#allocation26_spill] sm:$0xff]  ;;  %v7395_v46 = vld [vmem:[%s7867_s9 + $0x140] sm:$0xff] }
 0x676   : > { %5492 = vst [vmem:[%s8839_s20 + $0xe8] sm:$0xff] %v5428_v13  ;;  %v7382_v13 = vld [vmem:[%s7867_s9 + $0xa0] sm:$0xff]  ;;  %v5427_v3 = vadd.f32 %v7386_v11, %v5363_v30  ;;  %v5371_v4 = vmul.f32 %v8870_v50, %v8683_v15  ;;  %v7387_v5 = vld [vmem:[%s7867_s9 + $0xf0] sm:$0xff]  ;;  %v5372_v27 = vmul.f32 %v8807_v23, %v9190_v33  ;;  %v5374_v15 = vmul.f32 %v8807_v23, %v8685_v39  ;;  %v7392_v37 = vld [vmem:[%s7867_s9 + $0x128] sm:$0xff] }
 0x677   : > { %5494 = vst [vmem:[%s8839_s20 + $0xf8] sm:$0xff] %v5430_v45  ;;  %v5419_v29 = vadd.f32 %v7382_v13, %v5355_v54  ;;  %v7384_v45 = vld [vmem:[%s7867_s9 + $0xc0] sm:$0xff]  ;;  %v7389_v26 = vld [vmem:[%s7867_s9 + $0x110] sm:$0xff]  ;;  %v5375_v58 = vmul.f32 %v8870_v50, %v8691_v62  ;;  %v5377_v39 = vmul.f32 %v8870_v50, %v8695_v14  ;;  %v9192_v14 = vld [vmem:[#allocation28_spill] sm:$0xff]  ;;  %v5383_v13 = vmul.f32 %v8870_v50, %v8716_v19 }
 0x678   : > { %5496 = vst [vmem:[%s8839_s20 + $0x108] sm:$0xff] %v5432_v32  ;;  %v5423_v35 = vadd.f32 %v7384_v45, %v5359_v40  ;;  %v5425_v32 = vadd.f32 %v7385_v20, %v5361_v60  ;;  %v5433_v49 = vadd.f32 %v7389_v26, %v5369_v43  ;;  %v5436_v17 = vadd.f32 %v7392_v37, %v5372_v27  ;;  %v9191_v62 = vld [vmem:[#allocation27_spill] sm:$0xff]  ;;  %v7396_v40 = vld [vmem:[%s7867_s9 + $0x148] sm:$0xff]  ;;  %v9193_v19 = vld [vmem:[#allocation29_spill] sm:$0xff] }
 0x679   : > { %5463 = vst [vmem:[%s8839_s20] sm:$0xff] %v5399_v57  ;;  %v5429_v57 = vadd.f32 %v7387_v5, %v5365_v44  ;;  %v5378_v9 = vmul.f32 %v8807_v23, %v9191_v62  ;;  %v5439_v34 = vadd.f32 %v7395_v46, %v5375_v58  ;;  %v7397_v60 = vld [vmem:[%s7867_s9 + $0x150] sm:$0xff]  ;;  %v7400_v44 = vld [vmem:[%s7867_s9 + $0x168] sm:$0xff]  ;;  %v5386_v45 = vmul.f32 %v8807_v23, %v9193_v19  ;;  %v9197_v27 = vld [vmem:[#allocation32_spill] sm:$0xff] }
 0x67a   : > { %5465 = vst [vmem:[%s8839_s20 + $0x10] sm:$0xff] %v5401_v7  ;;  %v7388_v7 = vld [vmem:[%s7867_s9 + $0x100] sm:$0xff]  ;;  %v5441_v8 = vadd.f32 %v7397_v60, %v5377_v39  ;;  %v7404_v11 = vld [vmem:[%s7867_s9 + $0x188] sm:$0xff]  ;;  %v9198_v26 = vld [vmem:[#allocation35_spill] sm:$0xff] }
 0x67b   : > { %5467 = vst [vmem:[%s8839_s20 + $0x20] sm:$0xff] %v5403_v52  ;;  %v5431_v61 = vadd.f32 %v7388_v7, %v5367_v10  ;;  %v5373_v52 = vmul.f32 %v8870_v50, %v8687_v18  ;;  %v5376_v18 = vmul.f32 %v8807_v23, %v8689_v0  ;;  %v5379_v0 = vmul.f32 %v8870_v50, %v8699_v2  ;;  %v7409_v37 = vld [vmem:[%s7867_s9 + $0x1b0] sm:$0xff]  ;;  %v9200_v39 = vld [vmem:[#allocation36_spill] sm:$0xff]  ;;  %v7412_v46 = vld [vmem:[%s7867_s9 + $0x1c8] sm:$0xff] }
 0x67c   : > { %5469 = vst [vmem:[%s8839_s20 + $0x30] sm:$0xff] %v5405_v16  ;;  %v5434_v16 = vadd.f32 %v7390_v53, %v5370_v28  ;;  %v5382_v2 = vmul.f32 %v8807_v23, %v8701_v1  ;;  %v5385_v1 = vmul.f32 %v8870_v50, %v8728_v6  ;;  %v9195_v6 = vld [vmem:[#allocation30_spill] sm:$0xff]  ;;  %v5390_v7 = vmul.f32 %v8807_v23, %v9197_v27  ;;  %v7414_v60 = vld [vmem:[%s7867_s9 + $0x1d8] sm:$0xff] }
 0x67d   : > { %5471 = vst [vmem:[%s8839_s20 + $0x40] sm:$0xff] %v5407_v51  ;;  %v5435_v51 = vadd.f32 %v7391_v59, %v5371_v4  ;;  %v5440_v41 = vadd.f32 %v7396_v40, %v5376_v18  ;;  %v5388_v28 = vmul.f32 %v8807_v23, %v9195_v6  ;;  %v9196_v4 = vld [vmem:[#allocation33_spill] sm:$0xff]  ;;  %v7408_v59 = vld [vmem:[%s7867_s9 + $0x1a8] sm:$0xff]  ;;  %v5393_v18 = vmul.f32 %v8870_v50, %v8776_v21  ;;  %v7413_v40 = vld [vmem:[%s7867_s9 + $0x1d0] sm:$0xff] }
 0x67e   : > { %5473 = vst [vmem:[%s8839_s20 + $0x50] sm:$0xff] %v5409_v12  ;;  %v7393_v12 = vld [vmem:[%s7867_s9 + $0x130] sm:$0xff]  ;;  %v5389_v5 = vmul.f32 %v8870_v50, %v9196_v4 }
 0x67f   : > { %5475 = vst [vmem:[%s8839_s20 + $0x60] sm:$0xff] %v5411_v63  ;;  %v5437_v54 = vadd.f32 %v7393_v12, %v5373_v52  ;;  %v7394_v63 = vld [vmem:[%s7867_s9 + $0x138] sm:$0xff]  ;;  %v5394_v12 = vmul.f32 %v8807_v23, %v9200_v39 }
 0x680   : > { %5477 = vst [vmem:[%s8839_s20 + $0x70] sm:$0xff] %v5413_v56  ;;  %v5438_v47 = vadd.f32 %v7394_v63, %v5374_v15  ;;  %v5380_v56 = vmul.f32 %v8807_v23, %v9192_v14  ;;  %v7407_v15 = vld [vmem:[%s7867_s9 + $0x1a0] sm:$0xff]  ;;  %v9202_v14 = vld [vmem:[#allocation39_spill] sm:$0xff] }
 0x681   : > { %5479 = vst [vmem:[%s8839_s20 + $0x80] sm:$0xff] %v5415_v42  ;;  %v5381_v42 = vmul.f32 %v8870_v50, %v8705_v38  ;;  %v5384_v38 = vmul.f32 %v8807_v23, %v8708_v24  ;;  %v9194_v24 = vld [vmem:[#allocation31_spill] sm:$0xff]  ;;  %v7411_v63 = vld [vmem:[%s7867_s9 + $0x1c0] sm:$0xff] }
 0x682   : > { %5481 = vst [vmem:[%s8839_s20 + $0x90] sm:$0xff] %v5417_v55  ;;  %v7398_v55 = vld [vmem:[%s7867_s9 + $0x158] sm:$0xff]  ;;  %v5444_v48 = vadd.f32 %v7400_v44, %v5380_v56  ;;  %v5387_v20 = vmul.f32 %v8870_v50, %v9194_v24  ;;  %v5397_v56 = vmul.f32 %v8870_v50, %v9202_v14 }
 0x683   : > { %5483 = vst [vmem:[%s8839_s20 + $0xa0] sm:$0xff] %v5419_v29  ;;  %v5442_v30 = vadd.f32 %v7398_v55, %v5378_v9  ;;  %v7399_v29 = vld [vmem:[%s7867_s9 + $0x160] sm:$0xff]  ;;  %v5395_v9 = vmul.f32 %v8870_v50, %v8788_v31  ;;  %v5457_v31 = vadd.f32 %v7413_v40, %v5393_v18  ;;  %v7416_v55 = vld [vmem:[%s7867_s9 + $0x1e8] sm:$0xff] }
 0x684   : > { %5485 = vst [vmem:[%s8839_s20 + $0xb0] sm:$0xff] %v5421_v25  ;;  %v5443_v22 = vadd.f32 %v7399_v29, %v5379_v0  ;;  %v7401_v25 = vld [vmem:[%s7867_s9 + $0x170] sm:$0xff]  ;;  %v5451_v53 = vadd.f32 %v7407_v15, %v5387_v20 }
 0x685   : > { %5487 = vst [vmem:[%s8839_s20 + $0xc0] sm:$0xff] %v5423_v35  ;;  %v5445_v10 = vadd.f32 %v7401_v25, %v5381_v42  ;;  %v7402_v35 = vld [vmem:[%s7867_s9 + $0x178] sm:$0xff] }
 0x686   : > { %5489 = vst [vmem:[%s8839_s20 + $0xd0] sm:$0xff] %v5425_v32  ;;  %v5446_v43 = vadd.f32 %v7402_v35, %v5382_v2  ;;  %v7403_v32 = vld [vmem:[%s7867_s9 + $0x180] sm:$0xff] }
 0x687   : > { %5491 = vst [vmem:[%s8839_s20 + $0xe0] sm:$0xff] %v5427_v3  ;;  %v5447_v36 = vadd.f32 %v7403_v32, %v5383_v13  ;;  %v5448_v3 = vadd.f32 %v7404_v11, %v5384_v38  ;;  %v7415_v2 = vld [vmem:[%s7867_s9 + $0x1e0] sm:$0xff]  ;;  %v7417_v13 = vld [vmem:[%s7867_s9 + $0x1f0] sm:$0xff] }
 0x688   : > { %5493 = vst [vmem:[%s8839_s20 + $0xf0] sm:$0xff] %v5429_v57  ;;  %v7405_v57 = vld [vmem:[%s7867_s9 + $0x190] sm:$0xff]  ;;  %v5461_v29 = vadd.f32 %v7417_v13, %v5397_v56 }
 0x689   : > { %5495 = vst [vmem:[%s8839_s20 + $0x100] sm:$0xff] %v5431_v61  ;;  %v5449_v33 = vadd.f32 %v7405_v57, %v5385_v1  ;;  %v7406_v61 = vld [vmem:[%s7867_s9 + $0x198] sm:$0xff] }
 0x68a   : > { %5497 = vst [vmem:[%s8839_s20 + $0x110] sm:$0xff] %v5433_v49  ;;  %v5450_v52 = vadd.f32 %v7406_v61, %v5386_v45  ;;  %v5391_v49 = vmul.f32 %v8870_v50, %v9198_v26  ;;  %v5459_v50 = vadd.f32 %v7415_v2, %v5395_v9 }
 0x68b   : > { %5498 = vst [vmem:[%s8839_s20 + $0x118] sm:$0xff] %v5434_v16  ;;  %v9199_v16 = vld [vmem:[#allocation34_spill] sm:$0xff] }
 0x68c   : > { %5499 = vst [vmem:[%s8839_s20 + $0x120] sm:$0xff] %v5435_v51  ;;  %v5392_v58 = vmul.f32 %v8807_v23, %v9199_v16  ;;  %v5452_v51 = vadd.f32 %v7408_v59, %v5388_v28  ;;  %v5455_v21 = vadd.f32 %v7411_v63, %v5391_v49 }
 0x68d   : > { %5500 = vst [vmem:[%s8839_s20 + $0x128] sm:$0xff] %v5436_v17  ;;  %v5453_v17 = vadd.f32 %v7409_v37, %v5389_v5 }
 0x68e   : > { %5501 = vst [vmem:[%s8839_s20 + $0x130] sm:$0xff] %v5437_v54  ;;  %v7410_v54 = vld [vmem:[%s7867_s9 + $0x1b8] sm:$0xff] }
 0x68f   : > { %5502 = vst [vmem:[%s8839_s20 + $0x138] sm:$0xff] %v5438_v47  ;;  %v5454_v62 = vadd.f32 %v7410_v54, %v5390_v7  ;;  %v9201_v47 = vld [vmem:[#allocation37_spill] sm:$0xff] }
 0x690   : > { %5503 = vst [vmem:[%s8839_s20 + $0x140] sm:$0xff] %v5439_v34  ;;  %v5396_v0 = vmul.f32 %v8807_v23, %v9201_v47  ;;  %v5456_v34 = vadd.f32 %v7412_v46, %v5392_v58 }
 0x691   : > { %5504 = vst [vmem:[%s8839_s20 + $0x148] sm:$0xff] %v5440_v41  ;;  %v9203_v41 = vld [vmem:[#allocation38_spill] sm:$0xff] }
 0x692   : > { %5505 = vst [vmem:[%s8839_s20 + $0x150] sm:$0xff] %v5441_v8  ;;  %v5398_v42 = vmul.f32 %v8807_v23, %v9203_v41  ;;  %v5458_v8 = vadd.f32 %v7414_v60, %v5394_v12  ;;  %v7418_v23 = vld [vmem:[%s7867_s9 + $0x1f8] sm:$0xff]  ;;  %s7619_s9 = scalar_lea.hbm %s9120_s8, 1024 }
 0x693   : > { %5506 = vst [vmem:[%s8839_s20 + $0x158] sm:$0xff] %v5442_v30  ;;  %v5460_v30 = vadd.f32 %v7416_v55, %v5396_v0  ;;  %p7621_p8 = scmp.lt.s32.totalorder %s7619_s9, %s7615_s2 }
 0x694   : > { %5507 = vst [vmem:[%s8839_s20 + $0x160] sm:$0xff] %v5443_v22  ;;  %v5462_v22 = vadd.f32 %v7418_v23, %v5398_v42 }
 0x695   : > { %5508 = vst [vmem:[%s8839_s20 + $0x168] sm:$0xff] %v5444_v48  ;;  %p7622_p7 = por %p7621_p8, %p7620_p12 }
 0x696   : > { %5509 = vst [vmem:[%s8839_s20 + $0x170] sm:$0xff] %v5445_v10 }
 0x697   : > { %5510 = vst [vmem:[%s8839_s20 + $0x178] sm:$0xff] %v5446_v43  ;;  %p7623_p9 = pnand %p7622_p7, %p7618_p5 }
 0x698   : > { %5511 = vst [vmem:[%s8839_s20 + $0x180] sm:$0xff] %v5447_v36 }
 0x699   : > { %5512 = vst [vmem:[%s8839_s20 + $0x188] sm:$0xff] %v5448_v3 }
 0x69a   : > { %5513 = vst [vmem:[%s8839_s20 + $0x190] sm:$0xff] %v5449_v33 }
 0x69b   : > { %5514 = vst [vmem:[%s8839_s20 + $0x198] sm:$0xff] %v5450_v52 }
 0x69c   : > { %5515 = vst [vmem:[%s8839_s20 + $0x1a0] sm:$0xff] %v5451_v53 }
 0x69d   : > { %5516 = vst [vmem:[%s8839_s20 + $0x1a8] sm:$0xff] %v5452_v51 }
 0x69e   : > { %5517 = vst [vmem:[%s8839_s20 + $0x1b0] sm:$0xff] %v5453_v17 }
 0x69f   : > { %5518 = vst [vmem:[%s8839_s20 + $0x1b8] sm:$0xff] %v5454_v62 }
 0x6a0   : > { %5519 = vst [vmem:[%s8839_s20 + $0x1c0] sm:$0xff] %v5455_v21 }
 0x6a1   : > { %5520 = vst [vmem:[%s8839_s20 + $0x1c8] sm:$0xff] %v5456_v34 }
 0x6a2   : > { %5521 = vst [vmem:[%s8839_s20 + $0x1d0] sm:$0xff] %v5457_v31 }
 0x6a3   : > { %5522 = vst [vmem:[%s8839_s20 + $0x1d8] sm:$0xff] %v5458_v8 }
 0x6a4   : > { %5523 = vst [vmem:[%s8839_s20 + $0x1e0] sm:$0xff] %v5459_v50 }
 0x6a5   : > { %5524 = vst [vmem:[%s8839_s20 + $0x1e8] sm:$0xff] %v5460_v30 }
 0x6a6   : > { %5525 = vst [vmem:[%s8839_s20 + $0x1f0] sm:$0xff] %v5461_v29 }
 0x6a7   : > { %5526 = vst [vmem:[%s8839_s20 + $0x1f8] sm:$0xff] %v5462_v22 }
 0x6a8   : > { %7626 = shalt.err (!%p7623_p9)
}
 0x6a9   : > { %s7691_s26 = smov 256   ;;  %s7692_s20 = smov 16  }
 0x6aa   : > { %7263 = dma.vmem_to_hbm [thread:$0]  (%p7827_p13), %s5541_s23, 8192, %s5543_s15, %s5528_s24, %s7691_s26, %s7691_s26, %s7692_s20  }
 0x6ab PF: > { %s5557_s16 = sand.u32 1, %s7665_s27   ;;  %p9204_p10 = scmp.ge.s32.totalorder %s7677_s30, 2 }
 0x6ac   : > { %s5558_s12 = scalar_lea.sflag [#allocation6], %s5557_s16 }
 0x6ad   : > { %p7286_p11 = pnand %p9204_p10, %p7832_p4 }
 0x6af   : > { %p7287_p0 = pneg %p7286_p11 }
 0x6b1   : > { %7660 = dma.done.wait (%p7287_p0), %s5558_s12, 8192  }
 0x6b2   : > { %7662 = vsyncadd (%p7287_p0), %s5558_s12, 4294959104  ;;  %p24_p2 = scmp.ge.s32.totalorder %s7807_s17, 4   ;;  %s9205_s27 = smov %s7669_s28 }
 0x6b3   : > { %s9206_s28 = smov %s7673_s29  ;;  %s9207_s29 = smov %s7819_s25 }
 0x6b4   : > { %s9208_s30 = smov %s7807_s17  ;;  %26 = sbr.rel (!%p24_p2) target bundleno = 11 (0xb), region = 136 }
 0x6b9   :  { %5564 = vsyncpa [#allocation5], 1 }
 0x6ba   :  { %5566 = vsyncpa [#allocation5 + $0x1], 1 }
 0x6bb   :  { %5567 = vsyncpa [#allocation8], 1 }
 0x6bc   :  { %5568 = vsyncpa [#allocation11], 1 }
 0x6bd   :  { %5569 = vsyncpa [#allocation14], 1 }
 0x6be   :  { %5570 = vsyncpa [#allocation6], 1 }
 0x6bf   :  { %5572 = vsyncpa [#allocation6 + $0x1], 1 }

</bundles_post_ra>
